<compile_context>
chip_gen: v6e
topology: v6e:2x2x1
jax: 0.10.0
libtpu: 0.0.40
codegen_flags: <defaults>
</compile_context>

<pallas_src>
from functools import partial
import inspect

import jax
import jax.numpy as jnp
from jax.experimental import pallas as pl
from jax.experimental.pallas import tpu as pltpu

RMS_EPS = 1e-5
CONV_TAIL = 8          # rows of the previous chunk kept for the causal conv carry
SCAN_UNROLL = 8        # time steps per fori_loop iteration (y stored 8 rows at a time)


def _round_up(n, m):
    return ((n + m - 1) // m) * m


def _sigmoid(x):
    return 1.0 / (1.0 + jnp.exp(-x))


def _softplus(x):
    return jnp.where(x > 20.0, x, jnp.log1p(jnp.exp(jnp.minimum(x, 20.0))))


def mamba_rmsnorm_kernel(x_ref, win_ref, convw_ref, convb_ref, wxp_ref, wdt_ref,
                         dtb_ref, negAT_ref, dpar_ref, wout_ref, rmsw_ref,
                         o_ref,
                         h_sc, xtail_sc, dt_sc, dtx_sc, bc_sc, y_sc):
    c = pl.program_id(1)                              # L-chunk index (sequential)

    x = x_ref[0].astype(jnp.bfloat16)                 # (TC, D)
    TC = x.shape[0]
    d_conv, d_inner = convw_ref.shape
    S = negAT_ref.shape[0]                            # d_state
    SP = _round_up(S, 128)
    Rp = wxp_ref.shape[1] - 2 * SP                    # padded dt_rank block width

    # ---- reset per-sequence carried state at the first chunk ----
    @pl.when(c == 0)
    def _():
        h_sc[...] = jnp.zeros_like(h_sc)
        xtail_sc[...] = jnp.zeros_like(xtail_sc)

    # ---- fused in_proj (x | z halves), bf16 on MXU, f32 accumulate ----
    xz = jnp.dot(x, win_ref[...], preferred_element_type=jnp.float32)  # (TC, 2*d_inner)
    xin = xz[:, :d_inner]
    z = xz[:, d_inner:]

    # ---- causal depthwise conv1d (8-row cross-chunk tail carry) + SiLU ----
    cw = convw_ref[...]                               # (d_conv, d_inner) f32
    tail = xtail_sc[...]                              # (CONV_TAIL, d_inner): prev chunk tail
    row_tc = jax.lax.broadcasted_iota(jnp.int32, (TC, d_inner), 0)
    row_tl = jax.lax.broadcasted_iota(jnp.int32, (CONV_TAIL, d_inner), 0)
    acc = jnp.zeros((TC, d_inner), jnp.float32) + convb_ref[...]
    bnd = jnp.zeros((CONV_TAIL, d_inner), jnp.float32)
    for k in range(d_conv):                           # d_conv is tiny & static
        s = d_conv - 1 - k                            # causal shift for tap k
        wk = cw[k:k + 1, :]                           # (1, d_inner)
        if s == 0:
            acc = acc + xin * wk
        else:
            cur = pltpu.roll(xin, shift=s, axis=0)    # cur[t] = xin[t-s] for t>=s
            acc = acc + jnp.where(row_tc < s, 0.0, cur) * wk
            prv = pltpu.roll(tail, shift=s, axis=0)   # prv[t<s] = prev chunk tail rows
            bnd = bnd + jnp.where(row_tl < s, prv, 0.0) * wk
    if TC > CONV_TAIL:                                # add boundary term to the first rows
        acc = jnp.concatenate([acc[:CONV_TAIL] + bnd, acc[CONV_TAIL:]], axis=0)
    else:
        acc = acc + bnd
    xtail_sc[...] = xin[TC - CONV_TAIL:, :]           # save tail for the next chunk
    xc = acc * _sigmoid(acc)                          # (TC, d_inner) f32

    # ---- fused x_proj (dt_rank | B | C), 128-lane aligned blocks ----
    dbc = jnp.dot(xc.astype(jnp.bfloat16), wxp_ref[...],
                  preferred_element_type=jnp.float32)     # (TC, Rp + 2*SP)
    dtr = dbc[:, :Rp]                                     # padded dt_rank block
    Bm = dbc[:, Rp:Rp + S]                                # (TC, S)
    Cm = dbc[:, Rp + SP:Rp + SP + S]                      # (TC, S)

    dt = jnp.dot(dtr.astype(jnp.bfloat16), wdt_ref[...],
                 preferred_element_type=jnp.float32) + dtb_ref[...]
    dt = _softplus(dt)                                    # (TC, d_inner) f32
    dtx = dt * xc

    # stash per-step operands for the scan (lane-dense on d_inner)
    dt_sc[...] = dt
    dtx_sc[...] = dtx
    bc_sc[...] = jnp.concatenate([Bm, Cm], axis=1)        # (TC, 2*S)

    # ---- selective scan: d_inner lane-blocked, 8-step unrolled, VPU-only ----
    if d_inner <= 512:
        DB = d_inner
    else:
        DB = d_inner
        for cand in (512, 256, 128):
            if d_inner % cand == 0:
                DB = cand
                break
    NB = d_inner // DB

    # hoisted diag masks: extract B_t[s] / C_t[s] from a (1, 2S) row as (S, 1) cols
    iota_r = jax.lax.broadcasted_iota(jnp.int32, (S, 2 * S), 0)
    iota_c = jax.lax.broadcasted_iota(jnp.int32, (S, 2 * S), 1)
    maskB = (iota_c == iota_r).astype(jnp.float32)
    maskC = (iota_c == iota_r + S).astype(jnp.float32)

    for jb in range(NB):                                  # static loop over d_inner blocks
        off = jb * DB
        negA_blk = negAT_ref[:, pl.ds(off, DB)]           # (S, DB), stays in vregs
        h0 = h_sc[:, pl.ds(off, DB)]                      # carried state for this block

        def step_block(tb, h, off=off, negA_blk=negA_blk):
            t0 = pl.multiple_of(tb * SCAN_UNROLL, SCAN_UNROLL)
            y_rows = []
            for r in range(SCAN_UNROLL):                  # static unroll of 8 time steps
                t = t0 + r
                dt_t = dt_sc[pl.ds(t, 1), pl.ds(off, DB)]     # (1, DB)
                dtx_t = dtx_sc[pl.ds(t, 1), pl.ds(off, DB)]   # (1, DB)
                bc_row = bc_sc[pl.ds(t, 1), :]                # (1, 2S)
                m = jnp.broadcast_to(bc_row, (S, 2 * S))
                b_col = jnp.sum(m * maskB, axis=1, keepdims=True)   # (S, 1)
                c_col = jnp.sum(m * maskC, axis=1, keepdims=True)   # (S, 1)
                dA = jnp.exp(dt_t * negA_blk)                 # (S, DB)  (EUP)
                h = dA * h + b_col * dtx_t                    # (S, DB)  (VPU)
                y_rows.append(jnp.sum(c_col * h, axis=0, keepdims=True))  # (1, DB)
            y_sc[pl.ds(t0, SCAN_UNROLL), pl.ds(off, DB)] = jnp.concatenate(y_rows, axis=0)
            return h

        h_fin = jax.lax.fori_loop(0, TC // SCAN_UNROLL, step_block, h0)
        h_sc[:, pl.ds(off, DB)] = h_fin                   # carry state to next chunk

    # ---- skip term, gate, out_proj, RMSNorm ----
    y = y_sc[...] + dpar_ref[...] * xc
    y = y * (z * _sigmoid(z))

    out = jnp.dot(y.astype(jnp.bfloat16), wout_ref[...],
                  preferred_element_type=jnp.float32)     # (TC, D)

    var = jnp.mean(out * out, axis=-1, keepdims=True)
    out = out * jax.lax.rsqrt(var + RMS_EPS) * rmsw_ref[...]
    o_ref[...] = out[None, :, :].astype(o_ref.dtype)


def _const_weight_spec(shape):
    """Full-array weight block, constant index_map; single-buffered when supported."""
    idx = lambda b, c: (0, 0)
    try:
        return pl.BlockSpec(shape, idx, pipeline_mode=pl.Buffered(1))
    except Exception:
        return pl.BlockSpec(shape, idx)


def mamba_rmsnorm_layer(x, p, *, chunk=128):
    """One [Mamba -> RMSNorm] layer.  x: (B, L, D) (bf16 or f32).
    chunk: 128 default; 256 is worthwhile on v6e (128 MiB VMEM), 64-128 on v7x."""
    B, L, D = x.shape
    d_conv, d_inner = p['conv_w'].shape
    d_state = p['negA_T'].shape[0]
    tc = min(chunk, L)
    assert L % tc == 0 and tc % SCAN_UNROLL == 0, \
        "sequence chunk must divide L and be a multiple of 8"
    nc = L // tc

    weights = [p['w_in'], p['conv_w'], p['conv_b'], p['w_xp'], p['w_dt'],
               p['dt_b'], p['negA_T'], p['D'], p['w_out'], p['rms_w']]

    in_specs = [pl.BlockSpec((1, tc, D), lambda b, c: (b, c, 0))]
    in_specs += [_const_weight_spec(w.shape) for w in weights]

    scratch = [
        pltpu.VMEM((d_state, d_inner), jnp.float32),       # h (scan state, cross-chunk)
        pltpu.VMEM((CONV_TAIL, d_inner), jnp.float32),     # causal-conv tail carry
        pltpu.VMEM((tc, d_inner), jnp.float32),            # dt
        pltpu.VMEM((tc, d_inner), jnp.float32),            # dt * x
        pltpu.VMEM((tc, 2 * d_state), jnp.float32),        # B|C rows
        pltpu.VMEM((tc, d_inner), jnp.float32),            # y
    ]

    # VMEM limit derived from actual buffer sizes, capped below physical VMEM
    # (v7x has only 64 MiB -- never request the whole thing).
    itemsize = jnp.dtype(x.dtype).itemsize
    weight_bytes = sum(int(w.size) * jnp.dtype(w.dtype).itemsize for w in weights)
    scratch_bytes = (d_state + CONV_TAIL + 3 * tc) * d_inner * 4 + tc * 2 * d_state * 4
    io_bytes = 2 * 2 * tc * D * itemsize                   # in + out, double-buffered
    value_bytes = 8 * tc * d_inner * 4                     # spilled temporaries (xz, xc, z, dbc, ...)
    est = weight_bytes + scratch_bytes + io_bytes + value_bytes
    try:
        vmem_cap = int(pltpu.get_tpu_info().vmem_capacity_bytes)
    except Exception:
        vmem_cap = 64 * 1024 * 1024
    vmem_limit = int(min(max(est * 3 // 2, 16 * 1024 * 1024), vmem_cap * 7 // 8))

    return pl.pallas_call(
        mamba_rmsnorm_kernel,
        out_shape=jax.ShapeDtypeStruct((B, L, D), x.dtype),
        grid=(B, nc),
        in_specs=in_specs,
        out_specs=pl.BlockSpec((1, tc, D), lambda b, c: (b, c, 0)),
        scratch_shapes=scratch,
        input_output_aliases={0: 0},
        compiler_params=pltpu.CompilerParams(
            # NOTE(v7x): keep >=2 batch entries per device so both TensorCores
            # get work along the "parallel" axis.
            dimension_semantics=("parallel", "arbitrary"),
            vmem_limit_bytes=vmem_limit),
    )(x, *weights)


# TODO(synk): fuse the depth loop into a single pallas_call with double-buffered
# per-layer weight DMAs (P10 cross-call prefetch) to remove depth x activation
# HBM round-trips.
@partial(jax.jit, static_argnames=("chunk",))
def ssm_conv1d_forward(x, params, chunk=128):
    x = x.astype(jnp.bfloat16)                # bf16 inter-layer activations
    for p in params:
        x = mamba_rmsnorm_layer(x, p, chunk=chunk)
    return x


def init_params(key, dim, depth=8, d_state=16, d_conv=4, expand=2):
    """Deterministic synthetic init (Mamba-style A_log / D / rms weight init).
    Matmul weights are stored pre-transposed, fused and lane-padded, in bf16."""
    d_inner = expand * dim
    dt_rank = (dim + 15) // 16
    Rp = _round_up(dt_rank, 128)
    SP = _round_up(d_state, 128)
    layers = []
    for i in range(depth):
        ks = jax.random.split(jax.random.fold_in(key, i), 9)
        s = 0.1
        A_log = jnp.log(jnp.broadcast_to(
            jnp.arange(1, d_state + 1, dtype=jnp.float32), (d_inner, d_state)))
        w_x = jax.random.normal(ks[3], (d_inner, dt_rank), jnp.float32) * s
        w_B = jax.random.normal(ks[4], (d_inner, d_state), jnp.float32) * s
        w_C = jax.random.normal(ks[5], (d_inner, d_state), jnp.float32) * s
        w_xp = jnp.zeros((d_inner, Rp + 2 * SP), jnp.float32)
        w_xp = w_xp.at[:, :dt_rank].set(w_x)
        w_xp = w_xp.at[:, Rp:Rp + d_state].set(w_B)
        w_xp = w_xp.at[:, Rp + SP:Rp + SP + d_state].set(w_C)
        w_dt = jnp.zeros((Rp, d_inner), jnp.float32)
        w_dt = w_dt.at[:dt_rank, :].set(
            jax.random.normal(ks[6], (dt_rank, d_inner), jnp.float32) * s)
        p = dict(
            w_in=(jax.random.normal(ks[0], (dim, 2 * d_inner), jnp.float32) * s
                  ).astype(jnp.bfloat16),
            conv_w=jax.random.normal(ks[1], (d_conv, d_inner), jnp.float32) * s,
            conv_b=jax.random.normal(ks[2], (1, d_inner), jnp.float32) * s,
            w_xp=w_xp.astype(jnp.bfloat16),
            w_dt=w_dt.astype(jnp.bfloat16),
            dt_b=jax.random.normal(ks[7], (1, d_inner), jnp.float32) * s,
            negA_T=(-jnp.exp(A_log)).T,                 # A = -exp(A_log), (S, d_inner)
            D=jnp.ones((1, d_inner), jnp.float32),
            w_out=(jax.random.normal(ks[8], (d_inner, dim), jnp.float32) * s
                   ).astype(jnp.bfloat16),
            rms_w=jnp.ones((1, dim), jnp.float32),
        )
        layers.append(p)
    return layers


def layer_ref(x, p):
    """Plain-JAX reference for one [Mamba -> RMSNorm] layer (same dtype policy)."""
    f32 = jnp.float32
    B, L, _ = x.shape
    d_conv, d_inner = p['conv_w'].shape
    S = p['negA_T'].shape[0]
    SP = _round_up(S, 128)
    Rp = p['w_xp'].shape[1] - 2 * SP

    xz = jnp.dot(x.astype(jnp.bfloat16), p['w_in'], preferred_element_type=f32)
    xin, z = xz[..., :d_inner], xz[..., d_inner:]

    xpad = jnp.pad(xin, ((0, 0), (d_conv - 1, 0), (0, 0)))
    acc = jnp.zeros((B, L, d_inner), f32) + p['conv_b']
    for k in range(d_conv):
        acc = acc + xpad[:, k:k + L, :] * p['conv_w'][k][None, None, :]
    xc = acc * _sigmoid(acc)

    dbc = jnp.dot(xc.astype(jnp.bfloat16), p['w_xp'], preferred_element_type=f32)
    dtr = dbc[..., :Rp]
    Bm = dbc[..., Rp:Rp + S]
    Cm = dbc[..., Rp + SP:Rp + SP + S]
    dt = _softplus(jnp.dot(dtr.astype(jnp.bfloat16), p['w_dt'],
                           preferred_element_type=f32) + p['dt_b'])

    A_T = p['negA_T']                                  # (S, d_inner)
    dtx = dt * xc

    def step(h, inp):
        dt_t, dtx_t, B_t, C_t = inp                    # (B,d_inner)x2, (B,S)x2
        dA = jnp.exp(dt_t[:, None, :] * A_T[None, :, :])
        h = dA * h + B_t[:, :, None] * dtx_t[:, None, :]
        y = jnp.sum(h * C_t[:, :, None], axis=1)
        return h, y

    h0 = jnp.zeros((B, S, d_inner), f32)
    xs = (jnp.swapaxes(dt, 0, 1), jnp.swapaxes(dtx, 0, 1),
          jnp.swapaxes(Bm, 0, 1), jnp.swapaxes(Cm, 0, 1))
    _, ys = jax.lax.scan(step, h0, xs)
    y = jnp.swapaxes(ys, 0, 1)                         # (B, L, d_inner)

    y = y + p['D'] * xc
    y = y * (z * _sigmoid(z))
    out = jnp.dot(y.astype(jnp.bfloat16), p['w_out'], preferred_element_type=f32)
    var = jnp.mean(out * out, axis=-1, keepdims=True)
    return out * jax.lax.rsqrt(var + RMS_EPS) * p['rms_w']


if __name__ == "__main__":
    key = jax.random.PRNGKey(0)
    B, L, dim, depth = 2, 16, 32, 8                    # 2 L-chunks of 8 -> exercises carry

    params = init_params(jax.random.fold_in(key, 1), dim, depth=depth)
    x = jax.random.normal(jax.random.fold_in(key, 2), (B, L, dim), jnp.float32)

    out = jax.block_until_ready(ssm_conv1d_forward(x, params, chunk=8))

    # verify against a plain-JAX reference with the same bf16-matmul / bf16-layer-I/O
    # / f32-scan dtype policy
    ref = x.astype(jnp.bfloat16)
    for p in params:
        ref = layer_ref(ref, p).astype(jnp.bfloat16)
    ref = jax.block_until_ready(ref)

    assert out.shape == (B, L, dim)
    outf = out.astype(jnp.float32)
    reff = ref.astype(jnp.float32)
    assert bool(jnp.all(jnp.isfinite(outf)))
    max_err = float(jnp.max(jnp.abs(outf - reff)))
    assert max_err < 1e-1, f"max abs err {max_err}"
    print("KERNEL_OK")
</pallas_src>

<mosaic_0001>
module attributes {stable_mosaic.version = 11 : i64} {
  func.func @mamba_rmsnorm_kernel(%arg0: i32, %arg1: i32, %arg2: memref<1x8x32xbf16, #tpu.memory_space<vmem>>, %arg3: memref<32x128xbf16, #tpu.memory_space<vmem>>, %arg4: memref<4x64xf32, #tpu.memory_space<vmem>>, %arg5: memref<1x64xf32, #tpu.memory_space<vmem>>, %arg6: memref<64x384xbf16, #tpu.memory_space<vmem>>, %arg7: memref<128x64xbf16, #tpu.memory_space<vmem>>, %arg8: memref<1x64xf32, #tpu.memory_space<vmem>>, %arg9: memref<16x64xf32, #tpu.memory_space<vmem>>, %arg10: memref<1x64xf32, #tpu.memory_space<vmem>>, %arg11: memref<64x32xbf16, #tpu.memory_space<vmem>>, %arg12: memref<1x32xf32, #tpu.memory_space<vmem>>, %arg13: memref<1x8x32xbf16, #tpu.memory_space<vmem>>, %arg14: memref<16x64xf32, #tpu.memory_space<vmem>>, %arg15: memref<8x64xf32, #tpu.memory_space<vmem>>, %arg16: memref<8x64xf32, #tpu.memory_space<vmem>>, %arg17: memref<8x64xf32, #tpu.memory_space<vmem>>, %arg18: memref<8x32xf32, #tpu.memory_space<vmem>>, %arg19: memref<8x64xf32, #tpu.memory_space<vmem>>) attributes {dimension_semantics = [#tpu.dimension_semantics<parallel>, #tpu.dimension_semantics<arbitrary>], iteration_bounds = array<i64: 2, 2>, scalar_prefetch = 0 : i64, scratch_operands = 6 : i64, tpu.core_type = #tpu.core_type<tc>, window_params = [{transform_indices = @transform_0, window_bounds = array<i64: 1, 8, 32>}, {pipeline_mode = #tpu.pipeline_mode<synchronous>, transform_indices = @transform_1, window_bounds = array<i64: 32, 128>}, {pipeline_mode = #tpu.pipeline_mode<synchronous>, transform_indices = @transform_2, window_bounds = array<i64: 4, 64>}, {pipeline_mode = #tpu.pipeline_mode<synchronous>, transform_indices = @transform_3, window_bounds = array<i64: 1, 64>}, {pipeline_mode = #tpu.pipeline_mode<synchronous>, transform_indices = @transform_4, window_bounds = array<i64: 64, 384>}, {pipeline_mode = #tpu.pipeline_mode<synchronous>, transform_indices = @transform_5, window_bounds = array<i64: 128, 64>}, {pipeline_mode = #tpu.pipeline_mode<synchronous>, transform_indices = @transform_6, window_bounds = array<i64: 1, 64>}, {pipeline_mode = #tpu.pipeline_mode<synchronous>, transform_indices = @transform_7, window_bounds = array<i64: 16, 64>}, {pipeline_mode = #tpu.pipeline_mode<synchronous>, transform_indices = @transform_8, window_bounds = array<i64: 1, 64>}, {pipeline_mode = #tpu.pipeline_mode<synchronous>, transform_indices = @transform_9, window_bounds = array<i64: 64, 32>}, {pipeline_mode = #tpu.pipeline_mode<synchronous>, transform_indices = @transform_10, window_bounds = array<i64: 1, 32>}, {transform_indices = @transform_11, window_bounds = array<i64: 1, 8, 32>}]} {
    %c0 = arith.constant 0 : index
    %c0_0 = arith.constant 0 : index
    %c0_1 = arith.constant 0 : index
    %0 = vector.load %arg2[%c0, %c0_0, %c0_1] : memref<1x8x32xbf16, #tpu.memory_space<vmem>>, vector<1x8x32xbf16>
    %1 = vector.shape_cast %0 : vector<1x8x32xbf16> to vector<8x32xbf16>
    %c0_i32 = arith.constant 0 : i32
    %2 = arith.cmpi eq, %arg1, %c0_i32 : i32
    %3 = arith.extui %2 : i1 to i32
    %c0_i32_2 = arith.constant 0 : i32
    %4 = arith.cmpi ne, %3, %c0_i32_2 : i32
    scf.if %4 {
      %cst_128 = arith.constant 0.000000e+00 : f32
      %374 = vector.broadcast %cst_128 : f32 to vector<16x64xf32>
      %c0_129 = arith.constant 0 : index
      %c0_130 = arith.constant 0 : index
      %375 = vector.load %arg14[%c0_129, %c0_130] : memref<16x64xf32, #tpu.memory_space<vmem>>, vector<16x64xf32>
      tpu.vector_store %arg14[%c0_129, %c0_130], %374 {strides = array<i32>} : memref<16x64xf32, #tpu.memory_space<vmem>>, vector<16x64xf32>,
      %cst_131 = arith.constant 0.000000e+00 : f32
      %376 = vector.broadcast %cst_131 : f32 to vector<8x64xf32>
      %c0_132 = arith.constant 0 : index
      %c0_133 = arith.constant 0 : index
      %377 = vector.load %arg15[%c0_132, %c0_133] : memref<8x64xf32, #tpu.memory_space<vmem>>, vector<8x64xf32>
      tpu.vector_store %arg15[%c0_132, %c0_133], %376 {strides = array<i32>} : memref<8x64xf32, #tpu.memory_space<vmem>>, vector<8x64xf32>,
    } else {
    }
    %c0_3 = arith.constant 0 : index
    %c0_4 = arith.constant 0 : index
    %5 = vector.load %arg3[%c0_3, %c0_4] : memref<32x128xbf16, #tpu.memory_space<vmem>>, vector<32x128xbf16>
    %cst = arith.constant dense<0.000000e+00> : vector<8x128xf32>
    %6 = tpu.matmul %1, %5, %cst {dimension_numbers = #tpu.dot_dimension_numbers<[1], [0], [0], [1], [0, 0, 1, 1], [], []>} : vector<8x32xbf16>, vector<32x128xbf16>, vector<8x128xf32> -> vector<8x128xf32>
    %7 = vector.extract_strided_slice %6 {offsets = [0, 0], sizes = [8, 64], strides = [1, 1]} : vector<8x128xf32> to vector<8x64xf32>
    %8 = vector.extract_strided_slice %6 {offsets = [0, 64], sizes = [8, 64], strides = [1, 1]} : vector<8x128xf32> to vector<8x64xf32>
    %c0_5 = arith.constant 0 : index
    %c0_6 = arith.constant 0 : index
    %9 = vector.load %arg4[%c0_5, %c0_6] : memref<4x64xf32, #tpu.memory_space<vmem>>, vector<4x64xf32>
    %c0_7 = arith.constant 0 : index
    %c0_8 = arith.constant 0 : index
    %10 = vector.load %arg15[%c0_7, %c0_8] : memref<8x64xf32, #tpu.memory_space<vmem>>, vector<8x64xf32>
    %11 = tpu.iota {dimensions = array<i32: 0>} : vector<8x64xi32>
    %12 = tpu.iota {dimensions = array<i32: 0>} : vector<8x64xi32>
    %cst_9 = arith.constant 0.000000e+00 : f32
    %13 = vector.broadcast %cst_9 : f32 to vector<8x64xf32>
    %c0_10 = arith.constant 0 : index
    %c0_11 = arith.constant 0 : index
    %14 = vector.load %arg5[%c0_10, %c0_11] : memref<1x64xf32, #tpu.memory_space<vmem>>, vector<1x64xf32>
    %15 = vector.broadcast %14 : vector<1x64xf32> to vector<8x64xf32>
    %16 = arith.addf %13, %15 : vector<8x64xf32>
    %cst_12 = arith.constant 0.000000e+00 : f32
    %17 = vector.broadcast %cst_12 : f32 to vector<8x64xf32>
    %18 = vector.extract_strided_slice %9 {offsets = [0, 0], sizes = [1, 64], strides = [1, 1]} : vector<4x64xf32> to vector<1x64xf32>
    %c3_i32 = arith.constant 3 : i32
    %19 = tpu.dynamic_rotate %7 by %c3_i32 dim 0 : vector<8x64xf32>, i32 -> vector<8x64xf32>
    %c3_i32_13 = arith.constant 3 : i32
    %20 = vector.broadcast %c3_i32_13 : i32 to vector<8x64xi32>
    %21 = arith.cmpi slt, %11, %20 : vector<8x64xi32>
    %cst_14 = arith.constant 0.000000e+00 : f32
    %22 = vector.broadcast %cst_14 : f32 to vector<8x64xf32>
    %23 = arith.select %21, %22, %19 : vector<8x64xi1>, vector<8x64xf32>
    %24 = vector.broadcast %18 : vector<1x64xf32> to vector<8x64xf32>
    %25 = arith.mulf %23, %24 : vector<8x64xf32>
    %26 = arith.addf %16, %25 : vector<8x64xf32>
    %c3_i32_15 = arith.constant 3 : i32
    %27 = tpu.dynamic_rotate %10 by %c3_i32_15 dim 0 : vector<8x64xf32>, i32 -> vector<8x64xf32>
    %c3_i32_16 = arith.constant 3 : i32
    %28 = vector.broadcast %c3_i32_16 : i32 to vector<8x64xi32>
    %29 = arith.cmpi slt, %12, %28 : vector<8x64xi32>
    %cst_17 = arith.constant 0.000000e+00 : f32
    %30 = vector.broadcast %cst_17 : f32 to vector<8x64xf32>
    %31 = arith.select %29, %27, %30 : vector<8x64xi1>, vector<8x64xf32>
    %32 = vector.broadcast %18 : vector<1x64xf32> to vector<8x64xf32>
    %33 = arith.mulf %31, %32 : vector<8x64xf32>
    %34 = arith.addf %17, %33 : vector<8x64xf32>
    %35 = vector.extract_strided_slice %9 {offsets = [1, 0], sizes = [1, 64], strides = [1, 1]} : vector<4x64xf32> to vector<1x64xf32>
    %c2_i32 = arith.constant 2 : i32
    %36 = tpu.dynamic_rotate %7 by %c2_i32 dim 0 : vector<8x64xf32>, i32 -> vector<8x64xf32>
    %c2_i32_18 = arith.constant 2 : i32
    %37 = vector.broadcast %c2_i32_18 : i32 to vector<8x64xi32>
    %38 = arith.cmpi slt, %11, %37 : vector<8x64xi32>
    %cst_19 = arith.constant 0.000000e+00 : f32
    %39 = vector.broadcast %cst_19 : f32 to vector<8x64xf32>
    %40 = arith.select %38, %39, %36 : vector<8x64xi1>, vector<8x64xf32>
    %41 = vector.broadcast %35 : vector<1x64xf32> to vector<8x64xf32>
    %42 = arith.mulf %40, %41 : vector<8x64xf32>
    %43 = arith.addf %26, %42 : vector<8x64xf32>
    %c2_i32_20 = arith.constant 2 : i32
    %44 = tpu.dynamic_rotate %10 by %c2_i32_20 dim 0 : vector<8x64xf32>, i32 -> vector<8x64xf32>
    %c2_i32_21 = arith.constant 2 : i32
    %45 = vector.broadcast %c2_i32_21 : i32 to vector<8x64xi32>
    %46 = arith.cmpi slt, %12, %45 : vector<8x64xi32>
    %cst_22 = arith.constant 0.000000e+00 : f32
    %47 = vector.broadcast %cst_22 : f32 to vector<8x64xf32>
    %48 = arith.select %46, %44, %47 : vector<8x64xi1>, vector<8x64xf32>
    %49 = vector.broadcast %35 : vector<1x64xf32> to vector<8x64xf32>
    %50 = arith.mulf %48, %49 : vector<8x64xf32>
    %51 = arith.addf %34, %50 : vector<8x64xf32>
    %52 = vector.extract_strided_slice %9 {offsets = [2, 0], sizes = [1, 64], strides = [1, 1]} : vector<4x64xf32> to vector<1x64xf32>
    %c1_i32 = arith.constant 1 : i32
    %53 = tpu.dynamic_rotate %7 by %c1_i32 dim 0 : vector<8x64xf32>, i32 -> vector<8x64xf32>
    %c1_i32_23 = arith.constant 1 : i32
    %54 = vector.broadcast %c1_i32_23 : i32 to vector<8x64xi32>
    %55 = arith.cmpi slt, %11, %54 : vector<8x64xi32>
    %cst_24 = arith.constant 0.000000e+00 : f32
    %56 = vector.broadcast %cst_24 : f32 to vector<8x64xf32>
    %57 = arith.select %55, %56, %53 : vector<8x64xi1>, vector<8x64xf32>
    %58 = vector.broadcast %52 : vector<1x64xf32> to vector<8x64xf32>
    %59 = arith.mulf %57, %58 : vector<8x64xf32>
    %60 = arith.addf %43, %59 : vector<8x64xf32>
    %c1_i32_25 = arith.constant 1 : i32
    %61 = tpu.dynamic_rotate %10 by %c1_i32_25 dim 0 : vector<8x64xf32>, i32 -> vector<8x64xf32>
    %c1_i32_26 = arith.constant 1 : i32
    %62 = vector.broadcast %c1_i32_26 : i32 to vector<8x64xi32>
    %63 = arith.cmpi slt, %12, %62 : vector<8x64xi32>
    %cst_27 = arith.constant 0.000000e+00 : f32
    %64 = vector.broadcast %cst_27 : f32 to vector<8x64xf32>
    %65 = arith.select %63, %61, %64 : vector<8x64xi1>, vector<8x64xf32>
    %66 = vector.broadcast %52 : vector<1x64xf32> to vector<8x64xf32>
    %67 = arith.mulf %65, %66 : vector<8x64xf32>
    %68 = arith.addf %51, %67 : vector<8x64xf32>
    %69 = vector.extract_strided_slice %9 {offsets = [3, 0], sizes = [1, 64], strides = [1, 1]} : vector<4x64xf32> to vector<1x64xf32>
    %70 = vector.broadcast %69 : vector<1x64xf32> to vector<8x64xf32>
    %71 = arith.mulf %7, %70 : vector<8x64xf32>
    %72 = arith.addf %60, %71 : vector<8x64xf32>
    %73 = arith.addf %72, %68 : vector<8x64xf32>
    %c0_28 = arith.constant 0 : index
    %c0_29 = arith.constant 0 : index
    %74 = vector.load %arg15[%c0_28, %c0_29] : memref<8x64xf32, #tpu.memory_space<vmem>>, vector<8x64xf32>
    tpu.vector_store %arg15[%c0_28, %c0_29], %7 {strides = array<i32>} : memref<8x64xf32, #tpu.memory_space<vmem>>, vector<8x64xf32>,
    %cst_30 = arith.constant 0.000000e+00 : f32
    %75 = vector.broadcast %cst_30 : f32 to vector<8x64xf32>
    %76 = arith.subf %75, %73 : vector<8x64xf32>
    %77 = math.exp %76 : vector<8x64xf32>
    %cst_31 = arith.constant 1.000000e+00 : f32
    %78 = vector.broadcast %cst_31 : f32 to vector<8x64xf32>
    %79 = arith.addf %78, %77 : vector<8x64xf32>
    %cst_32 = arith.constant 1.000000e+00 : f32
    %80 = vector.broadcast %cst_32 : f32 to vector<8x64xf32>
    %81 = arith.divf %80, %79 : vector<8x64xf32>
    %82 = arith.mulf %73, %81 : vector<8x64xf32>
    %83 = arith.truncf %82 : vector<8x64xf32> to vector<8x64xbf16>
    %c0_33 = arith.constant 0 : index
    %c0_34 = arith.constant 0 : index
    %84 = vector.load %arg6[%c0_33, %c0_34] : memref<64x384xbf16, #tpu.memory_space<vmem>>, vector<64x384xbf16>
    %cst_35 = arith.constant dense<0.000000e+00> : vector<8x384xf32>
    %85 = tpu.matmul %83, %84, %cst_35 {dimension_numbers = #tpu.dot_dimension_numbers<[1], [0], [0], [1], [0, 0, 1, 1], [], []>} : vector<8x64xbf16>, vector<64x384xbf16>, vector<8x384xf32> -> vector<8x384xf32>
    %86 = vector.extract_strided_slice %85 {offsets = [0, 0], sizes = [8, 128], strides = [1, 1]} : vector<8x384xf32> to vector<8x128xf32>
    %87 = vector.extract_strided_slice %85 {offsets = [0, 128], sizes = [8, 16], strides = [1, 1]} : vector<8x384xf32> to vector<8x16xf32>
    %88 = vector.extract_strided_slice %85 {offsets = [0, 256], sizes = [8, 16], strides = [1, 1]} : vector<8x384xf32> to vector<8x16xf32>
    %89 = arith.truncf %86 : vector<8x128xf32> to vector<8x128xbf16>
    %c0_36 = arith.constant 0 : index
    %c0_37 = arith.constant 0 : index
    %90 = vector.load %arg7[%c0_36, %c0_37] : memref<128x64xbf16, #tpu.memory_space<vmem>>, vector<128x64xbf16>
    %cst_38 = arith.constant dense<0.000000e+00> : vector<8x64xf32>
    %91 = tpu.matmul %89, %90, %cst_38 {dimension_numbers = #tpu.dot_dimension_numbers<[1], [0], [0], [1], [0, 0, 1, 1], [], []>} : vector<8x128xbf16>, vector<128x64xbf16>, vector<8x64xf32> -> vector<8x64xf32>
    %c0_39 = arith.constant 0 : index
    %c0_40 = arith.constant 0 : index
    %92 = vector.load %arg8[%c0_39, %c0_40] : memref<1x64xf32, #tpu.memory_space<vmem>>, vector<1x64xf32>
    %93 = vector.broadcast %92 : vector<1x64xf32> to vector<8x64xf32>
    %94 = arith.addf %91, %93 : vector<8x64xf32>
    %cst_41 = arith.constant 2.000000e+01 : f32
    %95 = vector.broadcast %cst_41 : f32 to vector<8x64xf32>
    %96 = arith.cmpf ogt, %94, %95 : vector<8x64xf32>
    %cst_42 = arith.constant 2.000000e+01 : f32
    %97 = vector.broadcast %cst_42 : f32 to vector<8x64xf32>
    %98 = arith.minimumf %94, %97 : vector<8x64xf32>
    %99 = math.exp %98 : vector<8x64xf32>
    %100 = math.log1p %99 : vector<8x64xf32>
    %101 = arith.select %96, %94, %100 : vector<8x64xi1>, vector<8x64xf32>
    %102 = arith.mulf %101, %82 : vector<8x64xf32>
    %c0_43 = arith.constant 0 : index
    %c0_44 = arith.constant 0 : index
    %103 = vector.load %arg16[%c0_43, %c0_44] : memref<8x64xf32, #tpu.memory_space<vmem>>, vector<8x64xf32>
    tpu.vector_store %arg16[%c0_43, %c0_44], %101 {strides = array<i32>} : memref<8x64xf32, #tpu.memory_space<vmem>>, vector<8x64xf32>,
    %c0_45 = arith.constant 0 : index
    %c0_46 = arith.constant 0 : index
    %104 = vector.load %arg17[%c0_45, %c0_46] : memref<8x64xf32, #tpu.memory_space<vmem>>, vector<8x64xf32>
    tpu.vector_store %arg17[%c0_45, %c0_46], %102 {strides = array<i32>} : memref<8x64xf32, #tpu.memory_space<vmem>>, vector<8x64xf32>,
    %105 = tpu.concatenate %87, %88 in 1 : vector<8x16xf32>, vector<8x16xf32> -> vector<8x32xf32>
    %c0_47 = arith.constant 0 : index
    %c0_48 = arith.constant 0 : index
    %106 = vector.load %arg18[%c0_47, %c0_48] : memref<8x32xf32, #tpu.memory_space<vmem>>, vector<8x32xf32>
    tpu.vector_store %arg18[%c0_47, %c0_48], %105 {strides = array<i32>} : memref<8x32xf32, #tpu.memory_space<vmem>>, vector<8x32xf32>,
    %107 = tpu.iota {dimensions = array<i32: 0>} : vector<16x32xi32>
    %108 = tpu.iota {dimensions = array<i32: 1>} : vector<16x32xi32>
    %109 = arith.cmpi eq, %108, %107 : vector<16x32xi32>
    %110 = arith.extui %109 : vector<16x32xi1> to vector<16x32xi32>
    %111 = arith.sitofp %110 : vector<16x32xi32> to vector<16x32xf32>
    %c16_i32 = arith.constant 16 : i32
    %112 = vector.broadcast %c16_i32 : i32 to vector<16x32xi32>
    %113 = arith.addi %107, %112 : vector<16x32xi32>
    %114 = arith.cmpi eq, %108, %113 : vector<16x32xi32>
    %115 = arith.extui %114 : vector<16x32xi1> to vector<16x32xi32>
    %116 = arith.sitofp %115 : vector<16x32xi32> to vector<16x32xf32>
    %c0_49 = arith.constant 0 : index
    %c0_50 = arith.constant 0 : index
    %117 = vector.load %arg9[%c0_49, %c0_50] : memref<16x64xf32, #tpu.memory_space<vmem>>, vector<16x64xf32>
    %c0_51 = arith.constant 0 : index
    %c0_52 = arith.constant 0 : index
    %118 = vector.load %arg14[%c0_51, %c0_52] : memref<16x64xf32, #tpu.memory_space<vmem>>, vector<16x64xf32>
    %c0_i32_53 = arith.constant 0 : i32
    %c8_i32 = arith.constant 8 : i32
    %119 = arith.muli %c0_i32_53, %c8_i32 : i32
    %120 = tpu.assume_multiple %119, 8 : i32
    %c0_i32_54 = arith.constant 0 : i32
    %121 = arith.addi %120, %c0_i32_54 : i32
    %122 = arith.index_cast %121 : i32 to index
    %c0_55 = arith.constant 0 : index
    %123 = vector.load %arg16[%122, %c0_55] : memref<8x64xf32, #tpu.memory_space<vmem>>, vector<1x64xf32>
    %124 = arith.index_cast %121 : i32 to index
    %c0_56 = arith.constant 0 : index
    %125 = vector.load %arg17[%124, %c0_56] : memref<8x64xf32, #tpu.memory_space<vmem>>, vector<1x64xf32>
    %126 = arith.index_cast %121 : i32 to index
    %c0_57 = arith.constant 0 : index
    %127 = vector.load %arg18[%126, %c0_57] : memref<8x32xf32, #tpu.memory_space<vmem>>, vector<1x32xf32>
    %128 = vector.shape_cast %127 : vector<1x32xf32> to vector<1x32xf32>
    %129 = vector.broadcast %128 : vector<1x32xf32> to vector<16x32xf32>
    %130 = arith.mulf %129, %111 : vector<16x32xf32>
    %cst_58 = arith.constant dense<0.000000e+00> : vector<16xf32>
    %131 = vector.multi_reduction <add>, %130, %cst_58 [1] : vector<16x32xf32> to vector<16xf32>
    %132 = vector.shape_cast %131 : vector<16xf32> to vector<16x1xf32>
    %133 = arith.mulf %129, %116 : vector<16x32xf32>
    %cst_59 = arith.constant dense<0.000000e+00> : vector<16xf32>
    %134 = vector.multi_reduction <add>, %133, %cst_59 [1] : vector<16x32xf32> to vector<16xf32>
    %135 = vector.shape_cast %134 : vector<16xf32> to vector<16x1xf32>
    %136 = vector.broadcast %123 : vector<1x64xf32> to vector<16x64xf32>
    %137 = arith.mulf %136, %117 : vector<16x64xf32>
    %138 = math.exp %137 : vector<16x64xf32>
    %139 = arith.mulf %138, %118 : vector<16x64xf32>
    %140 = vector.broadcast %132 : vector<16x1xf32> to vector<16x64xf32>
    %141 = vector.broadcast %125 : vector<1x64xf32> to vector<16x64xf32>
    %142 = arith.mulf %140, %141 : vector<16x64xf32>
    %143 = arith.addf %139, %142 : vector<16x64xf32>
    %144 = vector.broadcast %135 : vector<16x1xf32> to vector<16x64xf32>
    %145 = arith.mulf %144, %143 : vector<16x64xf32>
    %cst_60 = arith.constant dense<0.000000e+00> : vector<64xf32>
    %146 = vector.multi_reduction <add>, %145, %cst_60 [0] : vector<16x64xf32> to vector<64xf32>
    %147 = vector.shape_cast %146 : vector<64xf32> to vector<1x64xf32>
    %c1_i32_61 = arith.constant 1 : i32
    %148 = arith.addi %120, %c1_i32_61 : i32
    %149 = arith.index_cast %148 : i32 to index
    %c0_62 = arith.constant 0 : index
    %150 = vector.load %arg16[%149, %c0_62] : memref<8x64xf32, #tpu.memory_space<vmem>>, vector<1x64xf32>
    %151 = arith.index_cast %148 : i32 to index
    %c0_63 = arith.constant 0 : index
    %152 = vector.load %arg17[%151, %c0_63] : memref<8x64xf32, #tpu.memory_space<vmem>>, vector<1x64xf32>
    %153 = arith.index_cast %148 : i32 to index
    %c0_64 = arith.constant 0 : index
    %154 = vector.load %arg18[%153, %c0_64] : memref<8x32xf32, #tpu.memory_space<vmem>>, vector<1x32xf32>
    %155 = vector.shape_cast %154 : vector<1x32xf32> to vector<1x32xf32>
    %156 = vector.broadcast %155 : vector<1x32xf32> to vector<16x32xf32>
    %157 = arith.mulf %156, %111 : vector<16x32xf32>
    %cst_65 = arith.constant dense<0.000000e+00> : vector<16xf32>
    %158 = vector.multi_reduction <add>, %157, %cst_65 [1] : vector<16x32xf32> to vector<16xf32>
    %159 = vector.shape_cast %158 : vector<16xf32> to vector<16x1xf32>
    %160 = arith.mulf %156, %116 : vector<16x32xf32>
    %cst_66 = arith.constant dense<0.000000e+00> : vector<16xf32>
    %161 = vector.multi_reduction <add>, %160, %cst_66 [1] : vector<16x32xf32> to vector<16xf32>
    %162 = vector.shape_cast %161 : vector<16xf32> to vector<16x1xf32>
    %163 = vector.broadcast %150 : vector<1x64xf32> to vector<16x64xf32>
    %164 = arith.mulf %163, %117 : vector<16x64xf32>
    %165 = math.exp %164 : vector<16x64xf32>
    %166 = arith.mulf %165, %143 : vector<16x64xf32>
    %167 = vector.broadcast %159 : vector<16x1xf32> to vector<16x64xf32>
    %168 = vector.broadcast %152 : vector<1x64xf32> to vector<16x64xf32>
    %169 = arith.mulf %167, %168 : vector<16x64xf32>
    %170 = arith.addf %166, %169 : vector<16x64xf32>
    %171 = vector.broadcast %162 : vector<16x1xf32> to vector<16x64xf32>
    %172 = arith.mulf %171, %170 : vector<16x64xf32>
    %cst_67 = arith.constant dense<0.000000e+00> : vector<64xf32>
    %173 = vector.multi_reduction <add>, %172, %cst_67 [0] : vector<16x64xf32> to vector<64xf32>
    %174 = vector.shape_cast %173 : vector<64xf32> to vector<1x64xf32>
    %c2_i32_68 = arith.constant 2 : i32
    %175 = arith.addi %120, %c2_i32_68 : i32
    %176 = arith.index_cast %175 : i32 to index
    %c0_69 = arith.constant 0 : index
    %177 = vector.load %arg16[%176, %c0_69] : memref<8x64xf32, #tpu.memory_space<vmem>>, vector<1x64xf32>
    %178 = arith.index_cast %175 : i32 to index
    %c0_70 = arith.constant 0 : index
    %179 = vector.load %arg17[%178, %c0_70] : memref<8x64xf32, #tpu.memory_space<vmem>>, vector<1x64xf32>
    %180 = arith.index_cast %175 : i32 to index
    %c0_71 = arith.constant 0 : index
    %181 = vector.load %arg18[%180, %c0_71] : memref<8x32xf32, #tpu.memory_space<vmem>>, vector<1x32xf32>
    %182 = vector.shape_cast %181 : vector<1x32xf32> to vector<1x32xf32>
    %183 = vector.broadcast %182 : vector<1x32xf32> to vector<16x32xf32>
    %184 = arith.mulf %183, %111 : vector<16x32xf32>
    %cst_72 = arith.constant dense<0.000000e+00> : vector<16xf32>
    %185 = vector.multi_reduction <add>, %184, %cst_72 [1] : vector<16x32xf32> to vector<16xf32>
    %186 = vector.shape_cast %185 : vector<16xf32> to vector<16x1xf32>
    %187 = arith.mulf %183, %116 : vector<16x32xf32>
    %cst_73 = arith.constant dense<0.000000e+00> : vector<16xf32>
    %188 = vector.multi_reduction <add>, %187, %cst_73 [1] : vector<16x32xf32> to vector<16xf32>
    %189 = vector.shape_cast %188 : vector<16xf32> to vector<16x1xf32>
    %190 = vector.broadcast %177 : vector<1x64xf32> to vector<16x64xf32>
    %191 = arith.mulf %190, %117 : vector<16x64xf32>
    %192 = math.exp %191 : vector<16x64xf32>
    %193 = arith.mulf %192, %170 : vector<16x64xf32>
    %194 = vector.broadcast %186 : vector<16x1xf32> to vector<16x64xf32>
    %195 = vector.broadcast %179 : vector<1x64xf32> to vector<16x64xf32>
    %196 = arith.mulf %194, %195 : vector<16x64xf32>
    %197 = arith.addf %193, %196 : vector<16x64xf32>
    %198 = vector.broadcast %189 : vector<16x1xf32> to vector<16x64xf32>
    %199 = arith.mulf %198, %197 : vector<16x64xf32>
    %cst_74 = arith.constant dense<0.000000e+00> : vector<64xf32>
    %200 = vector.multi_reduction <add>, %199, %cst_74 [0] : vector<16x64xf32> to vector<64xf32>
    %201 = vector.shape_cast %200 : vector<64xf32> to vector<1x64xf32>
    %c3_i32_75 = arith.constant 3 : i32
    %202 = arith.addi %120, %c3_i32_75 : i32
    %203 = arith.index_cast %202 : i32 to index
    %c0_76 = arith.constant 0 : index
    %204 = vector.load %arg16[%203, %c0_76] : memref<8x64xf32, #tpu.memory_space<vmem>>, vector<1x64xf32>
    %205 = arith.index_cast %202 : i32 to index
    %c0_77 = arith.constant 0 : index
    %206 = vector.load %arg17[%205, %c0_77] : memref<8x64xf32, #tpu.memory_space<vmem>>, vector<1x64xf32>
    %207 = arith.index_cast %202 : i32 to index
    %c0_78 = arith.constant 0 : index
    %208 = vector.load %arg18[%207, %c0_78] : memref<8x32xf32, #tpu.memory_space<vmem>>, vector<1x32xf32>
    %209 = vector.shape_cast %208 : vector<1x32xf32> to vector<1x32xf32>
    %210 = vector.broadcast %209 : vector<1x32xf32> to vector<16x32xf32>
    %211 = arith.mulf %210, %111 : vector<16x32xf32>
    %cst_79 = arith.constant dense<0.000000e+00> : vector<16xf32>
    %212 = vector.multi_reduction <add>, %211, %cst_79 [1] : vector<16x32xf32> to vector<16xf32>
    %213 = vector.shape_cast %212 : vector<16xf32> to vector<16x1xf32>
    %214 = arith.mulf %210, %116 : vector<16x32xf32>
    %cst_80 = arith.constant dense<0.000000e+00> : vector<16xf32>
    %215 = vector.multi_reduction <add>, %214, %cst_80 [1] : vector<16x32xf32> to vector<16xf32>
    %216 = vector.shape_cast %215 : vector<16xf32> to vector<16x1xf32>
    %217 = vector.broadcast %204 : vector<1x64xf32> to vector<16x64xf32>
    %218 = arith.mulf %217, %117 : vector<16x64xf32>
    %219 = math.exp %218 : vector<16x64xf32>
    %220 = arith.mulf %219, %197 : vector<16x64xf32>
    %221 = vector.broadcast %213 : vector<16x1xf32> to vector<16x64xf32>
    %222 = vector.broadcast %206 : vector<1x64xf32> to vector<16x64xf32>
    %223 = arith.mulf %221, %222 : vector<16x64xf32>
    %224 = arith.addf %220, %223 : vector<16x64xf32>
    %225 = vector.broadcast %216 : vector<16x1xf32> to vector<16x64xf32>
    %226 = arith.mulf %225, %224 : vector<16x64xf32>
    %cst_81 = arith.constant dense<0.000000e+00> : vector<64xf32>
    %227 = vector.multi_reduction <add>, %226, %cst_81 [0] : vector<16x64xf32> to vector<64xf32>
    %228 = vector.shape_cast %227 : vector<64xf32> to vector<1x64xf32>
    %c4_i32 = arith.constant 4 : i32
    %229 = arith.addi %120, %c4_i32 : i32
    %230 = arith.index_cast %229 : i32 to index
    %c0_82 = arith.constant 0 : index
    %231 = vector.load %arg16[%230, %c0_82] : memref<8x64xf32, #tpu.memory_space<vmem>>, vector<1x64xf32>
    %232 = arith.index_cast %229 : i32 to index
    %c0_83 = arith.constant 0 : index
    %233 = vector.load %arg17[%232, %c0_83] : memref<8x64xf32, #tpu.memory_space<vmem>>, vector<1x64xf32>
    %234 = arith.index_cast %229 : i32 to index
    %c0_84 = arith.constant 0 : index
    %235 = vector.load %arg18[%234, %c0_84] : memref<8x32xf32, #tpu.memory_space<vmem>>, vector<1x32xf32>
    %236 = vector.shape_cast %235 : vector<1x32xf32> to vector<1x32xf32>
    %237 = vector.broadcast %236 : vector<1x32xf32> to vector<16x32xf32>
    %238 = arith.mulf %237, %111 : vector<16x32xf32>
    %cst_85 = arith.constant dense<0.000000e+00> : vector<16xf32>
    %239 = vector.multi_reduction <add>, %238, %cst_85 [1] : vector<16x32xf32> to vector<16xf32>
    %240 = vector.shape_cast %239 : vector<16xf32> to vector<16x1xf32>
    %241 = arith.mulf %237, %116 : vector<16x32xf32>
    %cst_86 = arith.constant dense<0.000000e+00> : vector<16xf32>
    %242 = vector.multi_reduction <add>, %241, %cst_86 [1] : vector<16x32xf32> to vector<16xf32>
    %243 = vector.shape_cast %242 : vector<16xf32> to vector<16x1xf32>
    %244 = vector.broadcast %231 : vector<1x64xf32> to vector<16x64xf32>
    %245 = arith.mulf %244, %117 : vector<16x64xf32>
    %246 = math.exp %245 : vector<16x64xf32>
    %247 = arith.mulf %246, %224 : vector<16x64xf32>
    %248 = vector.broadcast %240 : vector<16x1xf32> to vector<16x64xf32>
    %249 = vector.broadcast %233 : vector<1x64xf32> to vector<16x64xf32>
    %250 = arith.mulf %248, %249 : vector<16x64xf32>
    %251 = arith.addf %247, %250 : vector<16x64xf32>
    %252 = vector.broadcast %243 : vector<16x1xf32> to vector<16x64xf32>
    %253 = arith.mulf %252, %251 : vector<16x64xf32>
    %cst_87 = arith.constant dense<0.000000e+00> : vector<64xf32>
    %254 = vector.multi_reduction <add>, %253, %cst_87 [0] : vector<16x64xf32> to vector<64xf32>
    %255 = vector.shape_cast %254 : vector<64xf32> to vector<1x64xf32>
    %c5_i32 = arith.constant 5 : i32
    %256 = arith.addi %120, %c5_i32 : i32
    %257 = arith.index_cast %256 : i32 to index
    %c0_88 = arith.constant 0 : index
    %258 = vector.load %arg16[%257, %c0_88] : memref<8x64xf32, #tpu.memory_space<vmem>>, vector<1x64xf32>
    %259 = arith.index_cast %256 : i32 to index
    %c0_89 = arith.constant 0 : index
    %260 = vector.load %arg17[%259, %c0_89] : memref<8x64xf32, #tpu.memory_space<vmem>>, vector<1x64xf32>
    %261 = arith.index_cast %256 : i32 to index
    %c0_90 = arith.constant 0 : index
    %262 = vector.load %arg18[%261, %c0_90] : memref<8x32xf32, #tpu.memory_space<vmem>>, vector<1x32xf32>
    %263 = vector.shape_cast %262 : vector<1x32xf32> to vector<1x32xf32>
    %264 = vector.broadcast %263 : vector<1x32xf32> to vector<16x32xf32>
    %265 = arith.mulf %264, %111 : vector<16x32xf32>
    %cst_91 = arith.constant dense<0.000000e+00> : vector<16xf32>
    %266 = vector.multi_reduction <add>, %265, %cst_91 [1] : vector<16x32xf32> to vector<16xf32>
    %267 = vector.shape_cast %266 : vector<16xf32> to vector<16x1xf32>
    %268 = arith.mulf %264, %116 : vector<16x32xf32>
    %cst_92 = arith.constant dense<0.000000e+00> : vector<16xf32>
    %269 = vector.multi_reduction <add>, %268, %cst_92 [1] : vector<16x32xf32> to vector<16xf32>
    %270 = vector.shape_cast %269 : vector<16xf32> to vector<16x1xf32>
    %271 = vector.broadcast %258 : vector<1x64xf32> to vector<16x64xf32>
    %272 = arith.mulf %271, %117 : vector<16x64xf32>
    %273 = math.exp %272 : vector<16x64xf32>
    %274 = arith.mulf %273, %251 : vector<16x64xf32>
    %275 = vector.broadcast %267 : vector<16x1xf32> to vector<16x64xf32>
    %276 = vector.broadcast %260 : vector<1x64xf32> to vector<16x64xf32>
    %277 = arith.mulf %275, %276 : vector<16x64xf32>
    %278 = arith.addf %274, %277 : vector<16x64xf32>
    %279 = vector.broadcast %270 : vector<16x1xf32> to vector<16x64xf32>
    %280 = arith.mulf %279, %278 : vector<16x64xf32>
    %cst_93 = arith.constant dense<0.000000e+00> : vector<64xf32>
    %281 = vector.multi_reduction <add>, %280, %cst_93 [0] : vector<16x64xf32> to vector<64xf32>
    %282 = vector.shape_cast %281 : vector<64xf32> to vector<1x64xf32>
    %c6_i32 = arith.constant 6 : i32
    %283 = arith.addi %120, %c6_i32 : i32
    %284 = arith.index_cast %283 : i32 to index
    %c0_94 = arith.constant 0 : index
    %285 = vector.load %arg16[%284, %c0_94] : memref<8x64xf32, #tpu.memory_space<vmem>>, vector<1x64xf32>
    %286 = arith.index_cast %283 : i32 to index
    %c0_95 = arith.constant 0 : index
    %287 = vector.load %arg17[%286, %c0_95] : memref<8x64xf32, #tpu.memory_space<vmem>>, vector<1x64xf32>
    %288 = arith.index_cast %283 : i32 to index
    %c0_96 = arith.constant 0 : index
    %289 = vector.load %arg18[%288, %c0_96] : memref<8x32xf32, #tpu.memory_space<vmem>>, vector<1x32xf32>
    %290 = vector.shape_cast %289 : vector<1x32xf32> to vector<1x32xf32>
    %291 = vector.broadcast %290 : vector<1x32xf32> to vector<16x32xf32>
    %292 = arith.mulf %291, %111 : vector<16x32xf32>
    %cst_97 = arith.constant dense<0.000000e+00> : vector<16xf32>
    %293 = vector.multi_reduction <add>, %292, %cst_97 [1] : vector<16x32xf32> to vector<16xf32>
    %294 = vector.shape_cast %293 : vector<16xf32> to vector<16x1xf32>
    %295 = arith.mulf %291, %116 : vector<16x32xf32>
    %cst_98 = arith.constant dense<0.000000e+00> : vector<16xf32>
    %296 = vector.multi_reduction <add>, %295, %cst_98 [1] : vector<16x32xf32> to vector<16xf32>
    %297 = vector.shape_cast %296 : vector<16xf32> to vector<16x1xf32>
    %298 = vector.broadcast %285 : vector<1x64xf32> to vector<16x64xf32>
    %299 = arith.mulf %298, %117 : vector<16x64xf32>
    %300 = math.exp %299 : vector<16x64xf32>
    %301 = arith.mulf %300, %278 : vector<16x64xf32>
    %302 = vector.broadcast %294 : vector<16x1xf32> to vector<16x64xf32>
    %303 = vector.broadcast %287 : vector<1x64xf32> to vector<16x64xf32>
    %304 = arith.mulf %302, %303 : vector<16x64xf32>
    %305 = arith.addf %301, %304 : vector<16x64xf32>
    %306 = vector.broadcast %297 : vector<16x1xf32> to vector<16x64xf32>
    %307 = arith.mulf %306, %305 : vector<16x64xf32>
    %cst_99 = arith.constant dense<0.000000e+00> : vector<64xf32>
    %308 = vector.multi_reduction <add>, %307, %cst_99 [0] : vector<16x64xf32> to vector<64xf32>
    %309 = vector.shape_cast %308 : vector<64xf32> to vector<1x64xf32>
    %c7_i32 = arith.constant 7 : i32
    %310 = arith.addi %120, %c7_i32 : i32
    %311 = arith.index_cast %310 : i32 to index
    %c0_100 = arith.constant 0 : index
    %312 = vector.load %arg16[%311, %c0_100] : memref<8x64xf32, #tpu.memory_space<vmem>>, vector<1x64xf32>
    %313 = arith.index_cast %310 : i32 to index
    %c0_101 = arith.constant 0 : index
    %314 = vector.load %arg17[%313, %c0_101] : memref<8x64xf32, #tpu.memory_space<vmem>>, vector<1x64xf32>
    %315 = arith.index_cast %310 : i32 to index
    %c0_102 = arith.constant 0 : index
    %316 = vector.load %arg18[%315, %c0_102] : memref<8x32xf32, #tpu.memory_space<vmem>>, vector<1x32xf32>
    %317 = vector.shape_cast %316 : vector<1x32xf32> to vector<1x32xf32>
    %318 = vector.broadcast %317 : vector<1x32xf32> to vector<16x32xf32>
    %319 = arith.mulf %318, %111 : vector<16x32xf32>
    %cst_103 = arith.constant dense<0.000000e+00> : vector<16xf32>
    %320 = vector.multi_reduction <add>, %319, %cst_103 [1] : vector<16x32xf32> to vector<16xf32>
    %321 = vector.shape_cast %320 : vector<16xf32> to vector<16x1xf32>
    %322 = arith.mulf %318, %116 : vector<16x32xf32>
    %cst_104 = arith.constant dense<0.000000e+00> : vector<16xf32>
    %323 = vector.multi_reduction <add>, %322, %cst_104 [1] : vector<16x32xf32> to vector<16xf32>
    %324 = vector.shape_cast %323 : vector<16xf32> to vector<16x1xf32>
    %325 = vector.broadcast %312 : vector<1x64xf32> to vector<16x64xf32>
    %326 = arith.mulf %325, %117 : vector<16x64xf32>
    %327 = math.exp %326 : vector<16x64xf32>
    %328 = arith.mulf %327, %305 : vector<16x64xf32>
    %329 = vector.broadcast %321 : vector<16x1xf32> to vector<16x64xf32>
    %330 = vector.broadcast %314 : vector<1x64xf32> to vector<16x64xf32>
    %331 = arith.mulf %329, %330 : vector<16x64xf32>
    %332 = arith.addf %328, %331 : vector<16x64xf32>
    %333 = vector.broadcast %324 : vector<16x1xf32> to vector<16x64xf32>
    %334 = arith.mulf %333, %332 : vector<16x64xf32>
    %cst_105 = arith.constant dense<0.000000e+00> : vector<64xf32>
    %335 = vector.multi_reduction <add>, %334, %cst_105 [0] : vector<16x64xf32> to vector<64xf32>
    %336 = vector.shape_cast %335 : vector<64xf32> to vector<1x64xf32>
    %337 = tpu.concatenate %147, %174, %201, %228, %255, %282, %309, %336 in 0 : vector<1x64xf32>, vector<1x64xf32>, vector<1x64xf32>, vector<1x64xf32>, vector<1x64xf32>, vector<1x64xf32>, vector<1x64xf32>, vector<1x64xf32> -> vector<8x64xf32>
    %338 = arith.index_cast %120 : i32 to index
    %c0_106 = arith.constant 0 : index
    %339 = vector.load %arg19[%338, %c0_106] : memref<8x64xf32, #tpu.memory_space<vmem>>, vector<8x64xf32>
    tpu.vector_store %arg19[%338, %c0_106], %337 {strides = array<i32>} : memref<8x64xf32, #tpu.memory_space<vmem>>, vector<8x64xf32>,
    %c1_i32_107 = arith.constant 1 : i32
    %c0_108 = arith.constant 0 : index
    %c0_109 = arith.constant 0 : index
    %340 = vector.load %arg14[%c0_108, %c0_109] : memref<16x64xf32, #tpu.memory_space<vmem>>, vector<16x64xf32>
    tpu.vector_store %arg14[%c0_108, %c0_109], %332 {strides = array<i32>} : memref<16x64xf32, #tpu.memory_space<vmem>>, vector<16x64xf32>,
    %c0_110 = arith.constant 0 : index
    %c0_111 = arith.constant 0 : index
    %341 = vector.load %arg19[%c0_110, %c0_111] : memref<8x64xf32, #tpu.memory_space<vmem>>, vector<8x64xf32>
    %c0_112 = arith.constant 0 : index
    %c0_113 = arith.constant 0 : index
    %342 = vector.load %arg10[%c0_112, %c0_113] : memref<1x64xf32, #tpu.memory_space<vmem>>, vector<1x64xf32>
    %343 = vector.broadcast %342 : vector<1x64xf32> to vector<8x64xf32>
    %344 = arith.mulf %343, %82 : vector<8x64xf32>
    %345 = arith.addf %341, %344 : vector<8x64xf32>
    %cst_114 = arith.constant 0.000000e+00 : f32
    %346 = vector.broadcast %cst_114 : f32 to vector<8x64xf32>
    %347 = arith.subf %346, %8 : vector<8x64xf32>
    %348 = math.exp %347 : vector<8x64xf32>
    %cst_115 = arith.constant 1.000000e+00 : f32
    %349 = vector.broadcast %cst_115 : f32 to vector<8x64xf32>
    %350 = arith.addf %349, %348 : vector<8x64xf32>
    %cst_116 = arith.constant 1.000000e+00 : f32
    %351 = vector.broadcast %cst_116 : f32 to vector<8x64xf32>
    %352 = arith.divf %351, %350 : vector<8x64xf32>
    %353 = arith.mulf %8, %352 : vector<8x64xf32>
    %354 = arith.mulf %345, %353 : vector<8x64xf32>
    %355 = arith.truncf %354 : vector<8x64xf32> to vector<8x64xbf16>
    %c0_117 = arith.constant 0 : index
    %c0_118 = arith.constant 0 : index
    %356 = vector.load %arg11[%c0_117, %c0_118] : memref<64x32xbf16, #tpu.memory_space<vmem>>, vector<64x32xbf16>
    %cst_119 = arith.constant dense<0.000000e+00> : vector<8x32xf32>
    %357 = tpu.matmul %355, %356, %cst_119 {dimension_numbers = #tpu.dot_dimension_numbers<[1], [0], [0], [1], [0, 0, 1, 1], [], []>} : vector<8x64xbf16>, vector<64x32xbf16>, vector<8x32xf32> -> vector<8x32xf32>
    %358 = arith.mulf %357, %357 : vector<8x32xf32>
    %cst_120 = arith.constant dense<0.000000e+00> : vector<8xf32>
    %359 = vector.multi_reduction <add>, %358, %cst_120 [1] : vector<8x32xf32> to vector<8xf32>
    %360 = vector.shape_cast %359 : vector<8xf32> to vector<8x1xf32>
    %cst_121 = arith.constant 3.200000e+01 : f32
    %361 = vector.broadcast %cst_121 : f32 to vector<8x1xf32>
    %362 = arith.divf %360, %361 : vector<8x1xf32>
    %cst_122 = arith.constant 9.99999974E-6 : f32
    %363 = vector.broadcast %cst_122 : f32 to vector<8x1xf32>
    %364 = arith.addf %362, %363 : vector<8x1xf32>
    %365 = math.rsqrt %364 : vector<8x1xf32>
    %366 = vector.broadcast %365 : vector<8x1xf32> to vector<8x32xf32>
    %367 = arith.mulf %357, %366 : vector<8x32xf32>
    %c0_123 = arith.constant 0 : index
    %c0_124 = arith.constant 0 : index
    %368 = vector.load %arg12[%c0_123, %c0_124] : memref<1x32xf32, #tpu.memory_space<vmem>>, vector<1x32xf32>
    %369 = vector.broadcast %368 : vector<1x32xf32> to vector<8x32xf32>
    %370 = arith.mulf %367, %369 : vector<8x32xf32>
    %371 = vector.shape_cast %370 : vector<8x32xf32> to vector<1x8x32xf32>
    %372 = arith.truncf %371 : vector<1x8x32xf32> to vector<1x8x32xbf16>
    %c0_125 = arith.constant 0 : index
    %c0_126 = arith.constant 0 : index
    %c0_127 = arith.constant 0 : index
    %373 = vector.load %arg13[%c0_125, %c0_126, %c0_127] : memref<1x8x32xbf16, #tpu.memory_space<vmem>>, vector<1x8x32xbf16>
    tpu.vector_store %arg13[%c0_125, %c0_126, %c0_127], %372 {strides = array<i32>} : memref<1x8x32xbf16, #tpu.memory_space<vmem>>, vector<1x8x32xbf16>,
    return
  }
  func.func @transform_0(%arg0: i32, %arg1: i32) -> (i32, i32, i32) {
    %c0_i32 = arith.constant 0 : i32
    %c0_i32_0 = arith.constant 0 : i32
    return %arg0, %arg1, %c0_i32 : i32, i32, i32
  }
  func.func @transform_1(%arg0: i32, %arg1: i32) -> (i32, i32) {
    %c0_i32 = arith.constant 0 : i32
    %c0_i32_0 = arith.constant 0 : i32
    %c0_i32_1 = arith.constant 0 : i32
    return %c0_i32, %c0_i32_0 : i32, i32
  }
  func.func @transform_2(%arg0: i32, %arg1: i32) -> (i32, i32) {
    %c0_i32 = arith.constant 0 : i32
    %c0_i32_0 = arith.constant 0 : i32
    %c0_i32_1 = arith.constant 0 : i32
    return %c0_i32, %c0_i32_0 : i32, i32
  }
  func.func @transform_3(%arg0: i32, %arg1: i32) -> (i32, i32) {
    %c0_i32 = arith.constant 0 : i32
    %c0_i32_0 = arith.constant 0 : i32
    %c0_i32_1 = arith.constant 0 : i32
    return %c0_i32, %c0_i32_0 : i32, i32
  }
  func.func @transform_4(%arg0: i32, %arg1: i32) -> (i32, i32) {
    %c0_i32 = arith.constant 0 : i32
    %c0_i32_0 = arith.constant 0 : i32
    %c0_i32_1 = arith.constant 0 : i32
    return %c0_i32, %c0_i32_0 : i32, i32
  }
  func.func @transform_5(%arg0: i32, %arg1: i32) -> (i32, i32) {
    %c0_i32 = arith.constant 0 : i32
    %c0_i32_0 = arith.constant 0 : i32
    %c0_i32_1 = arith.constant 0 : i32
    return %c0_i32, %c0_i32_0 : i32, i32
  }
  func.func @transform_6(%arg0: i32, %arg1: i32) -> (i32, i32) {
    %c0_i32 = arith.constant 0 : i32
    %c0_i32_0 = arith.constant 0 : i32
    %c0_i32_1 = arith.constant 0 : i32
    return %c0_i32, %c0_i32_0 : i32, i32
  }
  func.func @transform_7(%arg0: i32, %arg1: i32) -> (i32, i32) {
    %c0_i32 = arith.constant 0 : i32
    %c0_i32_0 = arith.constant 0 : i32
    %c0_i32_1 = arith.constant 0 : i32
    return %c0_i32, %c0_i32_0 : i32, i32
  }
  func.func @transform_8(%arg0: i32, %arg1: i32) -> (i32, i32) {
    %c0_i32 = arith.constant 0 : i32
    %c0_i32_0 = arith.constant 0 : i32
    %c0_i32_1 = arith.constant 0 : i32
    return %c0_i32, %c0_i32_0 : i32, i32
  }
  func.func @transform_9(%arg0: i32, %arg1: i32) -> (i32, i32) {
    %c0_i32 = arith.constant 0 : i32
    %c0_i32_0 = arith.constant 0 : i32
    %c0_i32_1 = arith.constant 0 : i32
    return %c0_i32, %c0_i32_0 : i32, i32
  }
  func.func @transform_10(%arg0: i32, %arg1: i32) -> (i32, i32) {
    %c0_i32 = arith.constant 0 : i32
    %c0_i32_0 = arith.constant 0 : i32
    %c0_i32_1 = arith.constant 0 : i32
    return %c0_i32, %c0_i32_0 : i32, i32
  }
  func.func @transform_11(%arg0: i32, %arg1: i32) -> (i32, i32, i32) {
    %c0_i32 = arith.constant 0 : i32
    %c0_i32_0 = arith.constant 0 : i32
    return %arg0, %arg1, %c0_i32 : i32, i32, i32
  }
}

module attributes {stable_mosaic.version = 11 : i64} {
  func.func @mamba_rmsnorm_kernel(%arg0: i32, %arg1: i32, %arg2: memref<1x8x32xbf16, #tpu.memory_space<vmem>>, %arg3: memref<32x128xbf16, #tpu.memory_space<vmem>>, %arg4: memref<4x64xf32, #tpu.memory_space<vmem>>, %arg5: memref<1x64xf32, #tpu.memory_space<vmem>>, %arg6: memref<64x384xbf16, #tpu.memory_space<vmem>>, %arg7: memref<128x64xbf16, #tpu.memory_space<vmem>>, %arg8: memref<1x64xf32, #tpu.memory_space<vmem>>, %arg9: memref<16x64xf32, #tpu.memory_space<vmem>>, %arg10: memref<1x64xf32, #tpu.memory_space<vmem>>, %arg11: memref<64x32xbf16, #tpu.memory_space<vmem>>, %arg12: memref<1x32xf32, #tpu.memory_space<vmem>>, %arg13: memref<1x8x32xbf16, #tpu.memory_space<vmem>>, %arg14: memref<16x64xf32, #tpu.memory_space<vmem>>, %arg15: memref<8x64xf32, #tpu.memory_space<vmem>>, %arg16: memref<8x64xf32, #tpu.memory_space<vmem>>, %arg17: memref<8x64xf32, #tpu.memory_space<vmem>>, %arg18: memref<8x32xf32, #tpu.memory_space<vmem>>, %arg19: memref<8x64xf32, #tpu.memory_space<vmem>>) attributes {dimension_semantics = [#tpu.dimension_semantics<parallel>, #tpu.dimension_semantics<arbitrary>], iteration_bounds = array<i64: 2, 2>, scalar_prefetch = 0 : i64, scratch_operands = 6 : i64, tpu.core_type = #tpu.core_type<tc>, window_params = [{transform_indices = @transform_0, window_bounds = array<i64: 1, 8, 32>}, {pipeline_mode = #tpu.pipeline_mode<synchronous>, transform_indices = @transform_1, window_bounds = array<i64: 32, 128>}, {pipeline_mode = #tpu.pipeline_mode<synchronous>, transform_indices = @transform_2, window_bounds = array<i64: 4, 64>}, {pipeline_mode = #tpu.pipeline_mode<synchronous>, transform_indices = @transform_3, window_bounds = array<i64: 1, 64>}, {pipeline_mode = #tpu.pipeline_mode<synchronous>, transform_indices = @transform_4, window_bounds = array<i64: 64, 384>}, {pipeline_mode = #tpu.pipeline_mode<synchronous>, transform_indices = @transform_5, window_bounds = array<i64: 128, 64>}, {pipeline_mode = #tpu.pipeline_mode<synchronous>, transform_indices = @transform_6, window_bounds = array<i64: 1, 64>}, {pipeline_mode = #tpu.pipeline_mode<synchronous>, transform_indices = @transform_7, window_bounds = array<i64: 16, 64>}, {pipeline_mode = #tpu.pipeline_mode<synchronous>, transform_indices = @transform_8, window_bounds = array<i64: 1, 64>}, {pipeline_mode = #tpu.pipeline_mode<synchronous>, transform_indices = @transform_9, window_bounds = array<i64: 64, 32>}, {pipeline_mode = #tpu.pipeline_mode<synchronous>, transform_indices = @transform_10, window_bounds = array<i64: 1, 32>}, {transform_indices = @transform_11, window_bounds = array<i64: 1, 8, 32>}]} {
    %c0 = arith.constant 0 : index
    %c0_0 = arith.constant 0 : index
    %c0_1 = arith.constant 0 : index
    %0 = vector.load %arg2[%c0, %c0_0, %c0_1] : memref<1x8x32xbf16, #tpu.memory_space<vmem>>, vector<1x8x32xbf16>
    %1 = vector.shape_cast %0 : vector<1x8x32xbf16> to vector<8x32xbf16>
    %c0_i32 = arith.constant 0 : i32
    %2 = arith.cmpi eq, %arg1, %c0_i32 : i32
    %3 = arith.extui %2 : i1 to i32
    %c0_i32_2 = arith.constant 0 : i32
    %4 = arith.cmpi ne, %3, %c0_i32_2 : i32
    scf.if %4 {
      %cst_128 = arith.constant 0.000000e+00 : f32
      %374 = vector.broadcast %cst_128 : f32 to vector<16x64xf32>
      %c0_129 = arith.constant 0 : index
      %c0_130 = arith.constant 0 : index
      %375 = vector.load %arg14[%c0_129, %c0_130] : memref<16x64xf32, #tpu.memory_space<vmem>>, vector<16x64xf32>
      tpu.vector_store %arg14[%c0_129, %c0_130], %374 {strides = array<i32>} : memref<16x64xf32, #tpu.memory_space<vmem>>, vector<16x64xf32>,
      %cst_131 = arith.constant 0.000000e+00 : f32
      %376 = vector.broadcast %cst_131 : f32 to vector<8x64xf32>
      %c0_132 = arith.constant 0 : index
      %c0_133 = arith.constant 0 : index
      %377 = vector.load %arg15[%c0_132, %c0_133] : memref<8x64xf32, #tpu.memory_space<vmem>>, vector<8x64xf32>
      tpu.vector_store %arg15[%c0_132, %c0_133], %376 {strides = array<i32>} : memref<8x64xf32, #tpu.memory_space<vmem>>, vector<8x64xf32>,
    } else {
    }
    %c0_3 = arith.constant 0 : index
    %c0_4 = arith.constant 0 : index
    %5 = vector.load %arg3[%c0_3, %c0_4] : memref<32x128xbf16, #tpu.memory_space<vmem>>, vector<32x128xbf16>
    %cst = arith.constant dense<0.000000e+00> : vector<8x128xf32>
    %6 = tpu.matmul %1, %5, %cst {dimension_numbers = #tpu.dot_dimension_numbers<[1], [0], [0], [1], [0, 0, 1, 1], [], []>} : vector<8x32xbf16>, vector<32x128xbf16>, vector<8x128xf32> -> vector<8x128xf32>
    %7 = vector.extract_strided_slice %6 {offsets = [0, 0], sizes = [8, 64], strides = [1, 1]} : vector<8x128xf32> to vector<8x64xf32>
    %8 = vector.extract_strided_slice %6 {offsets = [0, 64], sizes = [8, 64], strides = [1, 1]} : vector<8x128xf32> to vector<8x64xf32>
    %c0_5 = arith.constant 0 : index
    %c0_6 = arith.constant 0 : index
    %9 = vector.load %arg4[%c0_5, %c0_6] : memref<4x64xf32, #tpu.memory_space<vmem>>, vector<4x64xf32>
    %c0_7 = arith.constant 0 : index
    %c0_8 = arith.constant 0 : index
    %10 = vector.load %arg15[%c0_7, %c0_8] : memref<8x64xf32, #tpu.memory_space<vmem>>, vector<8x64xf32>
    %11 = tpu.iota {dimensions = array<i32: 0>} : vector<8x64xi32>
    %12 = tpu.iota {dimensions = array<i32: 0>} : vector<8x64xi32>
    %cst_9 = arith.constant 0.000000e+00 : f32
    %13 = vector.broadcast %cst_9 : f32 to vector<8x64xf32>
    %c0_10 = arith.constant 0 : index
    %c0_11 = arith.constant 0 : index
    %14 = vector.load %arg5[%c0_10, %c0_11] : memref<1x64xf32, #tpu.memory_space<vmem>>, vector<1x64xf32>
    %15 = vector.broadcast %14 : vector<1x64xf32> to vector<8x64xf32>
    %16 = arith.addf %13, %15 : vector<8x64xf32>
    %cst_12 = arith.constant 0.000000e+00 : f32
    %17 = vector.broadcast %cst_12 : f32 to vector<8x64xf32>
    %18 = vector.extract_strided_slice %9 {offsets = [0, 0], sizes = [1, 64], strides = [1, 1]} : vector<4x64xf32> to vector<1x64xf32>
    %c3_i32 = arith.constant 3 : i32
    %19 = tpu.dynamic_rotate %7 by %c3_i32 dim 0 : vector<8x64xf32>, i32 -> vector<8x64xf32>
    %c3_i32_13 = arith.constant 3 : i32
    %20 = vector.broadcast %c3_i32_13 : i32 to vector<8x64xi32>
    %21 = arith.cmpi slt, %11, %20 : vector<8x64xi32>
    %cst_14 = arith.constant 0.000000e+00 : f32
    %22 = vector.broadcast %cst_14 : f32 to vector<8x64xf32>
    %23 = arith.select %21, %22, %19 : vector<8x64xi1>, vector<8x64xf32>
    %24 = vector.broadcast %18 : vector<1x64xf32> to vector<8x64xf32>
    %25 = arith.mulf %23, %24 : vector<8x64xf32>
    %26 = arith.addf %16, %25 : vector<8x64xf32>
    %c3_i32_15 = arith.constant 3 : i32
    %27 = tpu.dynamic_rotate %10 by %c3_i32_15 dim 0 : vector<8x64xf32>, i32 -> vector<8x64xf32>
    %c3_i32_16 = arith.constant 3 : i32
    %28 = vector.broadcast %c3_i32_16 : i32 to vector<8x64xi32>
    %29 = arith.cmpi slt, %12, %28 : vector<8x64xi32>
    %cst_17 = arith.constant 0.000000e+00 : f32
    %30 = vector.broadcast %cst_17 : f32 to vector<8x64xf32>
    %31 = arith.select %29, %27, %30 : vector<8x64xi1>, vector<8x64xf32>
    %32 = vector.broadcast %18 : vector<1x64xf32> to vector<8x64xf32>
    %33 = arith.mulf %31, %32 : vector<8x64xf32>
    %34 = arith.addf %17, %33 : vector<8x64xf32>
    %35 = vector.extract_strided_slice %9 {offsets = [1, 0], sizes = [1, 64], strides = [1, 1]} : vector<4x64xf32> to vector<1x64xf32>
    %c2_i32 = arith.constant 2 : i32
    %36 = tpu.dynamic_rotate %7 by %c2_i32 dim 0 : vector<8x64xf32>, i32 -> vector<8x64xf32>
    %c2_i32_18 = arith.constant 2 : i32
    %37 = vector.broadcast %c2_i32_18 : i32 to vector<8x64xi32>
    %38 = arith.cmpi slt, %11, %37 : vector<8x64xi32>
    %cst_19 = arith.constant 0.000000e+00 : f32
    %39 = vector.broadcast %cst_19 : f32 to vector<8x64xf32>
    %40 = arith.select %38, %39, %36 : vector<8x64xi1>, vector<8x64xf32>
    %41 = vector.broadcast %35 : vector<1x64xf32> to vector<8x64xf32>
    %42 = arith.mulf %40, %41 : vector<8x64xf32>
    %43 = arith.addf %26, %42 : vector<8x64xf32>
    %c2_i32_20 = arith.constant 2 : i32
    %44 = tpu.dynamic_rotate %10 by %c2_i32_20 dim 0 : vector<8x64xf32>, i32 -> vector<8x64xf32>
    %c2_i32_21 = arith.constant 2 : i32
    %45 = vector.broadcast %c2_i32_21 : i32 to vector<8x64xi32>
    %46 = arith.cmpi slt, %12, %45 : vector<8x64xi32>
    %cst_22 = arith.constant 0.000000e+00 : f32
    %47 = vector.broadcast %cst_22 : f32 to vector<8x64xf32>
    %48 = arith.select %46, %44, %47 : vector<8x64xi1>, vector<8x64xf32>
    %49 = vector.broadcast %35 : vector<1x64xf32> to vector<8x64xf32>
    %50 = arith.mulf %48, %49 : vector<8x64xf32>
    %51 = arith.addf %34, %50 : vector<8x64xf32>
    %52 = vector.extract_strided_slice %9 {offsets = [2, 0], sizes = [1, 64], strides = [1, 1]} : vector<4x64xf32> to vector<1x64xf32>
    %c1_i32 = arith.constant 1 : i32
    %53 = tpu.dynamic_rotate %7 by %c1_i32 dim 0 : vector<8x64xf32>, i32 -> vector<8x64xf32>
    %c1_i32_23 = arith.constant 1 : i32
    %54 = vector.broadcast %c1_i32_23 : i32 to vector<8x64xi32>
    %55 = arith.cmpi slt, %11, %54 : vector<8x64xi32>
    %cst_24 = arith.constant 0.000000e+00 : f32
    %56 = vector.broadcast %cst_24 : f32 to vector<8x64xf32>
    %57 = arith.select %55, %56, %53 : vector<8x64xi1>, vector<8x64xf32>
    %58 = vector.broadcast %52 : vector<1x64xf32> to vector<8x64xf32>
    %59 = arith.mulf %57, %58 : vector<8x64xf32>
    %60 = arith.addf %43, %59 : vector<8x64xf32>
    %c1_i32_25 = arith.constant 1 : i32
    %61 = tpu.dynamic_rotate %10 by %c1_i32_25 dim 0 : vector<8x64xf32>, i32 -> vector<8x64xf32>
    %c1_i32_26 = arith.constant 1 : i32
    %62 = vector.broadcast %c1_i32_26 : i32 to vector<8x64xi32>
    %63 = arith.cmpi slt, %12, %62 : vector<8x64xi32>
    %cst_27 = arith.constant 0.000000e+00 : f32
    %64 = vector.broadcast %cst_27 : f32 to vector<8x64xf32>
    %65 = arith.select %63, %61, %64 : vector<8x64xi1>, vector<8x64xf32>
    %66 = vector.broadcast %52 : vector<1x64xf32> to vector<8x64xf32>
    %67 = arith.mulf %65, %66 : vector<8x64xf32>
    %68 = arith.addf %51, %67 : vector<8x64xf32>
    %69 = vector.extract_strided_slice %9 {offsets = [3, 0], sizes = [1, 64], strides = [1, 1]} : vector<4x64xf32> to vector<1x64xf32>
    %70 = vector.broadcast %69 : vector<1x64xf32> to vector<8x64xf32>
    %71 = arith.mulf %7, %70 : vector<8x64xf32>
    %72 = arith.addf %60, %71 : vector<8x64xf32>
    %73 = arith.addf %72, %68 : vector<8x64xf32>
    %c0_28 = arith.constant 0 : index
    %c0_29 = arith.constant 0 : index
    %74 = vector.load %arg15[%c0_28, %c0_29] : memref<8x64xf32, #tpu.memory_space<vmem>>, vector<8x64xf32>
    tpu.vector_store %arg15[%c0_28, %c0_29], %7 {strides = array<i32>} : memref<8x64xf32, #tpu.memory_space<vmem>>, vector<8x64xf32>,
    %cst_30 = arith.constant 0.000000e+00 : f32
    %75 = vector.broadcast %cst_30 : f32 to vector<8x64xf32>
    %76 = arith.subf %75, %73 : vector<8x64xf32>
    %77 = math.exp %76 : vector<8x64xf32>
    %cst_31 = arith.constant 1.000000e+00 : f32
    %78 = vector.broadcast %cst_31 : f32 to vector<8x64xf32>
    %79 = arith.addf %78, %77 : vector<8x64xf32>
    %cst_32 = arith.constant 1.000000e+00 : f32
    %80 = vector.broadcast %cst_32 : f32 to vector<8x64xf32>
    %81 = arith.divf %80, %79 : vector<8x64xf32>
    %82 = arith.mulf %73, %81 : vector<8x64xf32>
    %83 = arith.truncf %82 : vector<8x64xf32> to vector<8x64xbf16>
    %c0_33 = arith.constant 0 : index
    %c0_34 = arith.constant 0 : index
    %84 = vector.load %arg6[%c0_33, %c0_34] : memref<64x384xbf16, #tpu.memory_space<vmem>>, vector<64x384xbf16>
    %cst_35 = arith.constant dense<0.000000e+00> : vector<8x384xf32>
    %85 = tpu.matmul %83, %84, %cst_35 {dimension_numbers = #tpu.dot_dimension_numbers<[1], [0], [0], [1], [0, 0, 1, 1], [], []>} : vector<8x64xbf16>, vector<64x384xbf16>, vector<8x384xf32> -> vector<8x384xf32>
    %86 = vector.extract_strided_slice %85 {offsets = [0, 0], sizes = [8, 128], strides = [1, 1]} : vector<8x384xf32> to vector<8x128xf32>
    %87 = vector.extract_strided_slice %85 {offsets = [0, 128], sizes = [8, 16], strides = [1, 1]} : vector<8x384xf32> to vector<8x16xf32>
    %88 = vector.extract_strided_slice %85 {offsets = [0, 256], sizes = [8, 16], strides = [1, 1]} : vector<8x384xf32> to vector<8x16xf32>
    %89 = arith.truncf %86 : vector<8x128xf32> to vector<8x128xbf16>
    %c0_36 = arith.constant 0 : index
    %c0_37 = arith.constant 0 : index
    %90 = vector.load %arg7[%c0_36, %c0_37] : memref<128x64xbf16, #tpu.memory_space<vmem>>, vector<128x64xbf16>
    %cst_38 = arith.constant dense<0.000000e+00> : vector<8x64xf32>
    %91 = tpu.matmul %89, %90, %cst_38 {dimension_numbers = #tpu.dot_dimension_numbers<[1], [0], [0], [1], [0, 0, 1, 1], [], []>} : vector<8x128xbf16>, vector<128x64xbf16>, vector<8x64xf32> -> vector<8x64xf32>
    %c0_39 = arith.constant 0 : index
    %c0_40 = arith.constant 0 : index
    %92 = vector.load %arg8[%c0_39, %c0_40] : memref<1x64xf32, #tpu.memory_space<vmem>>, vector<1x64xf32>
    %93 = vector.broadcast %92 : vector<1x64xf32> to vector<8x64xf32>
    %94 = arith.addf %91, %93 : vector<8x64xf32>
    %cst_41 = arith.constant 2.000000e+01 : f32
    %95 = vector.broadcast %cst_41 : f32 to vector<8x64xf32>
    %96 = arith.cmpf ogt, %94, %95 : vector<8x64xf32>
    %cst_42 = arith.constant 2.000000e+01 : f32
    %97 = vector.broadcast %cst_42 : f32 to vector<8x64xf32>
    %98 = arith.minimumf %94, %97 : vector<8x64xf32>
    %99 = math.exp %98 : vector<8x64xf32>
    %100 = math.log1p %99 : vector<8x64xf32>
    %101 = arith.select %96, %94, %100 : vector<8x64xi1>, vector<8x64xf32>
    %102 = arith.mulf %101, %82 : vector<8x64xf32>
    %c0_43 = arith.constant 0 : index
    %c0_44 = arith.constant 0 : index
    %103 = vector.load %arg16[%c0_43, %c0_44] : memref<8x64xf32, #tpu.memory_space<vmem>>, vector<8x64xf32>
    tpu.vector_store %arg16[%c0_43, %c0_44], %101 {strides = array<i32>} : memref<8x64xf32, #tpu.memory_space<vmem>>, vector<8x64xf32>,
    %c0_45 = arith.constant 0 : index
    %c0_46 = arith.constant 0 : index
    %104 = vector.load %arg17[%c0_45, %c0_46] : memref<8x64xf32, #tpu.memory_space<vmem>>, vector<8x64xf32>
    tpu.vector_store %arg17[%c0_45, %c0_46], %102 {strides = array<i32>} : memref<8x64xf32, #tpu.memory_space<vmem>>, vector<8x64xf32>,
    %105 = tpu.concatenate %87, %88 in 1 : vector<8x16xf32>, vector<8x16xf32> -> vector<8x32xf32>
    %c0_47 = arith.constant 0 : index
    %c0_48 = arith.constant 0 : index
    %106 = vector.load %arg18[%c0_47, %c0_48] : memref<8x32xf32, #tpu.memory_space<vmem>>, vector<8x32xf32>
    tpu.vector_store %arg18[%c0_47, %c0_48], %105 {strides = array<i32>} : memref<8x32xf32, #tpu.memory_space<vmem>>, vector<8x32xf32>,
    %107 = tpu.iota {dimensions = array<i32: 0>} : vector<16x32xi32>
    %108 = tpu.iota {dimensions = array<i32: 1>} : vector<16x32xi32>
    %109 = arith.cmpi eq, %108, %107 : vector<16x32xi32>
    %110 = arith.extui %109 : vector<16x32xi1> to vector<16x32xi32>
    %111 = arith.sitofp %110 : vector<16x32xi32> to vector<16x32xf32>
    %c16_i32 = arith.constant 16 : i32
    %112 = vector.broadcast %c16_i32 : i32 to vector<16x32xi32>
    %113 = arith.addi %107, %112 : vector<16x32xi32>
    %114 = arith.cmpi eq, %108, %113 : vector<16x32xi32>
    %115 = arith.extui %114 : vector<16x32xi1> to vector<16x32xi32>
    %116 = arith.sitofp %115 : vector<16x32xi32> to vector<16x32xf32>
    %c0_49 = arith.constant 0 : index
    %c0_50 = arith.constant 0 : index
    %117 = vector.load %arg9[%c0_49, %c0_50] : memref<16x64xf32, #tpu.memory_space<vmem>>, vector<16x64xf32>
    %c0_51 = arith.constant 0 : index
    %c0_52 = arith.constant 0 : index
    %118 = vector.load %arg14[%c0_51, %c0_52] : memref<16x64xf32, #tpu.memory_space<vmem>>, vector<16x64xf32>
    %c0_i32_53 = arith.constant 0 : i32
    %c8_i32 = arith.constant 8 : i32
    %119 = arith.muli %c0_i32_53, %c8_i32 : i32
    %120 = tpu.assume_multiple %119, 8 : i32
    %c0_i32_54 = arith.constant 0 : i32
    %121 = arith.addi %120, %c0_i32_54 : i32
    %122 = arith.index_cast %121 : i32 to index
    %c0_55 = arith.constant 0 : index
    %123 = vector.load %arg16[%122, %c0_55] : memref<8x64xf32, #tpu.memory_space<vmem>>, vector<1x64xf32>
    %124 = arith.index_cast %121 : i32 to index
    %c0_56 = arith.constant 0 : index
    %125 = vector.load %arg17[%124, %c0_56] : memref<8x64xf32, #tpu.memory_space<vmem>>, vector<1x64xf32>
    %126 = arith.index_cast %121 : i32 to index
    %c0_57 = arith.constant 0 : index
    %127 = vector.load %arg18[%126, %c0_57] : memref<8x32xf32, #tpu.memory_space<vmem>>, vector<1x32xf32>
    %128 = vector.shape_cast %127 : vector<1x32xf32> to vector<1x32xf32>
    %129 = vector.broadcast %128 : vector<1x32xf32> to vector<16x32xf32>
    %130 = arith.mulf %129, %111 : vector<16x32xf32>
    %cst_58 = arith.constant dense<0.000000e+00> : vector<16xf32>
    %131 = vector.multi_reduction <add>, %130, %cst_58 [1] : vector<16x32xf32> to vector<16xf32>
    %132 = vector.shape_cast %131 : vector<16xf32> to vector<16x1xf32>
    %133 = arith.mulf %129, %116 : vector<16x32xf32>
    %cst_59 = arith.constant dense<0.000000e+00> : vector<16xf32>
    %134 = vector.multi_reduction <add>, %133, %cst_59 [1] : vector<16x32xf32> to vector<16xf32>
    %135 = vector.shape_cast %134 : vector<16xf32> to vector<16x1xf32>
    %136 = vector.broadcast %123 : vector<1x64xf32> to vector<16x64xf32>
    %137 = arith.mulf %136, %117 : vector<16x64xf32>
    %138 = math.exp %137 : vector<16x64xf32>
    %139 = arith.mulf %138, %118 : vector<16x64xf32>
    %140 = vector.broadcast %132 : vector<16x1xf32> to vector<16x64xf32>
    %141 = vector.broadcast %125 : vector<1x64xf32> to vector<16x64xf32>
    %142 = arith.mulf %140, %141 : vector<16x64xf32>
    %143 = arith.addf %139, %142 : vector<16x64xf32>
    %144 = vector.broadcast %135 : vector<16x1xf32> to vector<16x64xf32>
    %145 = arith.mulf %144, %143 : vector<16x64xf32>
    %cst_60 = arith.constant dense<0.000000e+00> : vector<64xf32>
    %146 = vector.multi_reduction <add>, %145, %cst_60 [0] : vector<16x64xf32> to vector<64xf32>
    %147 = vector.shape_cast %146 : vector<64xf32> to vector<1x64xf32>
    %c1_i32_61 = arith.constant 1 : i32
    %148 = arith.addi %120, %c1_i32_61 : i32
    %149 = arith.index_cast %148 : i32 to index
    %c0_62 = arith.constant 0 : index
    %150 = vector.load %arg16[%149, %c0_62] : memref<8x64xf32, #tpu.memory_space<vmem>>, vector<1x64xf32>
    %151 = arith.index_cast %148 : i32 to index
    %c0_63 = arith.constant 0 : index
    %152 = vector.load %arg17[%151, %c0_63] : memref<8x64xf32, #tpu.memory_space<vmem>>, vector<1x64xf32>
    %153 = arith.index_cast %148 : i32 to index
    %c0_64 = arith.constant 0 : index
    %154 = vector.load %arg18[%153, %c0_64] : memref<8x32xf32, #tpu.memory_space<vmem>>, vector<1x32xf32>
    %155 = vector.shape_cast %154 : vector<1x32xf32> to vector<1x32xf32>
    %156 = vector.broadcast %155 : vector<1x32xf32> to vector<16x32xf32>
    %157 = arith.mulf %156, %111 : vector<16x32xf32>
    %cst_65 = arith.constant dense<0.000000e+00> : vector<16xf32>
    %158 = vector.multi_reduction <add>, %157, %cst_65 [1] : vector<16x32xf32> to vector<16xf32>
    %159 = vector.shape_cast %158 : vector<16xf32> to vector<16x1xf32>
    %160 = arith.mulf %156, %116 : vector<16x32xf32>
    %cst_66 = arith.constant dense<0.000000e+00> : vector<16xf32>
    %161 = vector.multi_reduction <add>, %160, %cst_66 [1] : vector<16x32xf32> to vector<16xf32>
    %162 = vector.shape_cast %161 : vector<16xf32> to vector<16x1xf32>
    %163 = vector.broadcast %150 : vector<1x64xf32> to vector<16x64xf32>
    %164 = arith.mulf %163, %117 : vector<16x64xf32>
    %165 = math.exp %164 : vector<16x64xf32>
    %166 = arith.mulf %165, %143 : vector<16x64xf32>
    %167 = vector.broadcast %159 : vector<16x1xf32> to vector<16x64xf32>
    %168 = vector.broadcast %152 : vector<1x64xf32> to vector<16x64xf32>
    %169 = arith.mulf %167, %168 : vector<16x64xf32>
    %170 = arith.addf %166, %169 : vector<16x64xf32>
    %171 = vector.broadcast %162 : vector<16x1xf32> to vector<16x64xf32>
    %172 = arith.mulf %171, %170 : vector<16x64xf32>
    %cst_67 = arith.constant dense<0.000000e+00> : vector<64xf32>
    %173 = vector.multi_reduction <add>, %172, %cst_67 [0] : vector<16x64xf32> to vector<64xf32>
    %174 = vector.shape_cast %173 : vector<64xf32> to vector<1x64xf32>
    %c2_i32_68 = arith.constant 2 : i32
    %175 = arith.addi %120, %c2_i32_68 : i32
    %176 = arith.index_cast %175 : i32 to index
    %c0_69 = arith.constant 0 : index
    %177 = vector.load %arg16[%176, %c0_69] : memref<8x64xf32, #tpu.memory_space<vmem>>, vector<1x64xf32>
    %178 = arith.index_cast %175 : i32 to index
    %c0_70 = arith.constant 0 : index
    %179 = vector.load %arg17[%178, %c0_70] : memref<8x64xf32, #tpu.memory_space<vmem>>, vector<1x64xf32>
    %180 = arith.index_cast %175 : i32 to index
    %c0_71 = arith.constant 0 : index
    %181 = vector.load %arg18[%180, %c0_71] : memref<8x32xf32, #tpu.memory_space<vmem>>, vector<1x32xf32>
    %182 = vector.shape_cast %181 : vector<1x32xf32> to vector<1x32xf32>
    %183 = vector.broadcast %182 : vector<1x32xf32> to vector<16x32xf32>
    %184 = arith.mulf %183, %111 : vector<16x32xf32>
    %cst_72 = arith.constant dense<0.000000e+00> : vector<16xf32>
    %185 = vector.multi_reduction <add>, %184, %cst_72 [1] : vector<16x32xf32> to vector<16xf32>
    %186 = vector.shape_cast %185 : vector<16xf32> to vector<16x1xf32>
    %187 = arith.mulf %183, %116 : vector<16x32xf32>
    %cst_73 = arith.constant dense<0.000000e+00> : vector<16xf32>
    %188 = vector.multi_reduction <add>, %187, %cst_73 [1] : vector<16x32xf32> to vector<16xf32>
    %189 = vector.shape_cast %188 : vector<16xf32> to vector<16x1xf32>
    %190 = vector.broadcast %177 : vector<1x64xf32> to vector<16x64xf32>
    %191 = arith.mulf %190, %117 : vector<16x64xf32>
    %192 = math.exp %191 : vector<16x64xf32>
    %193 = arith.mulf %192, %170 : vector<16x64xf32>
    %194 = vector.broadcast %186 : vector<16x1xf32> to vector<16x64xf32>
    %195 = vector.broadcast %179 : vector<1x64xf32> to vector<16x64xf32>
    %196 = arith.mulf %194, %195 : vector<16x64xf32>
    %197 = arith.addf %193, %196 : vector<16x64xf32>
    %198 = vector.broadcast %189 : vector<16x1xf32> to vector<16x64xf32>
    %199 = arith.mulf %198, %197 : vector<16x64xf32>
    %cst_74 = arith.constant dense<0.000000e+00> : vector<64xf32>
    %200 = vector.multi_reduction <add>, %199, %cst_74 [0] : vector<16x64xf32> to vector<64xf32>
    %201 = vector.shape_cast %200 : vector<64xf32> to vector<1x64xf32>
    %c3_i32_75 = arith.constant 3 : i32
    %202 = arith.addi %120, %c3_i32_75 : i32
    %203 = arith.index_cast %202 : i32 to index
    %c0_76 = arith.constant 0 : index
    %204 = vector.load %arg16[%203, %c0_76] : memref<8x64xf32, #tpu.memory_space<vmem>>, vector<1x64xf32>
    %205 = arith.index_cast %202 : i32 to index
    %c0_77 = arith.constant 0 : index
    %206 = vector.load %arg17[%205, %c0_77] : memref<8x64xf32, #tpu.memory_space<vmem>>, vector<1x64xf32>
    %207 = arith.index_cast %202 : i32 to index
    %c0_78 = arith.constant 0 : index
    %208 = vector.load %arg18[%207, %c0_78] : memref<8x32xf32, #tpu.memory_space<vmem>>, vector<1x32xf32>
    %209 = vector.shape_cast %208 : vector<1x32xf32> to vector<1x32xf32>
    %210 = vector.broadcast %209 : vector<1x32xf32> to vector<16x32xf32>
    %211 = arith.mulf %210, %111 : vector<16x32xf32>
    %cst_79 = arith.constant dense<0.000000e+00> : vector<16xf32>
    %212 = vector.multi_reduction <add>, %211, %cst_79 [1] : vector<16x32xf32> to vector<16xf32>
    %213 = vector.shape_cast %212 : vector<16xf32> to vector<16x1xf32>
    %214 = arith.mulf %210, %116 : vector<16x32xf32>
    %cst_80 = arith.constant dense<0.000000e+00> : vector<16xf32>
    %215 = vector.multi_reduction <add>, %214, %cst_80 [1] : vector<16x32xf32> to vector<16xf32>
    %216 = vector.shape_cast %215 : vector<16xf32> to vector<16x1xf32>
    %217 = vector.broadcast %204 : vector<1x64xf32> to vector<16x64xf32>
    %218 = arith.mulf %217, %117 : vector<16x64xf32>
    %219 = math.exp %218 : vector<16x64xf32>
    %220 = arith.mulf %219, %197 : vector<16x64xf32>
    %221 = vector.broadcast %213 : vector<16x1xf32> to vector<16x64xf32>
    %222 = vector.broadcast %206 : vector<1x64xf32> to vector<16x64xf32>
    %223 = arith.mulf %221, %222 : vector<16x64xf32>
    %224 = arith.addf %220, %223 : vector<16x64xf32>
    %225 = vector.broadcast %216 : vector<16x1xf32> to vector<16x64xf32>
    %226 = arith.mulf %225, %224 : vector<16x64xf32>
    %cst_81 = arith.constant dense<0.000000e+00> : vector<64xf32>
    %227 = vector.multi_reduction <add>, %226, %cst_81 [0] : vector<16x64xf32> to vector<64xf32>
    %228 = vector.shape_cast %227 : vector<64xf32> to vector<1x64xf32>
    %c4_i32 = arith.constant 4 : i32
    %229 = arith.addi %120, %c4_i32 : i32
    %230 = arith.index_cast %229 : i32 to index
    %c0_82 = arith.constant 0 : index
    %231 = vector.load %arg16[%230, %c0_82] : memref<8x64xf32, #tpu.memory_space<vmem>>, vector<1x64xf32>
    %232 = arith.index_cast %229 : i32 to index
    %c0_83 = arith.constant 0 : index
    %233 = vector.load %arg17[%232, %c0_83] : memref<8x64xf32, #tpu.memory_space<vmem>>, vector<1x64xf32>
    %234 = arith.index_cast %229 : i32 to index
    %c0_84 = arith.constant 0 : index
    %235 = vector.load %arg18[%234, %c0_84] : memref<8x32xf32, #tpu.memory_space<vmem>>, vector<1x32xf32>
    %236 = vector.shape_cast %235 : vector<1x32xf32> to vector<1x32xf32>
    %237 = vector.broadcast %236 : vector<1x32xf32> to vector<16x32xf32>
    %238 = arith.mulf %237, %111 : vector<16x32xf32>
    %cst_85 = arith.constant dense<0.000000e+00> : vector<16xf32>
    %239 = vector.multi_reduction <add>, %238, %cst_85 [1] : vector<16x32xf32> to vector<16xf32>
    %240 = vector.shape_cast %239 : vector<16xf32> to vector<16x1xf32>
    %241 = arith.mulf %237, %116 : vector<16x32xf32>
    %cst_86 = arith.constant dense<0.000000e+00> : vector<16xf32>
    %242 = vector.multi_reduction <add>, %241, %cst_86 [1] : vector<16x32xf32> to vector<16xf32>
    %243 = vector.shape_cast %242 : vector<16xf32> to vector<16x1xf32>
    %244 = vector.broadcast %231 : vector<1x64xf32> to vector<16x64xf32>
    %245 = arith.mulf %244, %117 : vector<16x64xf32>
    %246 = math.exp %245 : vector<16x64xf32>
    %247 = arith.mulf %246, %224 : vector<16x64xf32>
    %248 = vector.broadcast %240 : vector<16x1xf32> to vector<16x64xf32>
    %249 = vector.broadcast %233 : vector<1x64xf32> to vector<16x64xf32>
    %250 = arith.mulf %248, %249 : vector<16x64xf32>
    %251 = arith.addf %247, %250 : vector<16x64xf32>
    %252 = vector.broadcast %243 : vector<16x1xf32> to vector<16x64xf32>
    %253 = arith.mulf %252, %251 : vector<16x64xf32>
    %cst_87 = arith.constant dense<0.000000e+00> : vector<64xf32>
    %254 = vector.multi_reduction <add>, %253, %cst_87 [0] : vector<16x64xf32> to vector<64xf32>
    %255 = vector.shape_cast %254 : vector<64xf32> to vector<1x64xf32>
    %c5_i32 = arith.constant 5 : i32
    %256 = arith.addi %120, %c5_i32 : i32
    %257 = arith.index_cast %256 : i32 to index
    %c0_88 = arith.constant 0 : index
    %258 = vector.load %arg16[%257, %c0_88] : memref<8x64xf32, #tpu.memory_space<vmem>>, vector<1x64xf32>
    %259 = arith.index_cast %256 : i32 to index
    %c0_89 = arith.constant 0 : index
    %260 = vector.load %arg17[%259, %c0_89] : memref<8x64xf32, #tpu.memory_space<vmem>>, vector<1x64xf32>
    %261 = arith.index_cast %256 : i32 to index
    %c0_90 = arith.constant 0 : index
    %262 = vector.load %arg18[%261, %c0_90] : memref<8x32xf32, #tpu.memory_space<vmem>>, vector<1x32xf32>
    %263 = vector.shape_cast %262 : vector<1x32xf32> to vector<1x32xf32>
    %264 = vector.broadcast %263 : vector<1x32xf32> to vector<16x32xf32>
    %265 = arith.mulf %264, %111 : vector<16x32xf32>
    %cst_91 = arith.constant dense<0.000000e+00> : vector<16xf32>
    %266 = vector.multi_reduction <add>, %265, %cst_91 [1] : vector<16x32xf32> to vector<16xf32>
    %267 = vector.shape_cast %266 : vector<16xf32> to vector<16x1xf32>
    %268 = arith.mulf %264, %116 : vector<16x32xf32>
    %cst_92 = arith.constant dense<0.000000e+00> : vector<16xf32>
    %269 = vector.multi_reduction <add>, %268, %cst_92 [1] : vector<16x32xf32> to vector<16xf32>
    %270 = vector.shape_cast %269 : vector<16xf32> to vector<16x1xf32>
    %271 = vector.broadcast %258 : vector<1x64xf32> to vector<16x64xf32>
    %272 = arith.mulf %271, %117 : vector<16x64xf32>
    %273 = math.exp %272 : vector<16x64xf32>
    %274 = arith.mulf %273, %251 : vector<16x64xf32>
    %275 = vector.broadcast %267 : vector<16x1xf32> to vector<16x64xf32>
    %276 = vector.broadcast %260 : vector<1x64xf32> to vector<16x64xf32>
    %277 = arith.mulf %275, %276 : vector<16x64xf32>
    %278 = arith.addf %274, %277 : vector<16x64xf32>
    %279 = vector.broadcast %270 : vector<16x1xf32> to vector<16x64xf32>
    %280 = arith.mulf %279, %278 : vector<16x64xf32>
    %cst_93 = arith.constant dense<0.000000e+00> : vector<64xf32>
    %281 = vector.multi_reduction <add>, %280, %cst_93 [0] : vector<16x64xf32> to vector<64xf32>
    %282 = vector.shape_cast %281 : vector<64xf32> to vector<1x64xf32>
    %c6_i32 = arith.constant 6 : i32
    %283 = arith.addi %120, %c6_i32 : i32
    %284 = arith.index_cast %283 : i32 to index
    %c0_94 = arith.constant 0 : index
    %285 = vector.load %arg16[%284, %c0_94] : memref<8x64xf32, #tpu.memory_space<vmem>>, vector<1x64xf32>
    %286 = arith.index_cast %283 : i32 to index
    %c0_95 = arith.constant 0 : index
    %287 = vector.load %arg17[%286, %c0_95] : memref<8x64xf32, #tpu.memory_space<vmem>>, vector<1x64xf32>
    %288 = arith.index_cast %283 : i32 to index
    %c0_96 = arith.constant 0 : index
    %289 = vector.load %arg18[%288, %c0_96] : memref<8x32xf32, #tpu.memory_space<vmem>>, vector<1x32xf32>
    %290 = vector.shape_cast %289 : vector<1x32xf32> to vector<1x32xf32>
    %291 = vector.broadcast %290 : vector<1x32xf32> to vector<16x32xf32>
    %292 = arith.mulf %291, %111 : vector<16x32xf32>
    %cst_97 = arith.constant dense<0.000000e+00> : vector<16xf32>
    %293 = vector.multi_reduction <add>, %292, %cst_97 [1] : vector<16x32xf32> to vector<16xf32>
    %294 = vector.shape_cast %293 : vector<16xf32> to vector<16x1xf32>
    %295 = arith.mulf %291, %116 : vector<16x32xf32>
    %cst_98 = arith.constant dense<0.000000e+00> : vector<16xf32>
    %296 = vector.multi_reduction <add>, %295, %cst_98 [1] : vector<16x32xf32> to vector<16xf32>
    %297 = vector.shape_cast %296 : vector<16xf32> to vector<16x1xf32>
    %298 = vector.broadcast %285 : vector<1x64xf32> to vector<16x64xf32>
    %299 = arith.mulf %298, %117 : vector<16x64xf32>
    %300 = math.exp %299 : vector<16x64xf32>
    %301 = arith.mulf %300, %278 : vector<16x64xf32>
    %302 = vector.broadcast %294 : vector<16x1xf32> to vector<16x64xf32>
    %303 = vector.broadcast %287 : vector<1x64xf32> to vector<16x64xf32>
    %304 = arith.mulf %302, %303 : vector<16x64xf32>
    %305 = arith.addf %301, %304 : vector<16x64xf32>
    %306 = vector.broadcast %297 : vector<16x1xf32> to vector<16x64xf32>
    %307 = arith.mulf %306, %305 : vector<16x64xf32>
    %cst_99 = arith.constant dense<0.000000e+00> : vector<64xf32>
    %308 = vector.multi_reduction <add>, %307, %cst_99 [0] : vector<16x64xf32> to vector<64xf32>
    %309 = vector.shape_cast %308 : vector<64xf32> to vector<1x64xf32>
    %c7_i32 = arith.constant 7 : i32
    %310 = arith.addi %120, %c7_i32 : i32
    %311 = arith.index_cast %310 : i32 to index
    %c0_100 = arith.constant 0 : index
    %312 = vector.load %arg16[%311, %c0_100] : memref<8x64xf32, #tpu.memory_space<vmem>>, vector<1x64xf32>
    %313 = arith.index_cast %310 : i32 to index
    %c0_101 = arith.constant 0 : index
    %314 = vector.load %arg17[%313, %c0_101] : memref<8x64xf32, #tpu.memory_space<vmem>>, vector<1x64xf32>
    %315 = arith.index_cast %310 : i32 to index
    %c0_102 = arith.constant 0 : index
    %316 = vector.load %arg18[%315, %c0_102] : memref<8x32xf32, #tpu.memory_space<vmem>>, vector<1x32xf32>
    %317 = vector.shape_cast %316 : vector<1x32xf32> to vector<1x32xf32>
    %318 = vector.broadcast %317 : vector<1x32xf32> to vector<16x32xf32>
    %319 = arith.mulf %318, %111 : vector<16x32xf32>
    %cst_103 = arith.constant dense<0.000000e+00> : vector<16xf32>
    %320 = vector.multi_reduction <add>, %319, %cst_103 [1] : vector<16x32xf32> to vector<16xf32>
    %321 = vector.shape_cast %320 : vector<16xf32> to vector<16x1xf32>
    %322 = arith.mulf %318, %116 : vector<16x32xf32>
    %cst_104 = arith.constant dense<0.000000e+00> : vector<16xf32>
    %323 = vector.multi_reduction <add>, %322, %cst_104 [1] : vector<16x32xf32> to vector<16xf32>
    %324 = vector.shape_cast %323 : vector<16xf32> to vector<16x1xf32>
    %325 = vector.broadcast %312 : vector<1x64xf32> to vector<16x64xf32>
    %326 = arith.mulf %325, %117 : vector<16x64xf32>
    %327 = math.exp %326 : vector<16x64xf32>
    %328 = arith.mulf %327, %305 : vector<16x64xf32>
    %329 = vector.broadcast %321 : vector<16x1xf32> to vector<16x64xf32>
    %330 = vector.broadcast %314 : vector<1x64xf32> to vector<16x64xf32>
    %331 = arith.mulf %329, %330 : vector<16x64xf32>
    %332 = arith.addf %328, %331 : vector<16x64xf32>
    %333 = vector.broadcast %324 : vector<16x1xf32> to vector<16x64xf32>
    %334 = arith.mulf %333, %332 : vector<16x64xf32>
    %cst_105 = arith.constant dense<0.000000e+00> : vector<64xf32>
    %335 = vector.multi_reduction <add>, %334, %cst_105 [0] : vector<16x64xf32> to vector<64xf32>
    %336 = vector.shape_cast %335 : vector<64xf32> to vector<1x64xf32>
    %337 = tpu.concatenate %147, %174, %201, %228, %255, %282, %309, %336 in 0 : vector<1x64xf32>, vector<1x64xf32>, vector<1x64xf32>, vector<1x64xf32>, vector<1x64xf32>, vector<1x64xf32>, vector<1x64xf32>, vector<1x64xf32> -> vector<8x64xf32>
    %338 = arith.index_cast %120 : i32 to index
    %c0_106 = arith.constant 0 : index
    %339 = vector.load %arg19[%338, %c0_106] : memref<8x64xf32, #tpu.memory_space<vmem>>, vector<8x64xf32>
    tpu.vector_store %arg19[%338, %c0_106], %337 {strides = array<i32>} : memref<8x64xf32, #tpu.memory_space<vmem>>, vector<8x64xf32>,
    %c1_i32_107 = arith.constant 1 : i32
    %c0_108 = arith.constant 0 : index
    %c0_109 = arith.constant 0 : index
    %340 = vector.load %arg14[%c0_108, %c0_109] : memref<16x64xf32, #tpu.memory_space<vmem>>, vector<16x64xf32>
    tpu.vector_store %arg14[%c0_108, %c0_109], %332 {strides = array<i32>} : memref<16x64xf32, #tpu.memory_space<vmem>>, vector<16x64xf32>,
    %c0_110 = arith.constant 0 : index
    %c0_111 = arith.constant 0 : index
    %341 = vector.load %arg19[%c0_110, %c0_111] : memref<8x64xf32, #tpu.memory_space<vmem>>, vector<8x64xf32>
    %c0_112 = arith.constant 0 : index
    %c0_113 = arith.constant 0 : index
    %342 = vector.load %arg10[%c0_112, %c0_113] : memref<1x64xf32, #tpu.memory_space<vmem>>, vector<1x64xf32>
    %343 = vector.broadcast %342 : vector<1x64xf32> to vector<8x64xf32>
    %344 = arith.mulf %343, %82 : vector<8x64xf32>
    %345 = arith.addf %341, %344 : vector<8x64xf32>
    %cst_114 = arith.constant 0.000000e+00 : f32
    %346 = vector.broadcast %cst_114 : f32 to vector<8x64xf32>
    %347 = arith.subf %346, %8 : vector<8x64xf32>
    %348 = math.exp %347 : vector<8x64xf32>
    %cst_115 = arith.constant 1.000000e+00 : f32
    %349 = vector.broadcast %cst_115 : f32 to vector<8x64xf32>
    %350 = arith.addf %349, %348 : vector<8x64xf32>
    %cst_116 = arith.constant 1.000000e+00 : f32
    %351 = vector.broadcast %cst_116 : f32 to vector<8x64xf32>
    %352 = arith.divf %351, %350 : vector<8x64xf32>
    %353 = arith.mulf %8, %352 : vector<8x64xf32>
    %354 = arith.mulf %345, %353 : vector<8x64xf32>
    %355 = arith.truncf %354 : vector<8x64xf32> to vector<8x64xbf16>
    %c0_117 = arith.constant 0 : index
    %c0_118 = arith.constant 0 : index
    %356 = vector.load %arg11[%c0_117, %c0_118] : memref<64x32xbf16, #tpu.memory_space<vmem>>, vector<64x32xbf16>
    %cst_119 = arith.constant dense<0.000000e+00> : vector<8x32xf32>
    %357 = tpu.matmul %355, %356, %cst_119 {dimension_numbers = #tpu.dot_dimension_numbers<[1], [0], [0], [1], [0, 0, 1, 1], [], []>} : vector<8x64xbf16>, vector<64x32xbf16>, vector<8x32xf32> -> vector<8x32xf32>
    %358 = arith.mulf %357, %357 : vector<8x32xf32>
    %cst_120 = arith.constant dense<0.000000e+00> : vector<8xf32>
    %359 = vector.multi_reduction <add>, %358, %cst_120 [1] : vector<8x32xf32> to vector<8xf32>
    %360 = vector.shape_cast %359 : vector<8xf32> to vector<8x1xf32>
    %cst_121 = arith.constant 3.200000e+01 : f32
    %361 = vector.broadcast %cst_121 : f32 to vector<8x1xf32>
    %362 = arith.divf %360, %361 : vector<8x1xf32>
    %cst_122 = arith.constant 9.99999974E-6 : f32
    %363 = vector.broadcast %cst_122 : f32 to vector<8x1xf32>
    %364 = arith.addf %362, %363 : vector<8x1xf32>
    %365 = math.rsqrt %364 : vector<8x1xf32>
    %366 = vector.broadcast %365 : vector<8x1xf32> to vector<8x32xf32>
    %367 = arith.mulf %357, %366 : vector<8x32xf32>
    %c0_123 = arith.constant 0 : index
    %c0_124 = arith.constant 0 : index
    %368 = vector.load %arg12[%c0_123, %c0_124] : memref<1x32xf32, #tpu.memory_space<vmem>>, vector<1x32xf32>
    %369 = vector.broadcast %368 : vector<1x32xf32> to vector<8x32xf32>
    %370 = arith.mulf %367, %369 : vector<8x32xf32>
    %371 = vector.shape_cast %370 : vector<8x32xf32> to vector<1x8x32xf32>
    %372 = arith.truncf %371 : vector<1x8x32xf32> to vector<1x8x32xbf16>
    %c0_125 = arith.constant 0 : index
    %c0_126 = arith.constant 0 : index
    %c0_127 = arith.constant 0 : index
    %373 = vector.load %arg13[%c0_125, %c0_126, %c0_127] : memref<1x8x32xbf16, #tpu.memory_space<vmem>>, vector<1x8x32xbf16>
    tpu.vector_store %arg13[%c0_125, %c0_126, %c0_127], %372 {strides = array<i32>} : memref<1x8x32xbf16, #tpu.memory_space<vmem>>, vector<1x8x32xbf16>,
    return
  }
  func.func @transform_0(%arg0: i32, %arg1: i32) -> (i32, i32, i32) {
    %c0_i32 = arith.constant 0 : i32
    %c0_i32_0 = arith.constant 0 : i32
    return %arg0, %arg1, %c0_i32 : i32, i32, i32
  }
  func.func @transform_1(%arg0: i32, %arg1: i32) -> (i32, i32) {
    %c0_i32 = arith.constant 0 : i32
    %c0_i32_0 = arith.constant 0 : i32
    %c0_i32_1 = arith.constant 0 : i32
    return %c0_i32, %c0_i32_0 : i32, i32
  }
  func.func @transform_2(%arg0: i32, %arg1: i32) -> (i32, i32) {
    %c0_i32 = arith.constant 0 : i32
    %c0_i32_0 = arith.constant 0 : i32
    %c0_i32_1 = arith.constant 0 : i32
    return %c0_i32, %c0_i32_0 : i32, i32
  }
  func.func @transform_3(%arg0: i32, %arg1: i32) -> (i32, i32) {
    %c0_i32 = arith.constant 0 : i32
    %c0_i32_0 = arith.constant 0 : i32
    %c0_i32_1 = arith.constant 0 : i32
    return %c0_i32, %c0_i32_0 : i32, i32
  }
  func.func @transform_4(%arg0: i32, %arg1: i32) -> (i32, i32) {
    %c0_i32 = arith.constant 0 : i32
    %c0_i32_0 = arith.constant 0 : i32
    %c0_i32_1 = arith.constant 0 : i32
    return %c0_i32, %c0_i32_0 : i32, i32
  }
  func.func @transform_5(%arg0: i32, %arg1: i32) -> (i32, i32) {
    %c0_i32 = arith.constant 0 : i32
    %c0_i32_0 = arith.constant 0 : i32
    %c0_i32_1 = arith.constant 0 : i32
    return %c0_i32, %c0_i32_0 : i32, i32
  }
  func.func @transform_6(%arg0: i32, %arg1: i32) -> (i32, i32) {
    %c0_i32 = arith.constant 0 : i32
    %c0_i32_0 = arith.constant 0 : i32
    %c0_i32_1 = arith.constant 0 : i32
    return %c0_i32, %c0_i32_0 : i32, i32
  }
  func.func @transform_7(%arg0: i32, %arg1: i32) -> (i32, i32) {
    %c0_i32 = arith.constant 0 : i32
    %c0_i32_0 = arith.constant 0 : i32
    %c0_i32_1 = arith.constant 0 : i32
    return %c0_i32, %c0_i32_0 : i32, i32
  }
  func.func @transform_8(%arg0: i32, %arg1: i32) -> (i32, i32) {
    %c0_i32 = arith.constant 0 : i32
    %c0_i32_0 = arith.constant 0 : i32
    %c0_i32_1 = arith.constant 0 : i32
    return %c0_i32, %c0_i32_0 : i32, i32
  }
  func.func @transform_9(%arg0: i32, %arg1: i32) -> (i32, i32) {
    %c0_i32 = arith.constant 0 : i32
    %c0_i32_0 = arith.constant 0 : i32
    %c0_i32_1 = arith.constant 0 : i32
    return %c0_i32, %c0_i32_0 : i32, i32
  }
  func.func @transform_10(%arg0: i32, %arg1: i32) -> (i32, i32) {
    %c0_i32 = arith.constant 0 : i32
    %c0_i32_0 = arith.constant 0 : i32
    %c0_i32_1 = arith.constant 0 : i32
    return %c0_i32, %c0_i32_0 : i32, i32
  }
  func.func @transform_11(%arg0: i32, %arg1: i32) -> (i32, i32, i32) {
    %c0_i32 = arith.constant 0 : i32
    %c0_i32_0 = arith.constant 0 : i32
    return %arg0, %arg1, %c0_i32 : i32, i32, i32
  }
}

</mosaic_0001>

<bundles_post_ra>
// kernel: ssm_conv1d_forward.15
= control target key start
LH: loop header
LB: loop body
LE: loop exit
PB: predicated region body
PF: predicated region fallthrough
CT: control target
= control target key end

     0   :  { %s2626_s0 = inlined_call_operand.hbm [shape: bf16[2,16,32], index: 0, kind: input, shape index: {}, may-alias: {0,11}]   ;;  %s2627_s1 = inlined_call_operand.vmem [shape: bf16[32,128], index: 1, kind: input, shape index: {}]   ;;  %s2628_s2 = inlined_call_operand.vmem [shape: f32[4,64], index: 2, kind: input, shape index: {}]   ;;  %s2629_s3 = inlined_call_operand.vmem [shape: f32[1,64], index: 3, kind: input, shape index: {}]   ;;  %s2630_s4 = inlined_call_operand.vmem [shape: bf16[64,384], index: 4, kind: input, shape index: {}]   ;;  %s2631_s5 = inlined_call_operand.vmem [shape: bf16[128,64], index: 5, kind: input, shape index: {}]   ;;  %s2632_s6 = inlined_call_operand.vmem [shape: f32[1,64], index: 6, kind: input, shape index: {}]   ;;  %s2633_s7 = inlined_call_operand.vmem [shape: f32[16,64], index: 7, kind: input, shape index: {}]   ;;  %s2634_s8 = inlined_call_operand.vmem [shape: f32[1,64], index: 8, kind: input, shape index: {}]   ;;  %s2635_s9 = inlined_call_operand.vmem [shape: bf16[64,32], index: 9, kind: input, shape index: {}]   ;;  %s2636_s10 = inlined_call_operand.vmem [shape: f32[1,32], index: 10, kind: input, shape index: {}]   ;;  %s2637_s11 = inlined_call_operand.hbm [shape: bf16[2,16,32], index: 11, kind: output, shape index: {}, may-alias: {0,11}]  }
   0x1   :  { %2645 = sst [smem:[#allocation19_spill]] %s2626_s0 }
   0x2   :  { %2646 = sst [smem:[#allocation20_spill]] %s2627_s1 }
   0x3   :  { %2647 = sst [smem:[#allocation21_spill]] %s2633_s7 }
   0x4   :  { %2648 = sst [smem:[#allocation22_spill]] %s2634_s8 }
   0x5   :  { %2649 = sst [smem:[#allocation23_spill]] %s2636_s10 }
   0x6   :  { %2650 = sst [smem:[#allocation24_spill]] %s2637_s11 }
   0x7   :  { %16 = vsyncpa [#allocation9], 0 }
   0x8   :  { %18 = vsyncpa [#allocation9 + $0x1], 0 }
   0x9   :  { %19 = vsyncpa [#allocation10], 0 }
   0xa   :  { %21 = vsyncpa [#allocation10 + $0x1], 0  ;;  %s2102_s17 = smov 0   ;;  %s2104_s18 = smov 0  }
   0xb   :  { %s2106_s19 = smov 0   ;;  %s2108_s20 = smov 0  }
   0xc   :  { %s2110_s21 = smov 0   ;;  %s2112_s22 = smov 0  }
   0xd   :  { %s2114_s23 = smov 0   ;;  %s2116_s24 = smov 0  }
   0xe LB: > { %2651 = sst [smem:[#allocation14_spill]] %s2004_s17  ;;  %s1596_s25 = sadd.s32 4294967295, %s2032_s24   ;;  %s2032_s24 = sphi %s2116_s24, %s27_s24   ;;  %s2028_s23 = sphi %s2114_s23, %s2680_s23   ;;  %s2024_s22 = sphi %s2112_s22, %s2679_s22   ;;  %s2020_s21 = sphi %s2110_s21, %s2678_s21   ;;  %s2016_s20 = sphi %s2108_s20, %s2677_s20   ;;  %s2012_s19 = sphi %s2106_s19, %s2676_s19   ;;  %s2008_s18 = sphi %s2104_s18, %s2675_s18   ;;  %s2004_s17 = sphi %s2102_s17, %s2674_s17  }
   0xf   : > { %2652 = sst [smem:[#allocation15_spill]] %s2020_s21  ;;  %s1597_s26 = sadd.s32 4294967294, %s2032_s24  }
  0x10   : > { %s36_s27 = sadd.s32 1, %s2024_s22  ;;  %s39_s28 = sadd.s32 1, %s2028_s23 }
  0x11   : > { %p37_p0 = scmp.ge.s32.totalorder %s36_s27, 2  ;;  %s48_s29 = sadd.s32 1, %s2012_s19 }
  0x12   : > { %p55_p1 = scmp.ne.s32.totalorder %s2012_s19, %s2008_s18  ;;  %p56_p2 = scmp.eq.s32.totalorder %s2032_s24, 0 }
  0x13   : > { %s2682_s27 = smov (%p37_p0, %s36_s27), 0  ;;  %s2684_s28 = smov (!%p37_p0, %s39_s28), %s2028_s23 }
  0x14   : > { %2653 = sst [smem:[#allocation16_spill]] %s2682_s27  ;;  %s44_s30 = ssub.s32 %s2024_s22, %s2682_s27 }
  0x15   : > { %p2155_p3 = por %p56_p2, %p55_p1  ;;  %p41_p4 = scmp.ge.s32.totalorder %s2684_s28, 2 }
  0x16   : > { %p61_p5 = scmp.ne.s32.totalorder %s2008_s18, %s2004_s17  ;;  %p62_p6 = scmp.eq.s32.totalorder %s1596_s25, 0 }
  0x17   : > { %p297_p7 = scmp.eq.s32.totalorder %s1596_s25, 3  ;;  %s2686_s28 = smov (%p41_p4, %s2684_s28), 0 }
  0x18   : > { %2655 = sst [smem:[#allocation17_spill]] %s2686_s28  ;;  %p2163_p8 = por %p62_p6, %p61_p5 }
  0x19   : > { %p2167_p9 = por %p297_p7, %p55_p1  ;;  %s43_s15 = ssub.s32 %s2028_s23, %s2686_s28 }
  0x1a   : > { %p303_p10 = scmp.eq.s32.totalorder %s1597_s26, 3  ;;  %s45_s16 = sor.u32 %s44_s30, %s43_s15 }
  0x1b   : > { %s2657_s14 = scalar_select %p2167_p9, 1, 0 }
  0x1c   : > { %p46_p11 = scmp.eq.s32.totalorder %s45_s16, 0  ;;  %p2173_p12 = por %p303_p10, %p61_p5 }
  0x1d   : > { %2658 = sst [smem:[#allocation18_spill]] %s2657_s14  ;;  %p1760_p13 = scmp.lt.s32.totalorder %s2032_s24, 4 }
  0x1e   : > { %s2659_s25 = scalar_select %p2173_p12, 1, 0 }
  0x1f   : > { %s353_s27 = sand.u32 1, %s2012_s19   ;;  %s1601_s10 = sshll.u32 %s2028_s23, 1 }
  0x20   : > { %s2180_s17 = scalar_select %p46_p11, %s2012_s19, %s48_s29  }
  0x21   : > { %s1600_s11 = sshll.u32 %s353_s27, 2  ;;  %s362_s21 = sadd.s32 %s2024_s22, %s1601_s10 }
  0x22   : > { %s357_s8 = scalar_lea.vmem [#allocation8], %s1600_s11  ;;  %s1602_s28 = sshll.u32 %s362_s21, 6 }
  0x23   : > { %s366_s14 = sshll.u32 %s357_s8, 4  ;;  %s2660_s0 = sld [smem:[#allocation19_spill]]  ;;  %s367_s14 = int_to_ptr.vmem [resolvable:$true] %s366_s14 }
  0x24   : > { %p2189_p0 = pnand %p1760_p13, %p2155_p3  ;;  %p1603_p1 = scmp.ge.s32.totalorder %s2032_s24, 1 }
  0x25   : > { %p371_p2 = scmp.lt.s32.totalorder %s2032_s24, 5  ;;  %s354_s29 = scalar_lea.sflag [#allocation9], %s353_s27 }
  0x26   : > { %p1910_p4 = pneg %p2189_p0  ;;  %s1921_s10 = scalar_lea.vmem %s367_s14, 64 }
  0x27   : > { %p1922_p5 = scmp.ne.s32.totalorder %s367_s14, %s1921_s10  ;;  %s2034_s8 = smov [#allocation8]  }
  0x28   : > { %s1926_s11 = sshll.u32 %s2034_s8, 4  ;;  %s1927_s11 = int_to_ptr.vmem [resolvable:$false] %s1926_s11 }
  0x29   : > { %s364_s30 = scalar_lea.hbm %s2660_s0, %s1602_s28  ;;  %p1924_p6 = pnand %p1922_p5, %p1910_p4 }
  0x2a   : > { %s1928_s7 = scalar_lea.vmem %s1927_s11, 128  ;;  %p1929_p10 = scmp.lt.s32.totalorder %s367_s14, %s1927_s11 }
  0x2b   : > { %p1925_p7 = pneg %p1924_p6  ;;  %p1930_p11 = scmp.lt.s32.totalorder %s1928_s7, %s1921_s10 }
  0x2d   : > { %p1931_p3 = por %p1930_p11, %p1929_p10 }
  0x2f   : > { %p1932_p13 = pnand %p1931_p3, %p1925_p7 }
  0x31   : > { %1935 = shalt.err (!%p1932_p13)
}
  0x32   : > { %1755 = dma.hbm_to_vmem [thread:$0]  (!%p2189_p0), %s364_s30, 64, %s367_s14, %s354_s29  }
  0x33   : > { %p372_p12 = pnand %p1603_p1, %p371_p2 }
  0x34   : > { %s2204_s21 = sand.u32 (!%p372_p12), 1, %s2008_s18  }
  0x35   : > { %375 = sbr.rel (%p372_p12) target bundleno = 1266 (0x4f2), region = 64  ;;  %s1604_s27 = sshll.u32 (!%p372_p12), %s2204_s21, 2 }
  0x36   : > { %s378_s28 = scalar_lea.sflag (!%p372_p12), [#allocation9], %s2204_s21  ;;  %s381_s12 = scalar_lea.vmem (!%p372_p12), [#allocation8], %s1604_s27 }
  0x3a   : > { %1995 = dma.done.wait (%p2163_p8), %s378_s28, 64  }
  0x3b   : > { %1997 = vsyncadd (%p2163_p8), %s378_s28, 4294967232  ;;  %v421_v0 = vld [vmem:[%s381_s12] sm:$0xf]  ;;  %s2212_s14 = scalar_lea.vmem [#allocation11], %s1604_s27  ;;  %p1606_p0 = scmp.ne.s32.totalorder %s2016_s20, 0 }
  0x3d   : > { %425 = sbr.rel (%p1606_p0) target bundleno = 69 (0x45), region = 72 }
  0x42   : > { %vm426_vm0 = vcmask 523264   ;;  %v2035_v1 = vmov 0.0  }
  0x43   : > { %427 = vst.msk [vmem:[#allocation2] sm:$0xff] %vm426_vm0, %v2035_v1  ;;  %428 = vst.msk [vmem:[#allocation2 + $0x8] sm:$0xff] %vm426_vm0, %v2035_v1 }
  0x44   : > { %429 = vst.msk [vmem:[#allocation3] sm:$0xff] %vm426_vm0, %v2035_v1 }
  0x45 PF: > { %s2662_s1 = sld [smem:[#allocation20_spill]]  ;;  %v2036_v3 = vmov 0.0   ;;  %vm2037_vm1 = vmmov 0   ;;  %vm446_vm2 = vcmask 261120   ;;  %v1834_v5 = vld [vmem:[%s2630_s4 + $0x4c] ss:$12 sps:$4 sm:$0xff]   ;;  %v492_v18 = vlaneseq }
  0x46   : > { %1696 = vmatprep.subr.bf16.mxu0 %v2036_v3  ;;  %1700 = vmatprep.mubr.msk.bf16.mxu0 %vm2037_vm1, %v2036_v3  ;;  %v1836_v6 = vld [vmem:[%s2630_s4 + $0x48] ss:$12 sps:$4 sm:$0xff]   ;;  %v1837_v7 = vld [vmem:[%s2630_s4 + $0x50] ss:$12 sps:$4 sm:$0xff]   ;;  %v1841_v9 = vld [vmem:[%s2630_s4 + $0x38] ss:$12 sps:$4 sm:$0xff]  }
  0x47   : > { %v1838_v8 = vld [vmem:[%s2630_s4 + $0x34] ss:$12 sps:$4 sm:$0xff]   ;;  %649 = vmatprep.subr.bf16.mxu1 %v1834_v5  ;;  %v1840_v10 = vld [vmem:[%s2630_s4 + $0x30] ss:$12 sps:$4 sm:$0xff]   ;;  %v2038_v12 = vmov 0   ;;  %v2271_v20 = vshrl.u32 %v492_v18, 7 }
  0x48   : > { %650 = vmatpush1.bf16.msra.mxu1 %v1836_v6  ;;  %v1842_v11 = vld [vmem:[%s2630_s4 + $0x1c] ss:$12 sps:$4 sm:$0xff]   ;;  %673 = vmatprep.mubr.bf16.mxu1 %v2038_v12  ;;  %v1845_v13 = vld [vmem:[%s2630_s4 + $0x20] ss:$12 sps:$4 sm:$0xff]   ;;  %v1844_v14 = vld [vmem:[%s2630_s4 + $0x18] ss:$12 sps:$4 sm:$0xff]  }
  0x49   : > { %651 = vmatprep.subr.bf16.mxu1 %v1838_v8  ;;  %v1846_v15 = vld [vmem:[%s2630_s4 + $0x4] ss:$12 sps:$4 sm:$0xff]   ;;  %v1849_v16 = vld [vmem:[%s2630_s4 + $0x8] ss:$12 sps:$4 sm:$0xff]   ;;  %v1848_v17 = vld [vmem:[%s2630_s4] ss:$12 sps:$4 sm:$0xff]  }
  0x4a   : > { %v507_v23 = vsub.s32 0, %v2271_v20  ;;  %v520_v24 = vsub.s32 1, %v2271_v20  ;;  %vm503_vm3 = vcmp.lt.s32.totalorder %v2271_v20, 3  ;;  %vm516_vm4 = vcmp.lt.s32.totalorder %v2271_v20, 2  ;;  %v490_v25 = vld [vmem:[%s2628_s2] sm:$0xf] }
  0x4b   : > { %v1832_v2 = vld [vmem:[%s2662_s1 + $0x8] sm:$0xff]   ;;  %v1833_v4 = vld [vmem:[%s2662_s1] sm:$0xff]   ;;  %v491_v19 = vld [vmem:[#allocation3] sm:$0xff]  ;;  %vm548_vm5 = vcmask 523264   ;;  %v533_v32 = vsub.s32 2, %v2271_v20  ;;  %v543_v36 = vsub.s32 3, %v2271_v20 }
  0x4c   : > { %1697 = vmatpush3.bf16.msra.mxu0 %v1832_v2  ;;  %652 = vmatpush1.bf16.msra.mxu1 %v1840_v10  ;;  %v511_v21 = vrot.slane %v491_v19, 5  ;;  %v524_v22 = vrot.slane %v491_v19, 6  ;;  %v537_v28 = vrot.slane %v491_v19, 7  ;;  %v508_v30 = vrot.slane %v490_v25, %v507_v23  ;;  %v1610_v40 = vld [vmem:[%s2629_s3] ss:$0 sm:$0xff]  ;;  %v1851_v6 = vld [vmem:[%s2631_s5 + $0x30] sm:$0xff]  }
  0x4d   : > { %1698 = vmatprep.subr.bf16.mxu0 %v2036_v3  ;;  %653 = vmatprep.subr.bf16.mxu1 %v1842_v11  ;;  %v521_v31 = vrot.slane %v490_v25, %v520_v24  ;;  %vm529_vm6 = vcmp.lt.s32.totalorder %v2271_v20, 1  ;;  %v534_v45 = vrot.slane %v490_v25, %v533_v32  ;;  %v544_v48 = vrot.slane %v490_v25, %v543_v36  ;;  %v1853_v8 = vld [vmem:[%s2631_s5 + $0x20] sm:$0xff]   ;;  %v1855_v10 = vld [vmem:[%s2631_s5 + $0x10] sm:$0xff]   ;;  %v1856_v11 = vld [vmem:[%s2631_s5 + $0x8] sm:$0xff]   ;;  %s2039_s7 = smov 16   ;;  %s2040_s12 = smov 64  }
  0x4e   : > { %v512_v26 = vsel %vm503_vm3, %v511_v21, 0.0  ;;  %v525_v27 = vsel %vm516_vm4, %v524_v22, 0.0  ;;  %v538_v43 = vsel %vm529_vm6, %v537_v28, 0.0  ;;  %v1857_v12 = vld [vmem:[%s2631_s5] sm:$0xff]   ;;  %vm855_vm7 = vcmask 130048   ;;  %s2663_s11 = sld [smem:[#allocation21_spill]] }
  0x4f   : > { %v513_v38 = vmul.f32 %v512_v26, %v508_v30  ;;  %v526_v39 = vmul.f32 %v525_v27, %v521_v31  ;;  %v539_v53 = vmul.f32 %v538_v43, %v534_v45  ;;  %v2344_v25 = vand.u32 127, %v492_v18  ;;  %s2664_s13 = sld [smem:[#allocation22_spill]] }
  0x50   : > { %1699 = vmatpush3.bf16.msra.mxu0 %v1833_v4  ;;  %654 = vmatpush1.bf16.msra.mxu1 %v1844_v14  ;;  %v1850_v4 = vld [vmem:[%s2631_s5 + $0x38] sm:$0xff]   ;;  %v2348_v27 = vadd.s32 8, %v2271_v20  ;;  %vm1339_vm14 = vcmask 1040384   ;;  %vm1341_vm15 = vcmask 1041408   ;;  %vm1343_vm0 = vcmask 1042432   ;;  %s2665_s30 = sld [smem:[#allocation15_spill]] }
  0x51   : > { %1704 = vmatprep.subr.bf16.mxu0 %v2036_v3  ;;  %655 = vmatprep.subr.bf16.mxu1 %v1846_v15  ;;  %v527_v52 = vadd.f32 %v526_v39, %v513_v38  ;;  %vm861_vm9 = vcmp.eq.s32.totalorder %v2344_v25, %v2271_v20  ;;  %s2667_s27 = sld [smem:[#allocation23_spill]] }
  0x52   : > { %vm862_vm8 = vcmp.eq.s32.totalorder %v2344_v25, %v2348_v27 }
  0x53   : > { %1701 = vmatmul.mubr.msk.bf16.vlgmr.msra.gmra.mxu0 %vm446_vm2, %v421_v0  ;;  %v540_v58 = vadd.f32 %v539_v53, %v527_v52  ;;  %v2355_v28 = vsel %vm862_vm8, 1.0, %v2036_v3 }
  0x54   : > { %1712 = vmatprep.mubr.msk.bf16.mxu0 %vm2037_vm1, %v2036_v3  ;;  %1705 = vmatpush3.bf16.msra.mxu0 %v1837_v7  ;;  %v1852_v7 = vld [vmem:[%s2631_s5 + $0x28] sm:$0xff]  }
  0x55   : > { %1706 = vmatprep.subr.bf16.mxu0 %v2036_v3  ;;  %656 = vmatpush1.bf16.msra.mxu1 %v1848_v17 }
  0x56   : > { %1716 = vmatprep.subr.bf16.mxu1 %v2036_v3  ;;  %s1670_s15 = sshll.u32 %s2665_s30, 1  ;;  %s1475_s30 = scalar_lea.sflag [#allocation10], %s2204_s21 }
  0x57   : > { %s1486_s10 = sadd.s32 %s2016_s20, %s1670_s15  ;;  %s2041_s20 = smov [#allocation11]  }
  0x58   : > { %1707 = vmatpush3.bf16.msra.mxu0 %v1841_v9  ;;  %v1854_v9 = vld [vmem:[%s2631_s5 + $0x18] sm:$0xff]   ;;  %s1671_s28 = sshll.u32 %s1486_s10, 6  ;;  %s1940_s15 = sshll.u32 %s2041_s20, 4  ;;  %s1941_s15 = int_to_ptr.vmem [resolvable:$false] %s1940_s15 }
  0x59   : > { %1708 = vmatprep.subr.bf16.mxu0 %v2036_v3  ;;  %s1942_s10 = scalar_lea.vmem %s1941_s15, 128 }
  0x5c   : > { %1709 = vmatpush3.bf16.msra.mxu0 %v1845_v13 }
  0x5d   : > { %1710 = vmatprep.subr.bf16.mxu0 %v2036_v3 }
  0x60   : > { %1711 = vmatpush3.bf16.msra.mxu0 %v1849_v16 }
  0x61   : > { %1736 = vmatprep.subr.bf16.mxu0 %v2036_v3 }
 0x113   : > { %v2284_v29 = vpop.f32.mrf.mxu0 }
 0x114   : > { %v502_v33 = vrot.slane %v2284_v29, 5  ;;  %v515_v34 = vrot.slane %v2284_v29, 6  ;;  %v528_v35 = vrot.slane %v2284_v29, 7  ;;  %549 = vst.msk [vmem:[#allocation3] sm:$0xff] %vm548_vm5, %v2284_v29  ;;  %v545_v56 = vmul.f32 %v544_v48, %v2284_v29 }
 0x115   : > { %v1702_v37 = vpop.f32.mrf.mxu0 }
 0x116   : > { %v504_v41 = vsel %vm503_vm3, 0.0, %v502_v33  ;;  %v517_v42 = vsel %vm516_vm4, 0.0, %v515_v34  ;;  %v530_v47 = vsel %vm529_vm6, 0.0, %v528_v35  ;;  %v867_v35 = vadd.s32 16, %v2271_v20 }
 0x117   : > { %v509_v44 = vmul.f32 %v508_v30, %v504_v41  ;;  %v487_v46 = vpop.f32.mrf.mxu0  ;;  %v522_v50 = vmul.f32 %v521_v31, %v517_v42  ;;  %v535_v54 = vmul.f32 %v534_v45, %v530_v47  ;;  %v1634_v30 = vsel %vm861_vm9, 1.0, %v2036_v3 }
 0x118   : > { %vm869_vm10 = vcmp.eq.s32.totalorder %v2344_v25, %v867_v35  ;;  %vm1347_vm3 = vcmask 1044480   ;;  %vm1349_vm4 = vcmask 1045504   ;;  %vm1351_vm6 = vcmask 1046528  }
 0x119   : > { %v510_v49 = vadd.f32 %v1610_v40, %v509_v44  ;;  %v1703_v51 = vpop.f32.mrf.mxu0  ;;  %v1636_v45 = vsel %vm869_vm10, 1.0, %v2036_v3 }
 0x11b   : > { %v523_v55 = vadd.f32 %v522_v50, %v510_v49 }
 0x11d   : > { %v536_v57 = vadd.f32 %v535_v54, %v523_v55 }
 0x11f   : > { %v546_v59 = vadd.f32 %v545_v56, %v536_v57 }
 0x121   : > { %v547_v60 = vadd.f32 %v546_v59, %v540_v58 }
 0x123   : > { %v550_v61 = vsub.f32 0.0, %v547_v60 }
 0x125   : > { %v551_v62 = vmul.f32 1.442695, %v550_v61 }
 0x127   : > { %1862 = vpow2.f32 %v551_v62 }
 0x134   : > { %v1863_v63 = vpop.eup %1862 }
 0x135   : > { %v553_v0 = vadd.f32 1.0, %v1863_v63  ;;  %v1366_v63 = vsub.f32 0.0, %v2284_v29 }
 0x137   : > { %1864 = vrcp.f32 %v553_v0 }
 0x144   : > { %v1865_v1 = vpop.eup %1864 }
 0x145   : > { %v2302_v2 = vmul.f32 %v1865_v1, %v547_v60 }
 0x147   : > { %v557_v5 = vpack.c.bf16 %v2302_v2, %v2302_v2 }
 0x149   : > { %1623 = vmatmul.mubr.msk.bf16.vlgmr.msra.gmra.mxu1 %vm548_vm5, %v557_v5  ;;  %1713 = vmatmul.mubr.msk.bf16.vlgmr.msra.gmra.mxu0 %vm548_vm5, %v557_v5 }
 0x14a   : > { %1717 = vmatpush3.bf16.msra.mxu1 %v1850_v4  ;;  %1732 = vmatprep.mubr.msk.bf16.mxu1 %vm2037_vm1, %v2036_v3 }
 0x14b   : > { %1718 = vmatprep.subr.bf16.mxu1 %v2036_v3  ;;  %1744 = vmatprep.mubr.msk.bf16.mxu0 %vm2037_vm1, %v2036_v3  ;;  %vm1345_vm1 = vcmask 1043456  }
 0x14e   : > { %1719 = vmatpush3.bf16.msra.mxu1 %v1851_v6 }
 0x14f   : > { %1720 = vmatprep.subr.bf16.mxu1 %v2036_v3 }
 0x152   : > { %1721 = vmatpush3.bf16.msra.mxu1 %v1852_v7 }
 0x153   : > { %1722 = vmatprep.subr.bf16.mxu1 %v2036_v3 }
 0x156   : > { %1723 = vmatpush3.bf16.msra.mxu1 %v1853_v8  ;;  %v1367_v8 = vmul.f32 1.442695, %v1366_v63 }
 0x157   : > { %1724 = vmatprep.subr.bf16.mxu1 %v2036_v3 }
 0x158   : > { %1866 = vpow2.f32 %v1367_v8  ;;  %v1860_v8 = vld [vmem:[%s2635_s9 + $0x8] sm:$0xff]  }
 0x15a   : > { %1725 = vmatpush3.bf16.msra.mxu1 %v1854_v9 }
 0x15b   : > { %1726 = vmatprep.subr.bf16.mxu1 %v2036_v3 }
 0x15e   : > { %1727 = vmatpush3.bf16.msra.mxu1 %v1855_v10 }
 0x15f   : > { %1728 = vmatprep.subr.bf16.mxu1 %v2036_v3 }
 0x162   : > { %1729 = vmatpush3.bf16.msra.mxu1 %v1856_v11 }
 0x163   : > { %1730 = vmatprep.subr.bf16.mxu1 %v2036_v3 }
 0x166   : > { %1731 = vmatpush3.bf16.msra.mxu1 %v1857_v12 }
 0x209   : > { %v675_v13 = vpop.f32.mrf.mxu1  ;;  %v716_v14 = vpop.f32.mrf.mxu0 }
 0x20a   : > { %v722_v15 = vpack.c.bf16 %v675_v13, %v675_v13  ;;  %852 = vrot.lane.b32.xlu0 %v716_v14, %s2039_s7  ;;  %v868_v13 = vadd.s32 16, %v2348_v27 }
 0x20b   : > { %v677_v16 = vpop.f32.mrf.mxu1  ;;  %v1714_v17 = vpop.f32.mrf.mxu0 }
 0x20c   : > { %1733 = vmatmul.mubr.bf16.vlgmr.msra.gmra.mxu1 %v722_v15  ;;  %vm870_vm11 = vcmp.eq.s32.totalorder %v2344_v25, %v868_v13 }
 0x20d   : > { %v679_v19 = vpop.f32.mrf.mxu1  ;;  %v719_v21 = vpop.f32.mrf.mxu0 }
 0x20f   : > { %v680_v22 = vpop.f32.mrf.mxu1  ;;  %v1715_v23 = vpop.f32.mrf.mxu0 }
 0x27c   : > { %v853_v24 = vpop.permute.xlu0 %852 }
 0x27d   : > { %v856_v26 = vsel %vm855_vm7, %v677_v16, %v853_v24  ;;  %v1637_v24 = vsel %vm870_vm11, 1.0, %v2036_v3 }
 0x27e   : > { %857 = vst.msk [vmem:[#allocation6] sm:$0xff] %vm446_vm2, %v856_v26 }
 0x285   : > { %v2358_v31 = vld [vmem:[#allocation6] ss:$0 sm:$0xff]  ;;  %v2360_v18 = vld [vmem:[#allocation6 + $0x1] ss:$0 sm:$0xff]  ;;  %v2362_v32 = vld [vmem:[#allocation6 + $0x5] ss:$0 sm:$0xff] }
 0x286   : > { %v887_v33 = vmul.f32 %v2358_v31, %v2355_v28  ;;  %v886_v34 = vmul.f32 %v2358_v31, %v1634_v30  ;;  %v944_v38 = vmul.f32 %v2360_v18, %v1634_v30  ;;  %v1176_v39 = vmul.f32 %v2362_v32, %v1634_v30  ;;  %v2372_v40 = vld [vmem:[#allocation6 + $0x6] ss:$0 sm:$0xff]  ;;  %v2380_v44 = vld [vmem:[#allocation6 + $0x2] ss:$0 sm:$0xff]  ;;  %v2392_v54 = vld [vmem:[#allocation6 + $0x3] ss:$0 sm:$0xff] }
 0x287   : > { %v945_v20 = vmul.f32 %v2360_v18, %v2355_v28  ;;  %v1234_v43 = vmul.f32 %v2372_v40, %v1634_v30  ;;  %v1002_v48 = vmul.f32 %v2380_v44, %v1634_v30  ;;  %v894_v49 = vmul.f32 %v2358_v31, %v1636_v45  ;;  %v1650_v0 = vld [vmem:[#allocation6 + $0x4] ss:$0 sm:$0xff]  ;;  %v2404_v1 = vld [vmem:[#allocation6 + $0x7] ss:$0 sm:$0xff] }
 0x288   : > { %v891_v36 = vsel %vm446_vm2, %v887_v33, 0.0  ;;  %v888_v37 = vsel %vm446_vm2, %v886_v34, 0.0  ;;  %v946_v41 = vsel %vm446_vm2, %v944_v38, 0.0  ;;  %v1178_v42 = vsel %vm446_vm2, %v1176_v39, 0.0  ;;  %v1867_v33 = vpop.eup %1866 }
 0x289   : > { %892 = vadd.xlane.f32.xlu1 %v891_v36  ;;  %889 = vadd.xlane.f32.xlu0 %v888_v37  ;;  %v949_v46 = vsel %vm446_vm2, %v945_v20, 0.0  ;;  %v1236_v47 = vsel %vm446_vm2, %v1234_v43, 0.0  ;;  %v1004_v50 = vsel %vm446_vm2, %v1002_v48, 0.0  ;;  %v896_v51 = vsel %vm446_vm2, %v894_v49, 0.0  ;;  %v1625_v48 = vld [vmem:[%s2632_s6] ss:$0 sm:$0xff] }
 0x28a   : > { %v1003_v52 = vmul.f32 %v2380_v44, %v2355_v28  ;;  %v952_v53 = vmul.f32 %v2360_v18, %v1636_v45  ;;  %v1060_v57 = vmul.f32 %v2392_v54, %v1634_v30  ;;  %v1010_v58 = vmul.f32 %v2380_v44, %v1636_v45 }
 0x28b   : > { %v1061_v61 = vmul.f32 %v2392_v54, %v2355_v28  ;;  %v1068_v62 = vmul.f32 %v2392_v54, %v1636_v45  ;;  %v1118_v6 = vmul.f32 %v1650_v0, %v1634_v30  ;;  %v1292_v7 = vmul.f32 %v2404_v1, %v1634_v30 }
 0x28c   : > { %v1007_v55 = vsel %vm446_vm2, %v1003_v52, 0.0  ;;  %v954_v56 = vsel %vm446_vm2, %v952_v53, 0.0  ;;  %v1062_v59 = vsel %vm446_vm2, %v1060_v57, 0.0  ;;  %v1012_v60 = vsel %vm446_vm2, %v1010_v58, 0.0 }
 0x28d   : > { %947 = vadd.xlane.f32.xlu1 %v946_v41  ;;  %1179 = vadd.xlane.f32.xlu0 %v1178_v42  ;;  %v1065_v4 = vsel %vm446_vm2, %v1061_v61, 0.0  ;;  %v1070_v5 = vsel %vm446_vm2, %v1068_v62, 0.0  ;;  %v1120_v9 = vsel %vm446_vm2, %v1118_v6, 0.0  ;;  %v1294_v10 = vsel %vm446_vm2, %v1292_v7, 0.0 }
 0x28e   : > { %v1119_v11 = vmul.f32 %v1650_v0, %v2355_v28  ;;  %v1126_v12 = vmul.f32 %v1650_v0, %v1636_v45  ;;  %v1177_v16 = vmul.f32 %v2362_v32, %v2355_v28  ;;  %v1184_v17 = vmul.f32 %v2362_v32, %v1636_v45 }
 0x28f   : > { %v1235_v22 = vmul.f32 %v2372_v40, %v2355_v28  ;;  %v1242_v23 = vmul.f32 %v2372_v40, %v1636_v45  ;;  %v895_v30 = vmul.f32 %v2358_v31, %v1637_v24  ;;  %v1300_v25 = vmul.f32 %v2404_v1, %v1636_v45 }
 0x290   : > { %v1123_v14 = vsel %vm446_vm2, %v1119_v11, 0.0  ;;  %v1128_v15 = vsel %vm446_vm2, %v1126_v12, 0.0  ;;  %v1181_v19 = vsel %vm446_vm2, %v1177_v16, 0.0  ;;  %v1186_v21 = vsel %vm446_vm2, %v1184_v17, 0.0  ;;  %v2479_v16 = vld [vmem:[%s2663_s11 + $0x8] sm:$0xff] }
 0x291   : > { %950 = vadd.xlane.f32.xlu1 %v949_v46  ;;  %1237 = vadd.xlane.f32.xlu0 %v1236_v47  ;;  %v1239_v26 = vsel %vm446_vm2, %v1235_v22, 0.0  ;;  %v1244_v27 = vsel %vm446_vm2, %v1242_v23, 0.0  ;;  %v899_v34 = vsel %vm446_vm2, %v895_v30, 0.0  ;;  %v1302_v35 = vsel %vm446_vm2, %v1300_v25, 0.0 }
 0x292   : > { %v953_v36 = vmul.f32 %v2360_v18, %v1637_v24  ;;  %v1369_v37 = vadd.f32 1.0, %v1867_v33  ;;  %v1011_v39 = vmul.f32 %v2380_v44, %v1637_v24  ;;  %v1069_v41 = vmul.f32 %v2392_v54, %v1637_v24 }
 0x293   : > { %v1293_v20 = vmul.f32 %v2404_v1, %v2355_v28  ;;  %v1127_v43 = vmul.f32 %v1650_v0, %v1637_v24  ;;  %v1185_v46 = vmul.f32 %v2362_v32, %v1637_v24 }
 0x294   : > { %v957_v38 = vsel %vm446_vm2, %v953_v36, 0.0  ;;  %1868 = vrcp.f32 %v1369_v37  ;;  %v1015_v31 = vsel %vm446_vm2, %v1011_v39, 0.0  ;;  %v1073_v42 = vsel %vm446_vm2, %v1069_v41, 0.0 }
 0x295   : > { %1005 = vadd.xlane.f32.xlu1 %v1004_v50  ;;  %897 = vadd.xlane.f32.xlu0 %v896_v51  ;;  %v1297_v18 = vsel %vm446_vm2, %v1293_v20, 0.0  ;;  %v1131_v44 = vsel %vm446_vm2, %v1127_v43, 0.0  ;;  %v1189_v49 = vsel %vm446_vm2, %v1185_v46, 0.0  ;;  %v1243_v50 = vmul.f32 %v2372_v40, %v1637_v24 }
 0x297   : > { %v1247_v32 = vsel %vm446_vm2, %v1243_v50, 0.0 }
 0x299   : > { %1008 = vadd.xlane.f32.xlu1 %v1007_v55  ;;  %955 = vadd.xlane.f32.xlu0 %v954_v56 }
 0x29d   : > { %1063 = vadd.xlane.f32.xlu1 %v1062_v59  ;;  %1013 = vadd.xlane.f32.xlu0 %v1012_v60 }
 0x2a1   : > { %1066 = vadd.xlane.f32.xlu1 %v1065_v4  ;;  %1071 = vadd.xlane.f32.xlu0 %v1070_v5  ;;  %v1869_v45 = vpop.eup %1868  ;;  %v1859_v5 = vld [vmem:[%s2635_s9 + $0x10] sm:$0xff]  }
 0x2a2   : > { %v1372_v47 = vmul.f32 %v1869_v45, %v2284_v29  ;;  %v1301_v29 = vmul.f32 %v2404_v1, %v1637_v24  ;;  %v1858_v1 = vld [vmem:[%s2635_s9 + $0x18] sm:$0xff]  }
 0x2a3   : > { %1737 = vmatpush3.bf16.msra.mxu0 %v1858_v1 }
 0x2a4   : > { %v1305_v57 = vsel %vm446_vm2, %v1301_v29, 0.0  ;;  %1738 = vmatprep.subr.bf16.mxu0 %v2036_v3 }
 0x2a5   : > { %1121 = vadd.xlane.f32.xlu1 %v1120_v9  ;;  %1295 = vadd.xlane.f32.xlu0 %v1294_v10  ;;  %v2468_v9 = vld [vmem:[%s2663_s11] sm:$0xff] }
 0x2a6   : > { %v1861_v10 = vld [vmem:[%s2635_s9] sm:$0xff]  }
 0x2a7   : > { %1739 = vmatpush3.bf16.msra.mxu0 %v1859_v5 }
 0x2a8   : > { %1740 = vmatprep.subr.bf16.mxu0 %v2036_v3 }
 0x2a9   : > { %1124 = vadd.xlane.f32.xlu1 %v1123_v14  ;;  %1129 = vadd.xlane.f32.xlu0 %v1128_v15 }
 0x2ab   : > { %1741 = vmatpush3.bf16.msra.mxu0 %v1860_v8 }
 0x2ac   : > { %1742 = vmatprep.subr.bf16.mxu0 %v2036_v3 }
 0x2ad   : > { %1182 = vadd.xlane.f32.xlu1 %v1181_v19  ;;  %1187 = vadd.xlane.f32.xlu0 %v1186_v21 }
 0x2af   : > { %1743 = vmatpush3.bf16.msra.mxu0 %v1861_v10 }
 0x2b1   : > { %1240 = vadd.xlane.f32.xlu1 %v1239_v26  ;;  %1245 = vadd.xlane.f32.xlu0 %v1244_v27 }
 0x2b5   : > { %900 = vadd.xlane.f32.xlu1 %v899_v34  ;;  %1303 = vadd.xlane.f32.xlu0 %v1302_v35  ;;  %v877_v34 = vld [vmem:[#allocation2] sm:$0xff] }
 0x2b9   : > { %958 = vadd.xlane.f32.xlu1 %v957_v38 }
 0x2bd   : > { %1016 = vadd.xlane.f32.xlu1 %v1015_v31 }
 0x2c1   : > { %1074 = vadd.xlane.f32.xlu1 %v1073_v42 }
 0x2c5   : > { %1298 = vadd.xlane.f32.xlu1 %v1297_v18 }
 0x2c9   : > { %1132 = vadd.xlane.f32.xlu1 %v1131_v44 }
 0x2cb   : > { %1374 = vrot.lane.b32.xlu0 %v1372_v47, %s2040_s12  ;;  %s1490_s12 = sshll.u32 %s2212_s14, 4  ;;  %s1491_s12 = int_to_ptr.vmem [resolvable:$true] %s1490_s12 }
 0x2cc   : > { %v828_v28 = vpop.f32.mrf.mxu1  ;;  %s1936_s1 = scalar_lea.vmem %s1491_s12, 64  ;;  %p1943_p2 = scmp.lt.s32.totalorder %s1491_s12, %s1941_s15 }
 0x2cd   : > { %v829_v51 = vadd.f32 %v1625_v48, %v828_v28  ;;  %1190 = vadd.xlane.f32.xlu1 %v1189_v49  ;;  %p1937_p8 = scmp.ne.s32.totalorder %s1491_s12, %s1936_s1  ;;  %p1944_p4 = scmp.lt.s32.totalorder %s1942_s10, %s1936_s1 }
 0x2ce   : > { %v1734_v52 = vpop.f32.mrf.mxu1 }
 0x2cf   : > { %v835_v53 = vmin.f32 %v829_v51, 20.0  ;;  %vm834_vm13 = vcmp.gt.f32.partialorder %v829_v51, 20.0  ;;  %p1938_p12 = pnand %p1937_p8, %p2167_p9  ;;  %p1945_p5 = por %p1944_p4, %p1943_p2 }
 0x2d0   : > { %v831_v54 = vpop.f32.mrf.mxu1 }
 0x2d1   : > { %v836_v55 = vmul.f32 1.442695, %v835_v53  ;;  %1248 = vadd.xlane.f32.xlu1 %v1247_v32  ;;  %p1939_p1 = pneg %p1938_p12 }
 0x2d2   : > { %v1735_v56 = vpop.f32.mrf.mxu1 }
 0x2d3   : > { %1870 = vpow2.f32 %v836_v55  ;;  %v878_v55 = vld [vmem:[#allocation2 + $0x8] sm:$0xff]  ;;  %p1946_p6 = pnand %p1945_p5, %p1939_p1 }
 0x2d5   : > { %1306 = vadd.xlane.f32.xlu1 %v1305_v57 }
 0x2e0   : > { %v1871_v58 = vpop.eup %1870 }
 0x2e1   : > { %v838_v59 = vadd.f32 1.0, %v1871_v58  ;;  %v841_v40 = vmul.f32 -0.5, %v1871_v58  ;;  %v844_v61 = vand.u32 2147483647, %v1871_v58 }
 0x2e3   : > { %1872 = vlog2.f32 %v838_v59  ;;  %v842_v60 = vadd.f32 1.0, %v841_v40  ;;  %vm845_vm12 = vcmp.lt.f32.partialorder %v844_v61, 0.0004427343 }
 0x2e5   : > { %v843_v0 = vmul.f32 %v1871_v58, %v842_v60 }
 0x2f0   : > { %v1873_v62 = vpop.eup %1872 }
 0x2f1   : > { %v840_v63 = vmul.f32 0.6931472, %v1873_v62 }
 0x2f3   : > { %v846_v4 = vsel %vm845_vm12, %v843_v0, %v840_v63 }
 0x2f4   : > { %v847_v6 = vsel %vm834_vm13, %v829_v51, %v846_v4 }
 0x2f5   : > { %v848_v7 = vmul.f32 %v847_v6, %v2302_v2  ;;  %849 = vst.msk [vmem:[#allocation4] sm:$0xff] %vm548_vm5, %v847_v6 }
 0x2f7   : > { %850 = vst.msk [vmem:[#allocation5] sm:$0xff] %vm548_vm5, %v848_v7 }
 0x2fc   : > { %v1639_v11 = vld [vmem:[#allocation4] ss:$0 sm:$0xff]  ;;  %v1642_v14 = vld [vmem:[#allocation4 + $0x1] ss:$0 sm:$0xff]  ;;  %v1645_v21 = vld [vmem:[#allocation4 + $0x2] ss:$0 sm:$0xff] }
 0x2fd   : > { %v906_v12 = vmul.f32 %v1639_v11, %v2468_v9  ;;  %v964_v15 = vmul.f32 %v1642_v14, %v2468_v9  ;;  %v907_v19 = vmul.f32 %v1639_v11, %v2479_v16  ;;  %v1022_v3 = vmul.f32 %v1645_v21, %v2468_v9  ;;  %v1648_v23 = vld [vmem:[#allocation4 + $0x3] ss:$0 sm:$0xff]  ;;  %v1651_v41 = vld [vmem:[#allocation4 + $0x4] ss:$0 sm:$0xff]  ;;  %v1654_v45 = vld [vmem:[#allocation4 + $0x5] ss:$0 sm:$0xff] }
 0x2fe   : > { %v965_v26 = vmul.f32 %v1642_v14, %v2479_v16  ;;  %v1640_v30 = vld [vmem:[#allocation5] ss:$0 sm:$0xff]  ;;  %v1080_v36 = vmul.f32 %v1648_v23, %v2468_v9  ;;  %v1023_v18 = vmul.f32 %v1645_v21, %v2479_v16  ;;  %v1138_v43 = vmul.f32 %v1651_v41, %v2468_v9  ;;  %v1643_v46 = vld [vmem:[#allocation5 + $0x1] ss:$0 sm:$0xff]  ;;  %v1657_v53 = vld [vmem:[#allocation4 + $0x6] ss:$0 sm:$0xff] }
 0x2ff   : > { %v908_v13 = vmul.f32 1.442695, %v906_v12  ;;  %v966_v17 = vmul.f32 1.442695, %v964_v15  ;;  %v910_v22 = vmul.f32 1.442695, %v907_v19  ;;  %v1196_v51 = vmul.f32 %v1654_v45, %v2468_v9 }
 0x300   : > { %v1024_v24 = vmul.f32 1.442695, %v1022_v3  ;;  %v968_v38 = vmul.f32 1.442695, %v965_v26  ;;  %v1082_v20 = vmul.f32 1.442695, %v1080_v36  ;;  %v1081_v54 = vmul.f32 %v1648_v23, %v2479_v16 }
 0x301   : > { %1874 = vpow2.f32 %v908_v13  ;;  %v1026_v50 = vmul.f32 1.442695, %v1023_v18  ;;  %v1140_v52 = vmul.f32 1.442695, %v1138_v43  ;;  %v1646_v58 = vld [vmem:[#allocation5 + $0x2] ss:$0 sm:$0xff]  ;;  %v1254_v60 = vmul.f32 %v1657_v53, %v2468_v9 }
 0x302   : > { %1876 = vpow2.f32 %v966_v17  ;;  %v1198_v40 = vmul.f32 1.442695, %v1196_v51  ;;  %v2501_v63 = vld [vmem:[#allocation4 + $0x7] ss:$0 sm:$0xff]  ;;  %v1084_v0 = vmul.f32 1.442695, %v1081_v54  ;;  %v1139_v7 = vmul.f32 %v1651_v41, %v2479_v16 }
 0x303   : > { %1878 = vpow2.f32 %v910_v22  ;;  %v1312_v8 = vmul.f32 %v2501_v63, %v2468_v9  ;;  %v1256_v12 = vmul.f32 1.442695, %v1254_v60  ;;  %v1649_v15 = vld [vmem:[#allocation5 + $0x3] ss:$0 sm:$0xff]  ;;  %v1197_v23 = vmul.f32 %v1654_v45, %v2479_v16 }
 0x304   : > { %1880 = vpow2.f32 %v1024_v24  ;;  %v1142_v3 = vmul.f32 1.442695, %v1139_v7  ;;  %v1661_v7 = vld [vmem:[#allocation5 + $0x7] ss:$0 sm:$0xff] }
 0x305   : > { %1882 = vpow2.f32 %v968_v38  ;;  %v1314_v9 = vmul.f32 1.442695, %v1312_v8  ;;  %v1200_v36 = vmul.f32 1.442695, %v1197_v23  ;;  %v1652_v38 = vld [vmem:[#allocation5 + $0x4] ss:$0 sm:$0xff] }
 0x306   : > { %1884 = vpow2.f32 %v1082_v20 }
 0x307   : > { %1886 = vpow2.f32 %v1026_v50 }
 0x308   : > { %1888 = vpow2.f32 %v1140_v52 }
 0x309   : > { %1890 = vpow2.f32 %v1198_v40 }
 0x30a   : > { %1892 = vpow2.f32 %v1084_v0 }
 0x30b   : > { %1894 = vpow2.f32 %v1256_v12 }
 0x30c   : > { %1896 = vpow2.f32 %v1142_v3 }
 0x30d   : > { %1898 = vpow2.f32 %v1314_v9 }
 0x30e   : > { %v1875_v27 = vpop.eup %1874  ;;  %1900 = vpow2.f32 %v1200_v36 }
 0x30f   : > { %v912_v37 = vmul.f32 %v1875_v27, %v877_v34  ;;  %v1877_v44 = vpop.eup %1876 }
 0x310   : > { %v1879_v32 = vpop.eup %1878 }
 0x311   : > { %v913_v62 = vmul.f32 %v1879_v32, %v878_v55  ;;  %v1881_v1 = vpop.eup %1880 }
 0x312   : > { %v893_v25 = vpop.xlane.xlu1 %892  ;;  %v890_v33 = vpop.xlane.xlu0 %889 }
 0x313   : > { %v918_v35 = vmul.f32 %v1640_v30, %v890_v33  ;;  %v919_v56 = vmul.f32 %v1640_v30, %v893_v25  ;;  %v1883_v13 = vpop.eup %1882 }
 0x314   : > { %v1885_v22 = vpop.eup %1884 }
 0x315   : > { %v2487_v42 = vadd.f32 %v918_v35, %v912_v37  ;;  %v2504_v6 = vadd.f32 %v919_v56, %v913_v62  ;;  %v1887_v33 = vpop.eup %1886 }
 0x316   : > { %v948_v39 = vpop.xlane.xlu1 %947  ;;  %v2485_v31 = vpop.xlane.xlu0 %1179 }
 0x317   : > { %v976_v28 = vmul.f32 %v1643_v46, %v948_v39  ;;  %v970_v49 = vmul.f32 %v1877_v44, %v2487_v42  ;;  %v971_v21 = vmul.f32 %v1883_v13, %v2504_v6  ;;  %v1889_v37 = vpop.eup %1888 }
 0x318   : > { %v1891_v43 = vpop.eup %1890 }
 0x319   : > { %v2496_v57 = vadd.f32 %v976_v28, %v970_v49  ;;  %v1655_v28 = vld [vmem:[#allocation5 + $0x5] ss:$0 sm:$0xff] }
 0x31a   : > { %v951_v47 = vpop.xlane.xlu1 %950  ;;  %v2491_v48 = vpop.xlane.xlu0 %1237  ;;  %v1208_v51 = vmul.f32 %v1655_v28, %v2485_v31 }
 0x31b   : > { %v1028_v5 = vmul.f32 %v1881_v1, %v2496_v57  ;;  %v977_v10 = vmul.f32 %v1643_v46, %v951_v47  ;;  %v1255_v46 = vmul.f32 %v1657_v53, %v2479_v16  ;;  %v1893_v47 = vpop.eup %1892 }
 0x31c   : > { %v1895_v56 = vpop.eup %1894 }
 0x31d   : > { %v979_v26 = vadd.f32 %v977_v10, %v971_v21  ;;  %v1258_v55 = vmul.f32 1.442695, %v1255_v46  ;;  %v1897_v62 = vpop.eup %1896 }
 0x31e   : > { %v1006_v29 = vpop.xlane.xlu1 %1005  ;;  %v2498_v59 = vpop.xlane.xlu0 %897 }
 0x31f   : > { %v1034_v61 = vmul.f32 %v1646_v58, %v1006_v29  ;;  %v1029_v35 = vmul.f32 %v1887_v33, %v979_v26  ;;  %1902 = vpow2.f32 %v1258_v55 }
 0x321   : > { %v2509_v11 = vadd.f32 %v1034_v61, %v1028_v5  ;;  %v1899_v5 = vpop.eup %1898 }
 0x322   : > { %v1009_v4 = vpop.xlane.xlu1 %1008  ;;  %v2511_v14 = vpop.xlane.xlu0 %955 }
 0x323   : > { %v1086_v24 = vmul.f32 %v1885_v22, %v2509_v11  ;;  %v1035_v30 = vmul.f32 %v1646_v58, %v1009_v4  ;;  %v1658_v58 = vld [vmem:[#allocation5 + $0x6] ss:$0 sm:$0xff]  ;;  %v1313_v4 = vmul.f32 %v2501_v63, %v2479_v16 }
 0x324   : > { %v1266_v60 = vmul.f32 %v1658_v58, %v2491_v48 }
 0x325   : > { %v1037_v18 = vadd.f32 %v1035_v30, %v1029_v35  ;;  %v980_v35 = vmul.f32 %v2496_v57, %v2511_v14 }
 0x326   : > { %v1064_v17 = vpop.xlane.xlu1 %1063  ;;  %v2518_v34 = vpop.xlane.xlu0 %1013 }
 0x327   : > { %v1092_v19 = vmul.f32 %v1649_v15, %v1064_v17  ;;  %v1087_v54 = vmul.f32 %v1893_v47, %v1037_v18  ;;  %v1901_v17 = vpop.eup %1900 }
 0x329   : > { %v2516_v25 = vadd.f32 %v1092_v19, %v1086_v24 }
 0x32a   : > { %v1067_v27 = vpop.xlane.xlu1 %1066  ;;  %v1072_v49 = vpop.xlane.xlu0 %1071 }
 0x32b   : > { %v1144_v20 = vmul.f32 %v1889_v37, %v2516_v25  ;;  %v1093_v45 = vmul.f32 %v1649_v15, %v1067_v27  ;;  %v1316_v15 = vmul.f32 1.442695, %v1313_v4  ;;  %v922_v37 = vmul.f32 %v2487_v42, %v2498_v59 }
 0x32c   : > { %v1903_v63 = vpop.eup %1902 }
 0x32d   : > { %v1095_v29 = vadd.f32 %v1093_v45, %v1087_v54  ;;  %1904 = vpow2.f32 %v1316_v15  ;;  %v982_v45 = vsel %vm548_vm5, %v980_v35, 0.0  ;;  %v924_v42 = vsel %vm548_vm5, %v922_v37, 0.0 }
 0x32e   : > { %v1122_v39 = vpop.xlane.xlu1 %1121  ;;  %v1296_v0 = vpop.xlane.xlu0 %1295 }
 0x32f   : > { %v1150_v41 = vmul.f32 %v1652_v38, %v1122_v39  ;;  %v1145_v31 = vmul.f32 %v1897_v62, %v1095_v29  ;;  %v1324_v10 = vmul.f32 %v1661_v7, %v1296_v0 }
 0x331   : > { %v2521_v44 = vadd.f32 %v1150_v41, %v1144_v20  ;;  %v1096_v41 = vmul.f32 %v2516_v25, %v1072_v49 }
 0x332   : > { %v1125_v50 = vpop.xlane.xlu1 %1124  ;;  %v1130_v30 = vpop.xlane.xlu0 %1129 }
 0x333   : > { %v1202_v52 = vmul.f32 %v1891_v43, %v2521_v44  ;;  %v1151_v61 = vmul.f32 %v1652_v38, %v1125_v50  ;;  %v1038_v38 = vmul.f32 %v2509_v11, %v2518_v34  ;;  %v1098_v46 = vsel %vm548_vm5, %v1096_v41, 0.0 }
 0x335   : > { %v2526_v32 = vadd.f32 %v1208_v51, %v1202_v52  ;;  %v1153_v13 = vadd.f32 %v1151_v61, %v1145_v31  ;;  %v1040_v59 = vsel %vm548_vm5, %v1038_v38, 0.0  ;;  %v1154_v52 = vmul.f32 %v2521_v44, %v1130_v30 }
 0x336   : > { %v1183_v40 = vpop.xlane.xlu1 %1182  ;;  %v1188_v11 = vpop.xlane.xlu0 %1187 }
 0x337   : > { %v1260_v53 = vmul.f32 %v1895_v56, %v2526_v32  ;;  %v1209_v21 = vmul.f32 %v1655_v28, %v1183_v40  ;;  %v1203_v3 = vmul.f32 %v1901_v17, %v1153_v13  ;;  %v1212_v62 = vmul.f32 %v2526_v32, %v1188_v11 }
 0x339   : > { %v2530_v1 = vadd.f32 %v1266_v60, %v1260_v53  ;;  %v1211_v16 = vadd.f32 %v1209_v21, %v1203_v3  ;;  %v1156_v53 = vsel %vm548_vm5, %v1154_v52, 0.0 }
 0x33a   : > { %v1241_v8 = vpop.xlane.xlu1 %1240  ;;  %v1905_v14 = vpop.eup %1904 }
 0x33b   : > { %v1318_v12 = vmul.f32 %v1899_v5, %v2530_v1  ;;  %v1267_v24 = vmul.f32 %v1658_v58, %v1241_v8  ;;  %v1261_v27 = vmul.f32 %v1903_v63, %v1211_v16  ;;  %v1246_v40 = vpop.xlane.xlu0 %1245 }
 0x33c   : > { %v1270_v15 = vmul.f32 %v2530_v1, %v1246_v40 }
 0x33d   : > { %v2535_v48 = vadd.f32 %v1324_v10, %v1318_v12  ;;  %v1269_v43 = vadd.f32 %v1267_v24, %v1261_v27 }
 0x33e   : > { %v901_v19 = vpop.xlane.xlu1 %900 }
 0x33f   : > { %1354 = vst.msk [vmem:[#allocation2] sm:$0xff] %vm548_vm5, %v2535_v48  ;;  %v923_v36 = vmul.f32 %v2504_v6, %v901_v19  ;;  %v1319_v49 = vmul.f32 %v1905_v14, %v1269_v43  ;;  %v1304_v19 = vpop.xlane.xlu0 %1303 }
 0x340   : > { %v1328_v30 = vmul.f32 %v2535_v48, %v1304_v19 }
 0x341   : > { %v925_v57 = vsel %vm548_vm5, %v923_v36, 0.0 }
 0x342   : > { %v959_v22 = vpop.xlane.xlu1 %958  ;;  %v926_v50 = vadd.f32 %v925_v57, %v924_v42 }
 0x343   : > { %v981_v9 = vmul.f32 %v979_v26, %v959_v22  ;;  %v1375_v19 = vpop.permute.xlu0 %1374 }
 0x344   : > { %v927_v60 = vrot.slane %v926_v50, 4 }
 0x345   : > { %v983_v20 = vsel %vm548_vm5, %v981_v9, 0.0 }
 0x346   : > { %v1017_v23 = vpop.xlane.xlu1 %1016  ;;  %v984_v34 = vadd.f32 %v983_v20, %v982_v45  ;;  %v928_v8 = vadd.f32 %v927_v60, %v926_v50  ;;  %v1330_v45 = vsel %vm548_vm5, %v1328_v30, 0.0 }
 0x347   : > { %v1039_v33 = vmul.f32 %v1037_v18, %v1017_v23 }
 0x348   : > { %v929_v24 = vrot.slane %v928_v8, 2 }
 0x349   : > { %v1041_v18 = vsel %vm548_vm5, %v1039_v33, 0.0 }
 0x34a   : > { %v1075_v39 = vpop.xlane.xlu1 %1074  ;;  %v1042_v47 = vadd.f32 %v1041_v18, %v1040_v59  ;;  %v930_v20 = vadd.f32 %v929_v24, %v928_v8 }
 0x34b   : > { %v1097_v26 = vmul.f32 %v1095_v29, %v1075_v39  ;;  %v985_v29 = vrot.slane %v984_v34, 4 }
 0x34c   : > { %v1043_v56 = vrot.slane %v1042_v47, 4 }
 0x34d   : > { %v1099_v6 = vsel %vm548_vm5, %v1097_v26, 0.0  ;;  %v986_v31 = vadd.f32 %v985_v29, %v984_v34  ;;  %v931_v34 = vrot.slane %v930_v20, 1 }
 0x34e   : > { %v1299_v25 = vpop.xlane.xlu1 %1298  ;;  %v1100_v51 = vadd.f32 %v1099_v6, %v1098_v46  ;;  %v1044_v44 = vadd.f32 %v1043_v56, %v1042_v47 }
 0x34f   : > { %v1325_v28 = vmul.f32 %v1661_v7, %v1299_v25  ;;  %v987_v21 = vrot.slane %v986_v31, 2  ;;  %v932_v29 = vadd.f32 %v931_v34, %v930_v20 }
 0x350   : > { %v1101_v61 = vrot.slane %v1100_v51, 4  ;;  %v1045_v63 = vrot.slane %v1044_v44, 2 }
 0x351   : > { %v1327_v54 = vadd.f32 %v1325_v28, %v1319_v49  ;;  %v988_v1 = vadd.f32 %v987_v21, %v986_v31 }
 0x352   : > { %v1133_v55 = vpop.xlane.xlu1 %1132  ;;  %v1102_v10 = vadd.f32 %v1101_v61, %v1100_v51  ;;  %v1046_v39 = vadd.f32 %v1045_v63, %v1044_v44 }
 0x353   : > { %v1155_v58 = vmul.f32 %v1153_v13, %v1133_v55  ;;  %1355 = vst.msk [vmem:[#allocation2 + $0x8] sm:$0xff] %vm548_vm5, %v1327_v54  ;;  %v1214_v13 = vsel %vm548_vm5, %v1212_v62, 0.0  ;;  %v989_v14 = vrot.slane %v988_v1, 1 }
 0x354   : > { %v1103_v9 = vrot.slane %v1102_v10, 2  ;;  %v1047_v11 = vrot.slane %v1046_v39, 1 }
 0x355   : > { %v1157_v0 = vsel %vm548_vm5, %v1155_v58, 0.0  ;;  %v990_v49 = vadd.f32 %v989_v14, %v988_v1 }
 0x356   : > { %v1158_v4 = vadd.f32 %v1157_v0, %v1156_v53  ;;  %v1191_v5 = vpop.xlane.xlu1 %1190  ;;  %v1104_v26 = vadd.f32 %v1103_v9, %v1102_v10 }
 0x357   : > { %v1213_v7 = vmul.f32 %v1211_v16, %v1191_v5  ;;  %v1272_v16 = vsel %vm548_vm5, %v1270_v15, 0.0  ;;  %v1340_v60 = vsel %vm1339_vm14, %v932_v29, %v990_v49 }
 0x358   : > { %v1159_v12 = vrot.slane %v1158_v4, 4  ;;  %v1105_v25 = vrot.slane %v1104_v26, 1 }
 0x359   : > { %v1215_v17 = vsel %vm548_vm5, %v1213_v7, 0.0 }
 0x35a   : > { %v1160_v3 = vadd.f32 %v1159_v12, %v1158_v4  ;;  %v1216_v32 = vadd.f32 %v1215_v17, %v1214_v13  ;;  %v1249_v22 = vpop.xlane.xlu1 %1248  ;;  %v1106_v55 = vadd.f32 %v1105_v25, %v1104_v26  ;;  %v1662_v12 = vld [vmem:[%s2664_s13] ss:$0 sm:$0xff]  ;;  %s2668_s13 = sld [smem:[#allocation24_spill]] }
 0x35b   : > { %v1271_v23 = vmul.f32 %v1269_v43, %v1249_v22  ;;  %v1364_v13 = vmul.f32 %v1662_v12, %v2302_v2 }
 0x35c   : > { %v1217_v27 = vrot.slane %v1216_v32, 4  ;;  %v1161_v33 = vrot.slane %v1160_v3, 2 }
 0x35d   : > { %v1273_v35 = vsel %vm548_vm5, %v1271_v23, 0.0 }
 0x35e   : > { %v1218_v36 = vadd.f32 %v1217_v27, %v1216_v32  ;;  %v1274_v37 = vadd.f32 %v1273_v35, %v1272_v16  ;;  %v1307_v38 = vpop.xlane.xlu1 %1306  ;;  %v1162_v57 = vadd.f32 %v1161_v33, %v1160_v3  ;;  %v1668_v33 = vld [vmem:[%s2667_s27] ss:$0 sm:$0xff] }
 0x35f   : > { %v1329_v41 = vmul.f32 %v1327_v54, %v1307_v38  ;;  %v1048_v54 = vadd.f32 %v1047_v11, %v1046_v39 }
 0x360   : > { %v1219_v18 = vrot.slane %v1218_v36, 2  ;;  %v1275_v43 = vrot.slane %v1274_v37, 4  ;;  %v1163_v28 = vrot.slane %v1162_v57, 1  ;;  %s1488_s0 = scalar_lea.hbm %s2668_s13, %s1671_s28 }
 0x361   : > { %v1331_v6 = vsel %vm548_vm5, %v1329_v41, 0.0  ;;  %v1342_v62 = vsel %vm1341_vm15, %v1340_v60, %v1048_v54 }
 0x362   : > { %v1220_v48 = vadd.f32 %v1219_v18, %v1218_v36  ;;  %v1276_v42 = vadd.f32 %v1275_v43, %v1274_v37  ;;  %v1332_v59 = vadd.f32 %v1331_v6, %v1330_v45  ;;  %v1164_v40 = vadd.f32 %v1163_v28, %v1162_v57 }
 0x363   : > { %v1344_v31 = vsel %vm1343_vm0, %v1342_v62, %v1106_v55 }
 0x364   : > { %v1277_v46 = vrot.slane %v1276_v42, 2  ;;  %v1333_v47 = vrot.slane %v1332_v59, 4  ;;  %v1221_v50 = vrot.slane %v1220_v48, 1  ;;  %v1346_v5 = vsel %vm1345_vm1, %v1344_v31, %v1164_v40 }
 0x366   : > { %v1278_v51 = vadd.f32 %v1277_v46, %v1276_v42  ;;  %v1334_v52 = vadd.f32 %v1333_v47, %v1332_v59  ;;  %v1222_v61 = vadd.f32 %v1221_v50, %v1220_v48 }
 0x368   : > { %v1279_v56 = vrot.slane %v1278_v51, 1  ;;  %v1335_v58 = vrot.slane %v1334_v52, 2  ;;  %v1348_v44 = vsel %vm1347_vm3, %v1346_v5, %v1222_v61 }
 0x36a   : > { %v1336_v53 = vadd.f32 %v1335_v58, %v1334_v52  ;;  %v1280_v0 = vadd.f32 %v1279_v56, %v1278_v51 }
 0x36c   : > { %v1337_v4 = vrot.slane %v1336_v53, 1  ;;  %v1350_v8 = vsel %vm1349_vm4, %v1348_v44, %v1280_v0 }
 0x36e   : > { %v1338_v7 = vadd.f32 %v1337_v4, %v1336_v53 }
 0x370   : > { %v1352_v10 = vsel %vm1351_vm6, %v1350_v8, %v1338_v7 }
 0x371   : > { %1353 = vst.msk [vmem:[#allocation7] sm:$0xff] %vm548_vm5, %v1352_v10 }
 0x378   : > { %v1356_v15 = vld [vmem:[#allocation7] sm:$0xff] }
 0x379   : > { %v1365_v17 = vadd.f32 %v1364_v13, %v1356_v15 }
 0x37b   : > { %v1377_v21 = vmul.f32 %v1375_v19, %v1365_v17 }
 0x37d   : > { %v1378_v3 = vpack.c.bf16 %v1377_v21, %v1377_v21 }
 0x37f   : > { %1745 = vmatmul.mubr.msk.bf16.vlgmr.msra.gmra.mxu0 %vm548_vm5, %v1378_v3 }
 0x43f   : > { %v1448_v32 = vpop.f32.mrf.mxu0 }
 0x440   : > { %v1454_v22 = vmul.f32 %v1448_v32, %v1448_v32 }
 0x441   : > { %v1746_v63 = vpop.f32.mrf.mxu0 }
 0x442   : > { %v1455_v23 = vsel %vm446_vm2, %v1454_v22, 0.0  ;;  %vm1472_vm2 = vcmask 257024  }
 0x443   : > { %1456 = vadd.xlane.f32.xlu1 %v1455_v23  ;;  %v1451_v24 = vpop.f32.mrf.mxu0 }
 0x445   : > { %v1747_v9 = vpop.f32.mrf.mxu0 }
 0x4cc   : > { %v1457_v27 = vpop.xlane.xlu1 %1456 }
 0x4cd   : > { %v1459_v2 = vmul.f32 0.03125, %v1457_v27 }
 0x4cf   : > { %v1460_v16 = vadd.f32 1e-05, %v1459_v2 }
 0x4d1   : > { %1906 = vrsqrt.f32 %v1460_v16 }
 0x4de   : > { %v1907_v30 = vpop.eup %1906 }
 0x4df   : > { %v1462_v35 = vmul.f32 %v1907_v30, %v1448_v32 }
 0x4e1   : > { %v1470_v1 = vmul.f32 %v1668_v33, %v1462_v35 }
 0x4e3   : > { %v1471_v36 = vpack.c.bf16 %v1470_v1, %v1470_v1 }
 0x4e5   : > { %1473 = vst.msk [vmem:[%s2212_s14] sm:$0xf] %vm1472_vm2, %v1471_v36 }
 0x4e6   : > { %1949 = shalt.err (!%p1946_p6)
}
 0x4e7   : > { %s1950_s8 = scalar_lea.hbm %s1488_s0, 64  ;;  %s1954_s7 = scalar_lea.hbm %s2668_s13, 256 }
 0x4e8   : > { %p1951_p7 = scmp.ne.s32.totalorder %s1488_s0, %s1950_s8  ;;  %p1955_p3 = scmp.lt.s32.totalorder %s1488_s0, %s2668_s13 }
 0x4e9   : > { %p1956_p13 = scmp.lt.s32.totalorder %s1954_s7, %s1950_s8 }
 0x4ea   : > { %p1952_p10 = pnand %p1951_p7, %p2167_p9 }
 0x4eb   : > { %p1957_p0 = por %p1956_p13, %p1955_p3 }
 0x4ec   : > { %p1953_p11 = pneg %p1952_p10 }
 0x4ee   : > { %p1958_p8 = pnand %p1957_p0, %p1953_p11 }
 0x4f0   : > { %1961 = shalt.err (!%p1958_p8)
}
 0x4f1   : > { %1750 = dma.vmem_to_hbm [thread:$0]  (%p2167_p9), %s1491_s12, 64, %s1488_s0, %s1475_s30  }
 0x4f2 PF: > { %s2669_s1 = sld [smem:[#allocation14_spill]]  ;;  %p1761_p12 = scmp.ge.s32.totalorder %s2032_s24, 2 }
 0x4f3   : > { %p2670_p1 = scmp.ne.s32.totalorder %s2659_s25, 0 }
 0x4f5   : > { %p1757_p2 = pnand %p1761_p12, %p2670_p1 }
 0x4f7   : > { %p1758_p4 = pneg %p1757_p2 }
 0x4f8   : > { %s1502_s16 = sand.u32 1, %s2669_s1  }
 0x4f9   : > { %s1503_s26 = scalar_lea.sflag [#allocation10], %s1502_s16 }
 0x4fa   : > { %1999 = dma.done.wait (%p1758_p4), %s1503_s26, 64  }
 0x4fb   : > { %2001 = vsyncadd (%p1758_p4), %s1503_s26, 4294967232  ;;  %s27_s24 = sadd.s32 1, %s2032_s24   ;;  %s2671_s20 = smov %s2180_s17 }
 0x4fc   : > { %p24_p5 = scmp.ge.s32.totalorder %s27_s24, 6   ;;  %s2672_s0 = sld [smem:[#allocation16_spill]] }
 0x4fd   : > { %s2673_s29 = sld [smem:[#allocation17_spill]]  ;;  %s2674_s17 = smov %s2008_s18 }
 0x4fe   : > { %s2675_s18 = smov %s2012_s19  ;;  %s2676_s19 = smov %s2671_s20 }
 0x4ff   : > { %s2677_s20 = smov %s2024_s22  ;;  %s2678_s21 = smov %s2028_s23 }
 0x500   :  { %26 = sbr.rel (!%p24_p5) target bundleno = 14 (0xe), region = 134 }
 0x502   : > { %s2679_s22 = smov %s2672_s0 }
 0x503   : > { %s2680_s23 = smov %s2673_s29 }
 0x505   :  { %1508 = vsyncpa [#allocation9], 1 }
 0x506   :  { %1510 = vsyncpa [#allocation9 + $0x1], 1 }
 0x507   :  { %1511 = vsyncpa [#allocation10], 1 }
 0x508   :  { %1513 = vsyncpa [#allocation10 + $0x1], 1 }

// kernel: ssm_conv1d_forward.8
= control target key start
LH: loop header
LB: loop body
LE: loop exit
PB: predicated region body
PF: predicated region fallthrough
CT: control target
= control target key end

     0   :  { %s1955_s17 = smov 0   ;;  %s1957_s18 = smov 0   ;;  %s2372_s0 = inlined_call_operand.vmem [shape: bf16[2,16,32], index: 0, kind: input, shape index: {}, may-alias: {0,11}]   ;;  %s2373_s1 = inlined_call_operand.vmem [shape: bf16[32,128], index: 1, kind: input, shape index: {}]   ;;  %s2374_s2 = inlined_call_operand.vmem [shape: f32[4,64], index: 2, kind: input, shape index: {}]   ;;  %s2375_s3 = inlined_call_operand.vmem [shape: f32[1,64], index: 3, kind: input, shape index: {}]   ;;  %s2376_s4 = inlined_call_operand.vmem [shape: bf16[64,384], index: 4, kind: input, shape index: {}]   ;;  %s2377_s5 = inlined_call_operand.vmem [shape: bf16[128,64], index: 5, kind: input, shape index: {}]   ;;  %s2378_s6 = inlined_call_operand.vmem [shape: f32[1,64], index: 6, kind: input, shape index: {}]   ;;  %s2379_s7 = inlined_call_operand.vmem [shape: f32[16,64], index: 7, kind: input, shape index: {}]   ;;  %s2380_s8 = inlined_call_operand.vmem [shape: f32[1,64], index: 8, kind: input, shape index: {}]   ;;  %s2381_s9 = inlined_call_operand.vmem [shape: bf16[64,32], index: 9, kind: input, shape index: {}]   ;;  %s2382_s10 = inlined_call_operand.vmem [shape: f32[1,32], index: 10, kind: input, shape index: {}]   ;;  %s2383_s11 = inlined_call_operand.vmem [shape: bf16[2,16,32], index: 11, kind: output, shape index: {}, may-alias: {0,11}]  }
   0x1   :  { %s1959_s19 = smov 0   ;;  %s1961_s20 = smov 0  }
   0x2   :  { %s1963_s21 = smov 0  }
   0x3 LB: > { %s30_s22 = sadd.s32 1, %s1879_s19  ;;  %s33_s23 = sadd.s32 1, %s1883_s20  ;;  %s1887_s21 = sphi %s1963_s21, %s21_s21   ;;  %s1883_s20 = sphi %s1961_s20, %s2387_s20   ;;  %s1879_s19 = sphi %s1959_s19, %s2386_s19   ;;  %s1875_s18 = sphi %s1957_s18, %s2385_s18   ;;  %s1871_s17 = sphi %s1955_s17, %s2384_s17  }
   0x4   : > { %p31_p0 = scmp.ge.s32.totalorder %s30_s22, 2  ;;  %p1583_p1 = scmp.ge.s32.totalorder %s1887_s21, 1 }
   0x5   : > { %p356_p2 = scmp.lt.s32.totalorder %s1887_s21, 5 }
   0x6   : > { %s2389_s22 = smov (%p31_p0, %s30_s22), 0  ;;  %s2391_s23 = smov (!%p31_p0, %s33_s23), %s1883_s20 }
   0x7   : > { %p357_p3 = pnand %p1583_p1, %p356_p2  ;;  %p35_p4 = scmp.ge.s32.totalorder %s2391_s23, 2 }
   0x8   : > { %p402_p5 = scmp.lt.s32.totalorder (!%p357_p3), %s1875_s18, 1  ;;  %p404_p6 = scmp.lt.s32.totalorder (!%p357_p3), %s1871_s17, 1 }
   0x9   : > { %s2393_s23 = smov (%p35_p4, %s2391_s23), 0  ;;  %360 = sbr.rel (%p357_p3) target bundleno = 1204 (0x4b4), region = 64 }
   0xa   : > { %p1588_p7 = scmp.ne.s32.totalorder (!%p357_p3), %s1871_s17, 0 }
   0xe   : > { %s2395_s18 = smov (!%p402_p5, %s1875_s18), 1 }
   0xf   : > { %s405_s24 = scalar_select %p404_p6, %s1871_s17, 1 }
  0x10   : > { %s1584_s25 = sshll.u32 %s2395_s18, 1  ;;  %423 = sbr.rel (%p1588_p7) target bundleno = 24 (0x18), region = 68 }
  0x11   : > { %s407_s26 = sadd.s32 %s1584_s25, %s405_s24 }
  0x12   : > { %s1585_s27 = sshll.u32 %s407_s26, 2 }
  0x13   : > { %s409_s30 = scalar_lea.vmem %s2372_s0, %s1585_s27  ;;  %s1991_s14 = scalar_lea.vmem %s2383_s11, %s1585_s27 }
  0x14   : > { %v419_v0 = vld [vmem:[%s409_s30] sm:$0xf] }
  0x15   : > { %vm424_vm0 = vcmask 523264   ;;  %v1889_v1 = vmov 0.0  }
  0x16   : > { %425 = vst.msk [vmem:[#allocation2] sm:$0xff] %vm424_vm0, %v1889_v1  ;;  %426 = vst.msk [vmem:[#allocation2 + $0x8] sm:$0xff] %vm424_vm0, %v1889_v1 }
  0x17   : > { %427 = vst.msk [vmem:[#allocation3] sm:$0xff] %vm424_vm0, %v1889_v1 }
  0x18 PF: > { %v1773_v2 = vld [vmem:[%s2373_s1 + $0x8] sm:$0xff]   ;;  %v1890_v3 = vmov 0.0   ;;  %v1774_v4 = vld [vmem:[%s2373_s1] sm:$0xff]   ;;  %vm1891_vm1 = vmmov 0   ;;  %vm444_vm2 = vcmask 261120   ;;  %v1892_v12 = vmov 0  }
  0x19   : > { %1675 = vmatprep.subr.bf16.mxu0 %v1890_v3  ;;  %1679 = vmatprep.mubr.msk.bf16.mxu0 %vm1891_vm1, %v1890_v3  ;;  %v1775_v5 = vld [vmem:[%s2376_s4 + $0x4c] ss:$12 sps:$4 sm:$0xff]   ;;  %v1777_v6 = vld [vmem:[%s2376_s4 + $0x48] ss:$12 sps:$4 sm:$0xff]   ;;  %v1778_v7 = vld [vmem:[%s2376_s4 + $0x50] ss:$12 sps:$4 sm:$0xff]   ;;  %v490_v18 = vlaneseq }
  0x1a   : > { %1676 = vmatpush3.bf16.msra.mxu0 %v1773_v2  ;;  %v1779_v8 = vld [vmem:[%s2376_s4 + $0x34] ss:$12 sps:$4 sm:$0xff]   ;;  %647 = vmatprep.subr.bf16.mxu1 %v1775_v5  ;;  %v1782_v9 = vld [vmem:[%s2376_s4 + $0x38] ss:$12 sps:$4 sm:$0xff]   ;;  %v1781_v10 = vld [vmem:[%s2376_s4 + $0x30] ss:$12 sps:$4 sm:$0xff]  }
  0x1b   : > { %1677 = vmatprep.subr.bf16.mxu0 %v1890_v3  ;;  %648 = vmatpush1.bf16.msra.mxu1 %v1777_v6  ;;  %v1783_v11 = vld [vmem:[%s2376_s4 + $0x1c] ss:$12 sps:$4 sm:$0xff]   ;;  %v1786_v13 = vld [vmem:[%s2376_s4 + $0x20] ss:$12 sps:$4 sm:$0xff]   ;;  %v1785_v14 = vld [vmem:[%s2376_s4 + $0x18] ss:$12 sps:$4 sm:$0xff]  }
  0x1c   : > { %649 = vmatprep.subr.bf16.mxu1 %v1779_v8  ;;  %671 = vmatprep.mubr.bf16.mxu1 %v1892_v12  ;;  %v1787_v15 = vld [vmem:[%s2376_s4 + $0x4] ss:$12 sps:$4 sm:$0xff]   ;;  %v1790_v16 = vld [vmem:[%s2376_s4 + $0x8] ss:$12 sps:$4 sm:$0xff]   ;;  %v1789_v17 = vld [vmem:[%s2376_s4] ss:$12 sps:$4 sm:$0xff]  }
  0x1d   : > { %v2049_v20 = vshrl.u32 %v490_v18, 7  ;;  %vm546_vm5 = vcmask 523264   ;;  %v488_v25 = vld [vmem:[%s2374_s2] sm:$0xf]  ;;  %v1792_v6 = vld [vmem:[%s2377_s5 + $0x30] sm:$0xff]   ;;  %s1893_s29 = smov 16  }
  0x1e   : > { %1678 = vmatpush3.bf16.msra.mxu0 %v1774_v4  ;;  %v489_v19 = vld [vmem:[#allocation3] sm:$0xff]  ;;  %v1592_v40 = vld [vmem:[%s2375_s3] ss:$0 sm:$0xff]  ;;  %v1791_v4 = vld [vmem:[%s2377_s5 + $0x38] sm:$0xff]   ;;  %vm853_vm7 = vcmask 130048   ;;  %s1894_s13 = smov 64  }
  0x1f   : > { %1683 = vmatprep.subr.bf16.mxu0 %v1890_v3  ;;  %650 = vmatpush1.bf16.msra.mxu1 %v1781_v10  ;;  %v509_v21 = vrot.slane %v489_v19, 5  ;;  %v522_v22 = vrot.slane %v489_v19, 6  ;;  %v505_v23 = vsub.s32 0, %v2049_v20  ;;  %v518_v24 = vsub.s32 1, %v2049_v20  ;;  %v1794_v8 = vld [vmem:[%s2377_s5 + $0x20] sm:$0xff]   ;;  %v1796_v10 = vld [vmem:[%s2377_s5 + $0x10] sm:$0xff]  }
  0x20   : > { %651 = vmatprep.subr.bf16.mxu1 %v1783_v11  ;;  %vm501_vm3 = vcmp.lt.s32.totalorder %v2049_v20, 3  ;;  %vm514_vm4 = vcmp.lt.s32.totalorder %v2049_v20, 2  ;;  %v535_v28 = vrot.slane %v489_v19, 7  ;;  %v531_v32 = vsub.s32 2, %v2049_v20  ;;  %v1797_v11 = vld [vmem:[%s2377_s5 + $0x8] sm:$0xff]   ;;  %v1798_v12 = vld [vmem:[%s2377_s5] sm:$0xff]  }
  0x21   : > { %1680 = vmatmul.mubr.msk.bf16.vlgmr.msra.gmra.mxu0 %vm444_vm2, %v419_v0  ;;  %v510_v26 = vsel %vm501_vm3, %v509_v21, 0.0  ;;  %v523_v27 = vsel %vm514_vm4, %v522_v22, 0.0  ;;  %v506_v30 = vrot.slane %v488_v25, %v505_v23  ;;  %v519_v31 = vrot.slane %v488_v25, %v518_v24 }
  0x22   : > { %1691 = vmatprep.mubr.msk.bf16.mxu0 %vm1891_vm1, %v1890_v3  ;;  %1684 = vmatpush3.bf16.msra.mxu0 %v1778_v7  ;;  %v541_v36 = vsub.s32 3, %v2049_v20  ;;  %vm527_vm6 = vcmp.lt.s32.totalorder %v2049_v20, 1  ;;  %v532_v45 = vrot.slane %v488_v25, %v531_v32  ;;  %v1793_v7 = vld [vmem:[%s2377_s5 + $0x28] sm:$0xff]   ;;  %vm1337_vm14 = vcmask 1040384  }
  0x23   : > { %1685 = vmatprep.subr.bf16.mxu0 %v1890_v3  ;;  %652 = vmatpush1.bf16.msra.mxu1 %v1785_v14  ;;  %v511_v38 = vmul.f32 %v510_v26, %v506_v30  ;;  %v524_v39 = vmul.f32 %v523_v27, %v519_v31  ;;  %v536_v43 = vsel %vm527_vm6, %v535_v28, 0.0  ;;  %v2126_v27 = vadd.s32 8, %v2049_v20 }
  0x24   : > { %653 = vmatprep.subr.bf16.mxu1 %v1787_v15  ;;  %v542_v48 = vrot.slane %v488_v25, %v541_v36  ;;  %v537_v53 = vmul.f32 %v536_v43, %v532_v45  ;;  %v2122_v25 = vand.u32 127, %v490_v18  ;;  %vm1339_vm15 = vcmask 1041408  }
  0x25   : > { %v525_v52 = vadd.f32 %v524_v39, %v511_v38  ;;  %vm1341_vm0 = vcmask 1042432  }
  0x26   : > { %1686 = vmatpush3.bf16.msra.mxu0 %v1782_v9  ;;  %v1795_v9 = vld [vmem:[%s2377_s5 + $0x18] sm:$0xff]   ;;  %vm860_vm8 = vcmp.eq.s32.totalorder %v2122_v25, %v2126_v27  ;;  %vm859_vm9 = vcmp.eq.s32.totalorder %v2122_v25, %v2049_v20 }
  0x27   : > { %1687 = vmatprep.subr.bf16.mxu0 %v1890_v3  ;;  %654 = vmatpush1.bf16.msra.mxu1 %v1789_v17  ;;  %v538_v58 = vadd.f32 %v537_v53, %v525_v52  ;;  %v2133_v28 = vsel %vm860_vm8, 1.0, %v1890_v3 }
  0x28   : > { %1695 = vmatprep.subr.bf16.mxu1 %v1890_v3 }
  0x2a   : > { %1688 = vmatpush3.bf16.msra.mxu0 %v1786_v13 }
  0x2b   : > { %1689 = vmatprep.subr.bf16.mxu0 %v1890_v3 }
  0x2e   : > { %1690 = vmatpush3.bf16.msra.mxu0 %v1790_v16 }
  0x2f   : > { %1715 = vmatprep.subr.bf16.mxu0 %v1890_v3 }
  0xe1   : > { %v2062_v29 = vpop.f32.mrf.mxu0 }
  0xe2   : > { %v500_v33 = vrot.slane %v2062_v29, 5  ;;  %v513_v34 = vrot.slane %v2062_v29, 6  ;;  %v526_v35 = vrot.slane %v2062_v29, 7  ;;  %547 = vst.msk [vmem:[#allocation3] sm:$0xff] %vm546_vm5, %v2062_v29  ;;  %v543_v56 = vmul.f32 %v542_v48, %v2062_v29 }
  0xe3   : > { %v1681_v37 = vpop.f32.mrf.mxu0 }
  0xe4   : > { %v502_v41 = vsel %vm501_vm3, 0.0, %v500_v33  ;;  %v515_v42 = vsel %vm514_vm4, 0.0, %v513_v34  ;;  %v528_v47 = vsel %vm527_vm6, 0.0, %v526_v35  ;;  %v865_v35 = vadd.s32 16, %v2049_v20 }
  0xe5   : > { %v507_v44 = vmul.f32 %v506_v30, %v502_v41  ;;  %v485_v46 = vpop.f32.mrf.mxu0  ;;  %v520_v50 = vmul.f32 %v519_v31, %v515_v42  ;;  %v533_v54 = vmul.f32 %v532_v45, %v528_v47  ;;  %v1616_v30 = vsel %vm859_vm9, 1.0, %v1890_v3 }
  0xe6   : > { %vm867_vm10 = vcmp.eq.s32.totalorder %v2122_v25, %v865_v35  ;;  %vm1345_vm3 = vcmask 1044480   ;;  %vm1347_vm4 = vcmask 1045504   ;;  %vm1349_vm6 = vcmask 1046528  }
  0xe7   : > { %v508_v49 = vadd.f32 %v1592_v40, %v507_v44  ;;  %v1682_v51 = vpop.f32.mrf.mxu0  ;;  %v1618_v45 = vsel %vm867_vm10, 1.0, %v1890_v3 }
  0xe9   : > { %v521_v55 = vadd.f32 %v520_v50, %v508_v49 }
  0xeb   : > { %v534_v57 = vadd.f32 %v533_v54, %v521_v55 }
  0xed   : > { %v544_v59 = vadd.f32 %v543_v56, %v534_v57 }
  0xef   : > { %v545_v60 = vadd.f32 %v544_v59, %v538_v58 }
  0xf1   : > { %v548_v61 = vsub.f32 0.0, %v545_v60 }
  0xf3   : > { %v549_v62 = vmul.f32 1.442695, %v548_v61 }
  0xf5   : > { %1803 = vpow2.f32 %v549_v62 }
 0x102   : > { %v1804_v63 = vpop.eup %1803 }
 0x103   : > { %v551_v0 = vadd.f32 1.0, %v1804_v63  ;;  %v1364_v63 = vsub.f32 0.0, %v2062_v29 }
 0x105   : > { %1805 = vrcp.f32 %v551_v0 }
 0x112   : > { %v1806_v1 = vpop.eup %1805 }
 0x113   : > { %v2080_v2 = vmul.f32 %v1806_v1, %v545_v60 }
 0x115   : > { %v555_v5 = vpack.c.bf16 %v2080_v2, %v2080_v2 }
 0x117   : > { %1605 = vmatmul.mubr.msk.bf16.vlgmr.msra.gmra.mxu1 %vm546_vm5, %v555_v5  ;;  %1692 = vmatmul.mubr.msk.bf16.vlgmr.msra.gmra.mxu0 %vm546_vm5, %v555_v5 }
 0x118   : > { %1696 = vmatpush3.bf16.msra.mxu1 %v1791_v4  ;;  %1711 = vmatprep.mubr.msk.bf16.mxu1 %vm1891_vm1, %v1890_v3 }
 0x119   : > { %1697 = vmatprep.subr.bf16.mxu1 %v1890_v3  ;;  %1723 = vmatprep.mubr.msk.bf16.mxu0 %vm1891_vm1, %v1890_v3  ;;  %vm1343_vm1 = vcmask 1043456  }
 0x11c   : > { %1698 = vmatpush3.bf16.msra.mxu1 %v1792_v6 }
 0x11d   : > { %1699 = vmatprep.subr.bf16.mxu1 %v1890_v3 }
 0x120   : > { %1700 = vmatpush3.bf16.msra.mxu1 %v1793_v7 }
 0x121   : > { %1701 = vmatprep.subr.bf16.mxu1 %v1890_v3 }
 0x124   : > { %1702 = vmatpush3.bf16.msra.mxu1 %v1794_v8  ;;  %v1365_v8 = vmul.f32 1.442695, %v1364_v63 }
 0x125   : > { %1703 = vmatprep.subr.bf16.mxu1 %v1890_v3 }
 0x126   : > { %1807 = vpow2.f32 %v1365_v8  ;;  %v1801_v8 = vld [vmem:[%s2381_s9 + $0x8] sm:$0xff]  }
 0x128   : > { %1704 = vmatpush3.bf16.msra.mxu1 %v1795_v9 }
 0x129   : > { %1705 = vmatprep.subr.bf16.mxu1 %v1890_v3 }
 0x12c   : > { %1706 = vmatpush3.bf16.msra.mxu1 %v1796_v10 }
 0x12d   : > { %1707 = vmatprep.subr.bf16.mxu1 %v1890_v3 }
 0x130   : > { %1708 = vmatpush3.bf16.msra.mxu1 %v1797_v11 }
 0x131   : > { %1709 = vmatprep.subr.bf16.mxu1 %v1890_v3 }
 0x134   : > { %1710 = vmatpush3.bf16.msra.mxu1 %v1798_v12 }
 0x1d7   : > { %v673_v13 = vpop.f32.mrf.mxu1  ;;  %v714_v14 = vpop.f32.mrf.mxu0 }
 0x1d8   : > { %v720_v15 = vpack.c.bf16 %v673_v13, %v673_v13  ;;  %850 = vrot.lane.b32.xlu0 %v714_v14, %s1893_s29  ;;  %v866_v13 = vadd.s32 16, %v2126_v27 }
 0x1d9   : > { %v675_v16 = vpop.f32.mrf.mxu1  ;;  %v1693_v17 = vpop.f32.mrf.mxu0 }
 0x1da   : > { %1712 = vmatmul.mubr.bf16.vlgmr.msra.gmra.mxu1 %v720_v15  ;;  %vm868_vm11 = vcmp.eq.s32.totalorder %v2122_v25, %v866_v13 }
 0x1db   : > { %v677_v19 = vpop.f32.mrf.mxu1  ;;  %v717_v21 = vpop.f32.mrf.mxu0 }
 0x1dd   : > { %v678_v22 = vpop.f32.mrf.mxu1  ;;  %v1694_v23 = vpop.f32.mrf.mxu0 }
 0x24a   : > { %v851_v24 = vpop.permute.xlu0 %850 }
 0x24b   : > { %v854_v26 = vsel %vm853_vm7, %v675_v16, %v851_v24  ;;  %v1619_v24 = vsel %vm868_vm11, 1.0, %v1890_v3 }
 0x24c   : > { %855 = vst.msk [vmem:[#allocation6] sm:$0xff] %vm444_vm2, %v854_v26 }
 0x253   : > { %v2136_v31 = vld [vmem:[#allocation6] ss:$0 sm:$0xff]  ;;  %v2138_v18 = vld [vmem:[#allocation6 + $0x1] ss:$0 sm:$0xff]  ;;  %v2140_v32 = vld [vmem:[#allocation6 + $0x5] ss:$0 sm:$0xff] }
 0x254   : > { %v885_v33 = vmul.f32 %v2136_v31, %v2133_v28  ;;  %v884_v34 = vmul.f32 %v2136_v31, %v1616_v30  ;;  %v942_v38 = vmul.f32 %v2138_v18, %v1616_v30  ;;  %v1174_v39 = vmul.f32 %v2140_v32, %v1616_v30  ;;  %v2150_v40 = vld [vmem:[#allocation6 + $0x6] ss:$0 sm:$0xff]  ;;  %v2158_v44 = vld [vmem:[#allocation6 + $0x2] ss:$0 sm:$0xff]  ;;  %v2170_v54 = vld [vmem:[#allocation6 + $0x3] ss:$0 sm:$0xff] }
 0x255   : > { %v943_v20 = vmul.f32 %v2138_v18, %v2133_v28  ;;  %v1232_v43 = vmul.f32 %v2150_v40, %v1616_v30  ;;  %v1000_v48 = vmul.f32 %v2158_v44, %v1616_v30  ;;  %v892_v49 = vmul.f32 %v2136_v31, %v1618_v45  ;;  %v1632_v0 = vld [vmem:[#allocation6 + $0x4] ss:$0 sm:$0xff]  ;;  %v2182_v1 = vld [vmem:[#allocation6 + $0x7] ss:$0 sm:$0xff] }
 0x256   : > { %v889_v36 = vsel %vm444_vm2, %v885_v33, 0.0  ;;  %v886_v37 = vsel %vm444_vm2, %v884_v34, 0.0  ;;  %v944_v41 = vsel %vm444_vm2, %v942_v38, 0.0  ;;  %v1176_v42 = vsel %vm444_vm2, %v1174_v39, 0.0  ;;  %v1808_v33 = vpop.eup %1807 }
 0x257   : > { %890 = vadd.xlane.f32.xlu1 %v889_v36  ;;  %887 = vadd.xlane.f32.xlu0 %v886_v37  ;;  %v947_v46 = vsel %vm444_vm2, %v943_v20, 0.0  ;;  %v1234_v47 = vsel %vm444_vm2, %v1232_v43, 0.0  ;;  %v1002_v50 = vsel %vm444_vm2, %v1000_v48, 0.0  ;;  %v894_v51 = vsel %vm444_vm2, %v892_v49, 0.0  ;;  %v1607_v48 = vld [vmem:[%s2378_s6] ss:$0 sm:$0xff] }
 0x258   : > { %v1001_v52 = vmul.f32 %v2158_v44, %v2133_v28  ;;  %v950_v53 = vmul.f32 %v2138_v18, %v1618_v45  ;;  %v1058_v57 = vmul.f32 %v2170_v54, %v1616_v30  ;;  %v1008_v58 = vmul.f32 %v2158_v44, %v1618_v45 }
 0x259   : > { %v1059_v61 = vmul.f32 %v2170_v54, %v2133_v28  ;;  %v1066_v62 = vmul.f32 %v2170_v54, %v1618_v45  ;;  %v1116_v6 = vmul.f32 %v1632_v0, %v1616_v30  ;;  %v1290_v7 = vmul.f32 %v2182_v1, %v1616_v30 }
 0x25a   : > { %v1005_v55 = vsel %vm444_vm2, %v1001_v52, 0.0  ;;  %v952_v56 = vsel %vm444_vm2, %v950_v53, 0.0  ;;  %v1060_v59 = vsel %vm444_vm2, %v1058_v57, 0.0  ;;  %v1010_v60 = vsel %vm444_vm2, %v1008_v58, 0.0 }
 0x25b   : > { %945 = vadd.xlane.f32.xlu1 %v944_v41  ;;  %1177 = vadd.xlane.f32.xlu0 %v1176_v42  ;;  %v1063_v4 = vsel %vm444_vm2, %v1059_v61, 0.0  ;;  %v1068_v5 = vsel %vm444_vm2, %v1066_v62, 0.0  ;;  %v1118_v9 = vsel %vm444_vm2, %v1116_v6, 0.0  ;;  %v1292_v10 = vsel %vm444_vm2, %v1290_v7, 0.0 }
 0x25c   : > { %v1117_v11 = vmul.f32 %v1632_v0, %v2133_v28  ;;  %v1124_v12 = vmul.f32 %v1632_v0, %v1618_v45  ;;  %v1175_v16 = vmul.f32 %v2140_v32, %v2133_v28  ;;  %v1182_v17 = vmul.f32 %v2140_v32, %v1618_v45 }
 0x25d   : > { %v1233_v22 = vmul.f32 %v2150_v40, %v2133_v28  ;;  %v1240_v23 = vmul.f32 %v2150_v40, %v1618_v45  ;;  %v893_v30 = vmul.f32 %v2136_v31, %v1619_v24  ;;  %v1298_v25 = vmul.f32 %v2182_v1, %v1618_v45 }
 0x25e   : > { %v1121_v14 = vsel %vm444_vm2, %v1117_v11, 0.0  ;;  %v1126_v15 = vsel %vm444_vm2, %v1124_v12, 0.0  ;;  %v1179_v19 = vsel %vm444_vm2, %v1175_v16, 0.0  ;;  %v1184_v21 = vsel %vm444_vm2, %v1182_v17, 0.0  ;;  %v2257_v16 = vld [vmem:[%s2379_s7 + $0x8] sm:$0xff] }
 0x25f   : > { %948 = vadd.xlane.f32.xlu1 %v947_v46  ;;  %1235 = vadd.xlane.f32.xlu0 %v1234_v47  ;;  %v1237_v26 = vsel %vm444_vm2, %v1233_v22, 0.0  ;;  %v1242_v27 = vsel %vm444_vm2, %v1240_v23, 0.0  ;;  %v897_v34 = vsel %vm444_vm2, %v893_v30, 0.0  ;;  %v1300_v35 = vsel %vm444_vm2, %v1298_v25, 0.0 }
 0x260   : > { %v951_v36 = vmul.f32 %v2138_v18, %v1619_v24  ;;  %v1367_v37 = vadd.f32 1.0, %v1808_v33  ;;  %v1009_v39 = vmul.f32 %v2158_v44, %v1619_v24  ;;  %v1067_v41 = vmul.f32 %v2170_v54, %v1619_v24 }
 0x261   : > { %v1291_v20 = vmul.f32 %v2182_v1, %v2133_v28  ;;  %v1125_v43 = vmul.f32 %v1632_v0, %v1619_v24  ;;  %v1183_v46 = vmul.f32 %v2140_v32, %v1619_v24 }
 0x262   : > { %v955_v38 = vsel %vm444_vm2, %v951_v36, 0.0  ;;  %1809 = vrcp.f32 %v1367_v37  ;;  %v1013_v31 = vsel %vm444_vm2, %v1009_v39, 0.0  ;;  %v1071_v42 = vsel %vm444_vm2, %v1067_v41, 0.0 }
 0x263   : > { %1003 = vadd.xlane.f32.xlu1 %v1002_v50  ;;  %895 = vadd.xlane.f32.xlu0 %v894_v51  ;;  %v1295_v18 = vsel %vm444_vm2, %v1291_v20, 0.0  ;;  %v1129_v44 = vsel %vm444_vm2, %v1125_v43, 0.0  ;;  %v1187_v49 = vsel %vm444_vm2, %v1183_v46, 0.0  ;;  %v1241_v50 = vmul.f32 %v2150_v40, %v1619_v24 }
 0x265   : > { %v1245_v32 = vsel %vm444_vm2, %v1241_v50, 0.0 }
 0x267   : > { %1006 = vadd.xlane.f32.xlu1 %v1005_v55  ;;  %953 = vadd.xlane.f32.xlu0 %v952_v56 }
 0x26b   : > { %1061 = vadd.xlane.f32.xlu1 %v1060_v59  ;;  %1011 = vadd.xlane.f32.xlu0 %v1010_v60 }
 0x26f   : > { %1064 = vadd.xlane.f32.xlu1 %v1063_v4  ;;  %1069 = vadd.xlane.f32.xlu0 %v1068_v5  ;;  %v1810_v45 = vpop.eup %1809  ;;  %v1800_v5 = vld [vmem:[%s2381_s9 + $0x10] sm:$0xff]  }
 0x270   : > { %v1370_v47 = vmul.f32 %v1810_v45, %v2062_v29  ;;  %v1299_v29 = vmul.f32 %v2182_v1, %v1619_v24  ;;  %v1799_v1 = vld [vmem:[%s2381_s9 + $0x18] sm:$0xff]  }
 0x271   : > { %1716 = vmatpush3.bf16.msra.mxu0 %v1799_v1 }
 0x272   : > { %v1303_v57 = vsel %vm444_vm2, %v1299_v29, 0.0  ;;  %1717 = vmatprep.subr.bf16.mxu0 %v1890_v3 }
 0x273   : > { %1119 = vadd.xlane.f32.xlu1 %v1118_v9  ;;  %1293 = vadd.xlane.f32.xlu0 %v1292_v10  ;;  %v2246_v9 = vld [vmem:[%s2379_s7] sm:$0xff] }
 0x274   : > { %v1802_v10 = vld [vmem:[%s2381_s9] sm:$0xff]  }
 0x275   : > { %1718 = vmatpush3.bf16.msra.mxu0 %v1800_v5 }
 0x276   : > { %1719 = vmatprep.subr.bf16.mxu0 %v1890_v3 }
 0x277   : > { %1122 = vadd.xlane.f32.xlu1 %v1121_v14  ;;  %1127 = vadd.xlane.f32.xlu0 %v1126_v15 }
 0x279   : > { %1720 = vmatpush3.bf16.msra.mxu0 %v1801_v8 }
 0x27a   : > { %1721 = vmatprep.subr.bf16.mxu0 %v1890_v3 }
 0x27b   : > { %1180 = vadd.xlane.f32.xlu1 %v1179_v19  ;;  %1185 = vadd.xlane.f32.xlu0 %v1184_v21 }
 0x27d   : > { %1722 = vmatpush3.bf16.msra.mxu0 %v1802_v10 }
 0x27f   : > { %1238 = vadd.xlane.f32.xlu1 %v1237_v26  ;;  %1243 = vadd.xlane.f32.xlu0 %v1242_v27 }
 0x283   : > { %898 = vadd.xlane.f32.xlu1 %v897_v34  ;;  %1301 = vadd.xlane.f32.xlu0 %v1300_v35  ;;  %v875_v34 = vld [vmem:[#allocation2] sm:$0xff] }
 0x287   : > { %956 = vadd.xlane.f32.xlu1 %v955_v38 }
 0x28b   : > { %1014 = vadd.xlane.f32.xlu1 %v1013_v31 }
 0x28f   : > { %1072 = vadd.xlane.f32.xlu1 %v1071_v42 }
 0x293   : > { %1296 = vadd.xlane.f32.xlu1 %v1295_v18 }
 0x297   : > { %1130 = vadd.xlane.f32.xlu1 %v1129_v44 }
 0x299   : > { %1372 = vrot.lane.b32.xlu0 %v1370_v47, %s1894_s13 }
 0x29a   : > { %v826_v28 = vpop.f32.mrf.mxu1 }
 0x29b   : > { %v827_v51 = vadd.f32 %v1607_v48, %v826_v28  ;;  %1188 = vadd.xlane.f32.xlu1 %v1187_v49 }
 0x29c   : > { %v1713_v52 = vpop.f32.mrf.mxu1 }
 0x29d   : > { %v833_v53 = vmin.f32 %v827_v51, 20.0  ;;  %vm832_vm13 = vcmp.gt.f32.partialorder %v827_v51, 20.0 }
 0x29e   : > { %v829_v54 = vpop.f32.mrf.mxu1 }
 0x29f   : > { %v834_v55 = vmul.f32 1.442695, %v833_v53  ;;  %1246 = vadd.xlane.f32.xlu1 %v1245_v32 }
 0x2a0   : > { %v1714_v56 = vpop.f32.mrf.mxu1 }
 0x2a1   : > { %1811 = vpow2.f32 %v834_v55  ;;  %v876_v55 = vld [vmem:[#allocation2 + $0x8] sm:$0xff] }
 0x2a3   : > { %1304 = vadd.xlane.f32.xlu1 %v1303_v57 }
 0x2ae   : > { %v1812_v58 = vpop.eup %1811 }
 0x2af   : > { %v836_v59 = vadd.f32 1.0, %v1812_v58  ;;  %v839_v40 = vmul.f32 -0.5, %v1812_v58  ;;  %v842_v61 = vand.u32 2147483647, %v1812_v58 }
 0x2b1   : > { %1813 = vlog2.f32 %v836_v59  ;;  %v840_v60 = vadd.f32 1.0, %v839_v40  ;;  %vm843_vm12 = vcmp.lt.f32.partialorder %v842_v61, 0.0004427343 }
 0x2b3   : > { %v841_v0 = vmul.f32 %v1812_v58, %v840_v60 }
 0x2be   : > { %v1814_v62 = vpop.eup %1813 }
 0x2bf   : > { %v838_v63 = vmul.f32 0.6931472, %v1814_v62 }
 0x2c1   : > { %v844_v4 = vsel %vm843_vm12, %v841_v0, %v838_v63 }
 0x2c2   : > { %v845_v6 = vsel %vm832_vm13, %v827_v51, %v844_v4 }
 0x2c3   : > { %v846_v7 = vmul.f32 %v845_v6, %v2080_v2  ;;  %847 = vst.msk [vmem:[#allocation4] sm:$0xff] %vm546_vm5, %v845_v6 }
 0x2c5   : > { %848 = vst.msk [vmem:[#allocation5] sm:$0xff] %vm546_vm5, %v846_v7 }
 0x2ca   : > { %v1621_v11 = vld [vmem:[#allocation4] ss:$0 sm:$0xff]  ;;  %v1624_v14 = vld [vmem:[#allocation4 + $0x1] ss:$0 sm:$0xff]  ;;  %v1627_v21 = vld [vmem:[#allocation4 + $0x2] ss:$0 sm:$0xff] }
 0x2cb   : > { %v904_v12 = vmul.f32 %v1621_v11, %v2246_v9  ;;  %v962_v15 = vmul.f32 %v1624_v14, %v2246_v9  ;;  %v905_v19 = vmul.f32 %v1621_v11, %v2257_v16  ;;  %v1020_v3 = vmul.f32 %v1627_v21, %v2246_v9  ;;  %v1630_v23 = vld [vmem:[#allocation4 + $0x3] ss:$0 sm:$0xff]  ;;  %v1633_v41 = vld [vmem:[#allocation4 + $0x4] ss:$0 sm:$0xff]  ;;  %v1636_v45 = vld [vmem:[#allocation4 + $0x5] ss:$0 sm:$0xff] }
 0x2cc   : > { %v963_v26 = vmul.f32 %v1624_v14, %v2257_v16  ;;  %v1622_v30 = vld [vmem:[#allocation5] ss:$0 sm:$0xff]  ;;  %v1078_v36 = vmul.f32 %v1630_v23, %v2246_v9  ;;  %v1021_v18 = vmul.f32 %v1627_v21, %v2257_v16  ;;  %v1136_v43 = vmul.f32 %v1633_v41, %v2246_v9  ;;  %v1625_v46 = vld [vmem:[#allocation5 + $0x1] ss:$0 sm:$0xff]  ;;  %v1639_v53 = vld [vmem:[#allocation4 + $0x6] ss:$0 sm:$0xff] }
 0x2cd   : > { %v906_v13 = vmul.f32 1.442695, %v904_v12  ;;  %v964_v17 = vmul.f32 1.442695, %v962_v15  ;;  %v908_v22 = vmul.f32 1.442695, %v905_v19  ;;  %v1194_v51 = vmul.f32 %v1636_v45, %v2246_v9 }
 0x2ce   : > { %v1022_v24 = vmul.f32 1.442695, %v1020_v3  ;;  %v966_v38 = vmul.f32 1.442695, %v963_v26  ;;  %v1080_v20 = vmul.f32 1.442695, %v1078_v36  ;;  %v1079_v54 = vmul.f32 %v1630_v23, %v2257_v16 }
 0x2cf   : > { %1815 = vpow2.f32 %v906_v13  ;;  %v1024_v50 = vmul.f32 1.442695, %v1021_v18  ;;  %v1138_v52 = vmul.f32 1.442695, %v1136_v43  ;;  %v1628_v58 = vld [vmem:[#allocation5 + $0x2] ss:$0 sm:$0xff]  ;;  %v1252_v60 = vmul.f32 %v1639_v53, %v2246_v9 }
 0x2d0   : > { %1817 = vpow2.f32 %v964_v17  ;;  %v1196_v40 = vmul.f32 1.442695, %v1194_v51  ;;  %v2279_v63 = vld [vmem:[#allocation4 + $0x7] ss:$0 sm:$0xff]  ;;  %v1082_v0 = vmul.f32 1.442695, %v1079_v54  ;;  %v1137_v7 = vmul.f32 %v1633_v41, %v2257_v16 }
 0x2d1   : > { %1819 = vpow2.f32 %v908_v22  ;;  %v1310_v8 = vmul.f32 %v2279_v63, %v2246_v9  ;;  %v1254_v12 = vmul.f32 1.442695, %v1252_v60  ;;  %v1631_v15 = vld [vmem:[#allocation5 + $0x3] ss:$0 sm:$0xff]  ;;  %v1195_v23 = vmul.f32 %v1636_v45, %v2257_v16 }
 0x2d2   : > { %1821 = vpow2.f32 %v1022_v24  ;;  %v1140_v3 = vmul.f32 1.442695, %v1137_v7  ;;  %v1643_v7 = vld [vmem:[#allocation5 + $0x7] ss:$0 sm:$0xff] }
 0x2d3   : > { %1823 = vpow2.f32 %v966_v38  ;;  %v1312_v9 = vmul.f32 1.442695, %v1310_v8  ;;  %v1198_v36 = vmul.f32 1.442695, %v1195_v23  ;;  %v1634_v38 = vld [vmem:[#allocation5 + $0x4] ss:$0 sm:$0xff] }
 0x2d4   : > { %1825 = vpow2.f32 %v1080_v20 }
 0x2d5   : > { %1827 = vpow2.f32 %v1024_v50 }
 0x2d6   : > { %1829 = vpow2.f32 %v1138_v52 }
 0x2d7   : > { %1831 = vpow2.f32 %v1196_v40 }
 0x2d8   : > { %1833 = vpow2.f32 %v1082_v0 }
 0x2d9   : > { %1835 = vpow2.f32 %v1254_v12 }
 0x2da   : > { %1837 = vpow2.f32 %v1140_v3 }
 0x2db   : > { %1839 = vpow2.f32 %v1312_v9 }
 0x2dc   : > { %v1816_v27 = vpop.eup %1815  ;;  %1841 = vpow2.f32 %v1198_v36 }
 0x2dd   : > { %v910_v37 = vmul.f32 %v1816_v27, %v875_v34  ;;  %v1818_v44 = vpop.eup %1817 }
 0x2de   : > { %v1820_v32 = vpop.eup %1819 }
 0x2df   : > { %v911_v62 = vmul.f32 %v1820_v32, %v876_v55  ;;  %v1822_v1 = vpop.eup %1821 }
 0x2e0   : > { %v891_v25 = vpop.xlane.xlu1 %890  ;;  %v888_v33 = vpop.xlane.xlu0 %887 }
 0x2e1   : > { %v916_v35 = vmul.f32 %v1622_v30, %v888_v33  ;;  %v917_v56 = vmul.f32 %v1622_v30, %v891_v25  ;;  %v1824_v13 = vpop.eup %1823 }
 0x2e2   : > { %v1826_v22 = vpop.eup %1825 }
 0x2e3   : > { %v2265_v42 = vadd.f32 %v916_v35, %v910_v37  ;;  %v2282_v6 = vadd.f32 %v917_v56, %v911_v62  ;;  %v1828_v33 = vpop.eup %1827 }
 0x2e4   : > { %v946_v39 = vpop.xlane.xlu1 %945  ;;  %v2263_v31 = vpop.xlane.xlu0 %1177 }
 0x2e5   : > { %v974_v28 = vmul.f32 %v1625_v46, %v946_v39  ;;  %v968_v49 = vmul.f32 %v1818_v44, %v2265_v42  ;;  %v969_v21 = vmul.f32 %v1824_v13, %v2282_v6  ;;  %v1830_v37 = vpop.eup %1829 }
 0x2e6   : > { %v1832_v43 = vpop.eup %1831 }
 0x2e7   : > { %v2274_v57 = vadd.f32 %v974_v28, %v968_v49  ;;  %v1637_v28 = vld [vmem:[#allocation5 + $0x5] ss:$0 sm:$0xff] }
 0x2e8   : > { %v949_v47 = vpop.xlane.xlu1 %948  ;;  %v2269_v48 = vpop.xlane.xlu0 %1235  ;;  %v1206_v51 = vmul.f32 %v1637_v28, %v2263_v31 }
 0x2e9   : > { %v1026_v5 = vmul.f32 %v1822_v1, %v2274_v57  ;;  %v975_v10 = vmul.f32 %v1625_v46, %v949_v47  ;;  %v1253_v46 = vmul.f32 %v1639_v53, %v2257_v16  ;;  %v1834_v47 = vpop.eup %1833 }
 0x2ea   : > { %v1836_v56 = vpop.eup %1835 }
 0x2eb   : > { %v977_v26 = vadd.f32 %v975_v10, %v969_v21  ;;  %v1256_v55 = vmul.f32 1.442695, %v1253_v46  ;;  %v1838_v62 = vpop.eup %1837 }
 0x2ec   : > { %v1004_v29 = vpop.xlane.xlu1 %1003  ;;  %v2276_v59 = vpop.xlane.xlu0 %895 }
 0x2ed   : > { %v1032_v61 = vmul.f32 %v1628_v58, %v1004_v29  ;;  %v1027_v35 = vmul.f32 %v1828_v33, %v977_v26  ;;  %1843 = vpow2.f32 %v1256_v55 }
 0x2ef   : > { %v2287_v11 = vadd.f32 %v1032_v61, %v1026_v5  ;;  %v1840_v5 = vpop.eup %1839 }
 0x2f0   : > { %v1007_v4 = vpop.xlane.xlu1 %1006  ;;  %v2289_v14 = vpop.xlane.xlu0 %953 }
 0x2f1   : > { %v1084_v24 = vmul.f32 %v1826_v22, %v2287_v11  ;;  %v1033_v30 = vmul.f32 %v1628_v58, %v1007_v4  ;;  %v1640_v58 = vld [vmem:[#allocation5 + $0x6] ss:$0 sm:$0xff]  ;;  %v1311_v4 = vmul.f32 %v2279_v63, %v2257_v16 }
 0x2f2   : > { %v1264_v60 = vmul.f32 %v1640_v58, %v2269_v48 }
 0x2f3   : > { %v1035_v18 = vadd.f32 %v1033_v30, %v1027_v35  ;;  %v978_v35 = vmul.f32 %v2274_v57, %v2289_v14 }
 0x2f4   : > { %v1062_v17 = vpop.xlane.xlu1 %1061  ;;  %v2296_v34 = vpop.xlane.xlu0 %1011 }
 0x2f5   : > { %v1090_v19 = vmul.f32 %v1631_v15, %v1062_v17  ;;  %v1085_v54 = vmul.f32 %v1834_v47, %v1035_v18  ;;  %v1842_v17 = vpop.eup %1841 }
 0x2f7   : > { %v2294_v25 = vadd.f32 %v1090_v19, %v1084_v24 }
 0x2f8   : > { %v1065_v27 = vpop.xlane.xlu1 %1064  ;;  %v1070_v49 = vpop.xlane.xlu0 %1069 }
 0x2f9   : > { %v1142_v20 = vmul.f32 %v1830_v37, %v2294_v25  ;;  %v1091_v45 = vmul.f32 %v1631_v15, %v1065_v27  ;;  %v1314_v15 = vmul.f32 1.442695, %v1311_v4  ;;  %v920_v37 = vmul.f32 %v2265_v42, %v2276_v59 }
 0x2fa   : > { %v1844_v63 = vpop.eup %1843 }
 0x2fb   : > { %v1093_v29 = vadd.f32 %v1091_v45, %v1085_v54  ;;  %1845 = vpow2.f32 %v1314_v15  ;;  %v980_v45 = vsel %vm546_vm5, %v978_v35, 0.0  ;;  %v922_v42 = vsel %vm546_vm5, %v920_v37, 0.0 }
 0x2fc   : > { %v1120_v39 = vpop.xlane.xlu1 %1119  ;;  %v1294_v0 = vpop.xlane.xlu0 %1293 }
 0x2fd   : > { %v1148_v41 = vmul.f32 %v1634_v38, %v1120_v39  ;;  %v1143_v31 = vmul.f32 %v1838_v62, %v1093_v29  ;;  %v1322_v10 = vmul.f32 %v1643_v7, %v1294_v0 }
 0x2ff   : > { %v2299_v44 = vadd.f32 %v1148_v41, %v1142_v20  ;;  %v1094_v41 = vmul.f32 %v2294_v25, %v1070_v49 }
 0x300   : > { %v1123_v50 = vpop.xlane.xlu1 %1122  ;;  %v1128_v30 = vpop.xlane.xlu0 %1127 }
 0x301   : > { %v1200_v52 = vmul.f32 %v1832_v43, %v2299_v44  ;;  %v1149_v61 = vmul.f32 %v1634_v38, %v1123_v50  ;;  %v1036_v38 = vmul.f32 %v2287_v11, %v2296_v34  ;;  %v1096_v46 = vsel %vm546_vm5, %v1094_v41, 0.0 }
 0x303   : > { %v2304_v32 = vadd.f32 %v1206_v51, %v1200_v52  ;;  %v1151_v13 = vadd.f32 %v1149_v61, %v1143_v31  ;;  %v1038_v59 = vsel %vm546_vm5, %v1036_v38, 0.0  ;;  %v1152_v52 = vmul.f32 %v2299_v44, %v1128_v30 }
 0x304   : > { %v1181_v40 = vpop.xlane.xlu1 %1180  ;;  %v1186_v11 = vpop.xlane.xlu0 %1185 }
 0x305   : > { %v1258_v53 = vmul.f32 %v1836_v56, %v2304_v32  ;;  %v1207_v21 = vmul.f32 %v1637_v28, %v1181_v40  ;;  %v1201_v3 = vmul.f32 %v1842_v17, %v1151_v13  ;;  %v1210_v62 = vmul.f32 %v2304_v32, %v1186_v11 }
 0x307   : > { %v2308_v1 = vadd.f32 %v1264_v60, %v1258_v53  ;;  %v1209_v16 = vadd.f32 %v1207_v21, %v1201_v3  ;;  %v1154_v53 = vsel %vm546_vm5, %v1152_v52, 0.0 }
 0x308   : > { %v1239_v8 = vpop.xlane.xlu1 %1238  ;;  %v1846_v14 = vpop.eup %1845 }
 0x309   : > { %v1316_v12 = vmul.f32 %v1840_v5, %v2308_v1  ;;  %v1265_v24 = vmul.f32 %v1640_v58, %v1239_v8  ;;  %v1259_v27 = vmul.f32 %v1844_v63, %v1209_v16  ;;  %v1244_v40 = vpop.xlane.xlu0 %1243 }
 0x30a   : > { %v1268_v15 = vmul.f32 %v2308_v1, %v1244_v40 }
 0x30b   : > { %v2313_v48 = vadd.f32 %v1322_v10, %v1316_v12  ;;  %v1267_v43 = vadd.f32 %v1265_v24, %v1259_v27 }
 0x30c   : > { %v899_v19 = vpop.xlane.xlu1 %898 }
 0x30d   : > { %1352 = vst.msk [vmem:[#allocation2] sm:$0xff] %vm546_vm5, %v2313_v48  ;;  %v921_v36 = vmul.f32 %v2282_v6, %v899_v19  ;;  %v1317_v49 = vmul.f32 %v1846_v14, %v1267_v43  ;;  %v1302_v19 = vpop.xlane.xlu0 %1301 }
 0x30e   : > { %v1326_v30 = vmul.f32 %v2313_v48, %v1302_v19 }
 0x30f   : > { %v923_v57 = vsel %vm546_vm5, %v921_v36, 0.0 }
 0x310   : > { %v957_v22 = vpop.xlane.xlu1 %956  ;;  %v924_v50 = vadd.f32 %v923_v57, %v922_v42 }
 0x311   : > { %v979_v9 = vmul.f32 %v977_v26, %v957_v22  ;;  %v1373_v19 = vpop.permute.xlu0 %1372 }
 0x312   : > { %v925_v60 = vrot.slane %v924_v50, 4 }
 0x313   : > { %v981_v20 = vsel %vm546_vm5, %v979_v9, 0.0 }
 0x314   : > { %v1015_v23 = vpop.xlane.xlu1 %1014  ;;  %v982_v34 = vadd.f32 %v981_v20, %v980_v45  ;;  %v926_v8 = vadd.f32 %v925_v60, %v924_v50  ;;  %v1328_v45 = vsel %vm546_vm5, %v1326_v30, 0.0 }
 0x315   : > { %v1037_v33 = vmul.f32 %v1035_v18, %v1015_v23 }
 0x316   : > { %v927_v24 = vrot.slane %v926_v8, 2 }
 0x317   : > { %v1039_v18 = vsel %vm546_vm5, %v1037_v33, 0.0 }
 0x318   : > { %v1073_v39 = vpop.xlane.xlu1 %1072  ;;  %v1040_v47 = vadd.f32 %v1039_v18, %v1038_v59  ;;  %v928_v20 = vadd.f32 %v927_v24, %v926_v8 }
 0x319   : > { %v1095_v26 = vmul.f32 %v1093_v29, %v1073_v39  ;;  %v983_v29 = vrot.slane %v982_v34, 4 }
 0x31a   : > { %v1041_v56 = vrot.slane %v1040_v47, 4 }
 0x31b   : > { %v1097_v6 = vsel %vm546_vm5, %v1095_v26, 0.0  ;;  %v984_v31 = vadd.f32 %v983_v29, %v982_v34  ;;  %v929_v34 = vrot.slane %v928_v20, 1 }
 0x31c   : > { %v1297_v25 = vpop.xlane.xlu1 %1296  ;;  %v1098_v51 = vadd.f32 %v1097_v6, %v1096_v46  ;;  %v1042_v44 = vadd.f32 %v1041_v56, %v1040_v47 }
 0x31d   : > { %v1323_v28 = vmul.f32 %v1643_v7, %v1297_v25  ;;  %v985_v21 = vrot.slane %v984_v31, 2  ;;  %v930_v29 = vadd.f32 %v929_v34, %v928_v20 }
 0x31e   : > { %v1099_v61 = vrot.slane %v1098_v51, 4  ;;  %v1043_v63 = vrot.slane %v1042_v44, 2 }
 0x31f   : > { %v1325_v54 = vadd.f32 %v1323_v28, %v1317_v49  ;;  %v986_v1 = vadd.f32 %v985_v21, %v984_v31 }
 0x320   : > { %v1131_v55 = vpop.xlane.xlu1 %1130  ;;  %v1100_v10 = vadd.f32 %v1099_v61, %v1098_v51  ;;  %v1044_v39 = vadd.f32 %v1043_v63, %v1042_v44 }
 0x321   : > { %v1153_v58 = vmul.f32 %v1151_v13, %v1131_v55  ;;  %1353 = vst.msk [vmem:[#allocation2 + $0x8] sm:$0xff] %vm546_vm5, %v1325_v54  ;;  %v1212_v13 = vsel %vm546_vm5, %v1210_v62, 0.0  ;;  %v987_v14 = vrot.slane %v986_v1, 1 }
 0x322   : > { %v1101_v9 = vrot.slane %v1100_v10, 2  ;;  %v1045_v11 = vrot.slane %v1044_v39, 1 }
 0x323   : > { %v1155_v0 = vsel %vm546_vm5, %v1153_v58, 0.0  ;;  %v988_v49 = vadd.f32 %v987_v14, %v986_v1 }
 0x324   : > { %v1156_v4 = vadd.f32 %v1155_v0, %v1154_v53  ;;  %v1189_v5 = vpop.xlane.xlu1 %1188  ;;  %v1102_v26 = vadd.f32 %v1101_v9, %v1100_v10 }
 0x325   : > { %v1211_v7 = vmul.f32 %v1209_v16, %v1189_v5  ;;  %v1270_v16 = vsel %vm546_vm5, %v1268_v15, 0.0  ;;  %v1338_v60 = vsel %vm1337_vm14, %v930_v29, %v988_v49 }
 0x326   : > { %v1157_v12 = vrot.slane %v1156_v4, 4  ;;  %v1103_v25 = vrot.slane %v1102_v26, 1 }
 0x327   : > { %v1213_v17 = vsel %vm546_vm5, %v1211_v7, 0.0 }
 0x328   : > { %v1158_v3 = vadd.f32 %v1157_v12, %v1156_v4  ;;  %v1214_v32 = vadd.f32 %v1213_v17, %v1212_v13  ;;  %v1247_v22 = vpop.xlane.xlu1 %1246  ;;  %v1104_v55 = vadd.f32 %v1103_v25, %v1102_v26  ;;  %v1644_v12 = vld [vmem:[%s2380_s8] ss:$0 sm:$0xff] }
 0x329   : > { %v1269_v23 = vmul.f32 %v1267_v43, %v1247_v22  ;;  %v1362_v13 = vmul.f32 %v1644_v12, %v2080_v2 }
 0x32a   : > { %v1215_v27 = vrot.slane %v1214_v32, 4  ;;  %v1159_v33 = vrot.slane %v1158_v3, 2 }
 0x32b   : > { %v1271_v35 = vsel %vm546_vm5, %v1269_v23, 0.0 }
 0x32c   : > { %v1216_v36 = vadd.f32 %v1215_v27, %v1214_v32  ;;  %v1272_v37 = vadd.f32 %v1271_v35, %v1270_v16  ;;  %v1305_v38 = vpop.xlane.xlu1 %1304  ;;  %v1160_v57 = vadd.f32 %v1159_v33, %v1158_v3  ;;  %v1650_v33 = vld [vmem:[%s2382_s10] ss:$0 sm:$0xff] }
 0x32d   : > { %v1327_v41 = vmul.f32 %v1325_v54, %v1305_v38  ;;  %v1046_v54 = vadd.f32 %v1045_v11, %v1044_v39 }
 0x32e   : > { %v1217_v18 = vrot.slane %v1216_v36, 2  ;;  %v1273_v43 = vrot.slane %v1272_v37, 4  ;;  %v1161_v28 = vrot.slane %v1160_v57, 1 }
 0x32f   : > { %v1329_v6 = vsel %vm546_vm5, %v1327_v41, 0.0  ;;  %v1340_v62 = vsel %vm1339_vm15, %v1338_v60, %v1046_v54 }
 0x330   : > { %v1218_v48 = vadd.f32 %v1217_v18, %v1216_v36  ;;  %v1274_v42 = vadd.f32 %v1273_v43, %v1272_v37  ;;  %v1330_v59 = vadd.f32 %v1329_v6, %v1328_v45  ;;  %v1162_v40 = vadd.f32 %v1161_v28, %v1160_v57 }
 0x331   : > { %v1342_v31 = vsel %vm1341_vm0, %v1340_v62, %v1104_v55 }
 0x332   : > { %v1275_v46 = vrot.slane %v1274_v42, 2  ;;  %v1331_v47 = vrot.slane %v1330_v59, 4  ;;  %v1219_v50 = vrot.slane %v1218_v48, 1  ;;  %v1344_v5 = vsel %vm1343_vm1, %v1342_v31, %v1162_v40 }
 0x334   : > { %v1276_v51 = vadd.f32 %v1275_v46, %v1274_v42  ;;  %v1332_v52 = vadd.f32 %v1331_v47, %v1330_v59  ;;  %v1220_v61 = vadd.f32 %v1219_v50, %v1218_v48 }
 0x336   : > { %v1277_v56 = vrot.slane %v1276_v51, 1  ;;  %v1333_v58 = vrot.slane %v1332_v52, 2  ;;  %v1346_v44 = vsel %vm1345_vm3, %v1344_v5, %v1220_v61 }
 0x338   : > { %v1334_v53 = vadd.f32 %v1333_v58, %v1332_v52  ;;  %v1278_v0 = vadd.f32 %v1277_v56, %v1276_v51 }
 0x33a   : > { %v1335_v4 = vrot.slane %v1334_v53, 1  ;;  %v1348_v8 = vsel %vm1347_vm4, %v1346_v44, %v1278_v0 }
 0x33c   : > { %v1336_v7 = vadd.f32 %v1335_v4, %v1334_v53 }
 0x33e   : > { %v1350_v10 = vsel %vm1349_vm6, %v1348_v8, %v1336_v7 }
 0x33f   : > { %1351 = vst.msk [vmem:[#allocation7] sm:$0xff] %vm546_vm5, %v1350_v10 }
 0x346   : > { %v1354_v15 = vld [vmem:[#allocation7] sm:$0xff] }
 0x347   : > { %v1363_v17 = vadd.f32 %v1362_v13, %v1354_v15 }
 0x349   : > { %v1375_v21 = vmul.f32 %v1373_v19, %v1363_v17 }
 0x34b   : > { %v1376_v3 = vpack.c.bf16 %v1375_v21, %v1375_v21 }
 0x34d   : > { %1724 = vmatmul.mubr.msk.bf16.vlgmr.msra.gmra.mxu0 %vm546_vm5, %v1376_v3  ;;  %vm1470_vm5 = vcmask 257024  }
 0x40d   : > { %v1446_v32 = vpop.f32.mrf.mxu0 }
 0x40e   : > { %v1452_v22 = vmul.f32 %v1446_v32, %v1446_v32 }
 0x40f   : > { %v1725_v63 = vpop.f32.mrf.mxu0 }
 0x410   : > { %v1453_v23 = vsel %vm444_vm2, %v1452_v22, 0.0 }
 0x411   : > { %1454 = vadd.xlane.f32.xlu1 %v1453_v23  ;;  %v1449_v24 = vpop.f32.mrf.mxu0 }
 0x413   : > { %v1726_v9 = vpop.f32.mrf.mxu0 }
 0x49a   : > { %v1455_v27 = vpop.xlane.xlu1 %1454 }
 0x49b   : > { %v1457_v16 = vmul.f32 0.03125, %v1455_v27 }
 0x49d   : > { %v1458_v30 = vadd.f32 1e-05, %v1457_v16 }
 0x49f   : > { %1847 = vrsqrt.f32 %v1458_v30 }
 0x4ac   : > { %v1848_v2 = vpop.eup %1847 }
 0x4ad   : > { %v1460_v35 = vmul.f32 %v1848_v2, %v1446_v32 }
 0x4af   : > { %v1468_v1 = vmul.f32 %v1650_v33, %v1460_v35 }
 0x4b1   : > { %v1469_v36 = vpack.c.bf16 %v1468_v1, %v1468_v1 }
 0x4b3   : > { %1471 = vst.msk [vmem:[%s1991_s14] sm:$0xf] %vm1470_vm5, %v1469_v36 }
 0x4b4 PF: > { %s21_s21 = sadd.s32 1, %s1887_s21   ;;  %s2384_s17 = smov %s1879_s19 }
 0x4b5   : > { %p18_p8 = scmp.ge.s32.totalorder %s21_s21, 6   ;;  %s2385_s18 = smov %s1883_s20 }
 0x4b6   : > { %s2386_s19 = smov %s2389_s22  ;;  %s2387_s20 = smov %s2393_s23 }
 0x4b7   :  { %20 = sbr.rel (!%p18_p8) target bundleno = 3 (0x3), region = 119 }

</bundles_post_ra>
